<compile_context>
chip_gen: v5e
topology: v5e:2x2
jax: 0.10.0
libtpu: 0.0.40
codegen_flags: <defaults>
</compile_context>

<pallas_src>
import functools

import jax
import jax.numpy as jnp
from jax import lax
from jax.experimental import pallas as pl
from jax.experimental.pallas import tpu as pltpu


def _dense_capsule_kernel(x_ref, w_ref, out_ref, *, routings, in_num_caps,
                          in_dim_caps, out_num_caps, out_dim_caps):
    I, Din = in_num_caps, in_dim_caps
    O, Dout = out_num_caps, out_dim_caps
    M = O * Dout
    BT = x_ref.shape[1]

    x = x_ref[...]            # (I, BT, Din)  f32
    w = w_ref[...]            # (I, Din, M)   f32

    # ---- x_hat on the MXU: for each input capsule i, (BT, Din) @ (Din, M) ----
    # x_hat[i, b, o*Dout + d] = sum_k x[b,i,k] * weight[o,i,d,k]
    x_hat = lax.dot_general(
        x, w,
        dimension_numbers=(((2,), (1,)), ((0,), (0,))),
        preferred_element_type=jnp.float32)           # (I, BT, M)

    # 0/1 expand (O -> O*Dout lanes) and segment-sum (O*Dout lanes -> O)
    # matrices, built once per grid step from 2-D iotas.  They keep every
    # routing contraction a plain 2-D MXU matmul and avoid any in-kernel
    # transposes / lane reshapes.
    io = lax.broadcasted_iota(jnp.int32, (O, M), 0)
    im = lax.broadcasted_iota(jnp.int32, (O, M), 1)
    expand = ((im >= io * Dout) & (im < (io + 1) * Dout)).astype(jnp.float32)      # (O, M)
    io_t = lax.broadcasted_iota(jnp.int32, (M, O), 1)
    im_t = lax.broadcasted_iota(jnp.int32, (M, O), 0)
    segsum = ((im_t >= io_t * Dout) & (im_t < (io_t + 1) * Dout)).astype(jnp.float32)  # (M, O)

    def squash_fold(s_flat):
        # per-out-capsule squared norm as a segment sum on the MXU
        n2 = jnp.dot(s_flat * s_flat, segsum,
                     preferred_element_type=jnp.float32)       # (BT, O)
        norm = jnp.sqrt(n2)
        scale = n2 * pl.reciprocal((1.0 + n2) * (norm + 1e-8), approx=True)
        scale_full = jnp.dot(scale, expand,
                             preferred_element_type=jnp.float32)   # (BT, M)
        return scale_full * s_flat                              # (BT, M)

    def agreement(v_flat):
        # db[i,b,o] = sum_d v[b,o,d] * x_hat[i,b,o,d]   (segment sum on MXU)
        agree = (v_flat[None, :, :] * x_hat).reshape(I * BT, M)
        db = jnp.dot(agree, segsum,
                     preferred_element_type=jnp.float32)        # (I*BT, O)
        return db.reshape(I, BT, O)

    # ---- routing iteration 0: b == 0 => softmax is exactly uniform 1/O ----
    s_flat = jnp.sum(x_hat, axis=0) * jnp.float32(1.0 / O)      # (BT, M)
    v_flat = squash_fold(s_flat)
    if routings > 1:
        b_log = agreement(v_flat)                               # (I, BT, O)

    # ---- remaining routing iterations (static unroll) ----
    for r in range(1, routings):
        # softmax over the out-capsule axis (torch dim=1)
        b_max = jnp.max(b_log, axis=-1, keepdims=True)
        e = jnp.exp(b_log - b_max)
        denom = jnp.sum(e, axis=-1, keepdims=True)
        c = e * pl.reciprocal(denom, approx=True)               # (I, BT, O)

        # broadcast c over the Dout lanes of its out capsule: (I*BT,O)@(O,M)
        c_full = jnp.dot(c.reshape(I * BT, O), expand,
                         preferred_element_type=jnp.float32).reshape(I, BT, M)

        # weighted sum over input capsules: leading-axis reduce (vector adds)
        s_flat = jnp.sum(c_full * x_hat, axis=0)                # (BT, M)
        v_flat = squash_fold(s_flat)

        if r < routings - 1:
            b_log = b_log + agreement(v_flat)

    # lane-dense (BT, O*Dout) store — full 128-lane unmasked vst
    out_ref[...] = v_flat.astype(out_ref.dtype)


def dense_capsule(x, weight, routings=3, batch_tile=8):
    """x: [B, in_num_caps, in_dim_caps], weight: [O, I, Dout, Din] -> [B, O, Dout]."""
    B, I, Din = x.shape
    O, I2, Dout, Din2 = weight.shape
    assert (I, Din) == (I2, Din2)
    assert routings > 0, "The 'routings' should be > 0."
    assert batch_tile % 8 == 0
    M = O * Dout

    # Weight laid out (I, Din, O*Dout): folded last dim is lane-dense and the
    # kernel contracts Din on the MXU.
    w_r = jnp.transpose(weight, (1, 3, 0, 2)).reshape(I, Din, M)

    # Batch tiling: pad B to a multiple of batch_tile and put the batch in the
    # middle so the kernel sees (I, BT, Din) with no in-kernel transposes.
    bt = batch_tile
    b_pad = ((B + bt - 1) // bt) * bt
    x_t = jnp.transpose(x, (1, 0, 2))                          # (I, B, Din)
    if b_pad != B:
        x_t = jnp.pad(x_t, ((0, 0), (0, b_pad - B), (0, 0)))
    grid = (b_pad // bt,)

    kernel = functools.partial(
        _dense_capsule_kernel, routings=routings, in_num_caps=I,
        in_dim_caps=Din, out_num_caps=O, out_dim_caps=Dout)

    flops = (2 * b_pad * I * Din * M
             + routings * (2 * b_pad * I * M        # weighted sum
                           + 2 * b_pad * I * M      # agreement update
                           + 4 * b_pad * I * M))    # expand / segment-sum matmuls
    transcendentals = max(routings - 1, 0) * b_pad * I * O   # exp in routing softmax
    bytes_accessed = x_t.size * 4 + w_r.size * 4 + b_pad * M * 4

    out_flat = pl.pallas_call(
        kernel,
        out_shape=jax.ShapeDtypeStruct((b_pad, M), x.dtype),
        grid_spec=pltpu.PrefetchScalarGridSpec(
            num_scalar_prefetch=0,
            grid=grid,
            in_specs=[
                # one batch tile of input capsules per grid step
                pl.BlockSpec((I, bt, Din), lambda b: (0, b, 0)),
                # resident weight (constant index_map -> fetched once).
                # TODO(synk): single-buffer it (pipeline_mode=pl.Buffered(1))
                # for production-size weights to halve its VMEM footprint.
                pl.BlockSpec((I, Din, M), lambda b: (0, 0, 0)),
            ],
            out_specs=pl.BlockSpec((bt, M), lambda b: (b, 0)),
        ),
        compiler_params=pltpu.CompilerParams(
            dimension_semantics=("parallel",),
            vmem_limit_bytes=64 * 1024 * 1024),
        cost_estimate=pl.CostEstimate(
            flops=flops, transcendentals=transcendentals,
            bytes_accessed=bytes_accessed),
    )(x_t, w_r)

    return out_flat[:B].reshape(B, O, Dout)


# ----------------------------- pure-JAX reference ---------------------------
def _squash_ref(s, axis=-1):
    norm = jnp.sqrt(jnp.sum(s * s, axis=axis, keepdims=True))
    scale = norm ** 2 / (1.0 + norm ** 2) / (norm + 1e-8)
    return scale * s


def dense_capsule_ref(x, weight, routings=3):
    """Exact-f32 elementwise reference mirroring the PyTorch forward."""
    x_hat = jnp.sum(weight[None, :, :, :, :] * x[:, None, :, None, :], axis=-1)  # (B,O,I,Dout)
    b = jnp.zeros(x_hat.shape[:3], jnp.float32)
    outputs = None
    for i in range(routings):
        c = jax.nn.softmax(b, axis=1)
        s = jnp.sum(c[..., None] * x_hat, axis=2)                                 # (B,O,Dout)
        outputs = _squash_ref(s)
        if i < routings - 1:
            b = b + jnp.sum(outputs[:, :, None, :] * x_hat, axis=-1)
    return outputs


if __name__ == "__main__":
    # Small shapes consistent with the module; B=16 so the batch-tiled grid has
    # length 2 (exercises the parallel batch axis).
    B, in_num_caps, in_dim_caps = 16, 64, 8
    out_num_caps, out_dim_caps = 8, 16
    routings = 3

    key = jax.random.PRNGKey(0)
    kw, kx = jax.random.split(key)
    # Matches nn.Parameter(0.01 * torch.randn(O, I, Dout, Din)).
    weight = 0.01 * jax.random.normal(
        kw, (out_num_caps, in_num_caps, out_dim_caps, in_dim_caps), jnp.float32)
    x = jax.random.normal(kx, (B, in_num_caps, in_dim_caps), jnp.float32)

    out = jax.block_until_ready(dense_capsule(x, weight, routings=routings))
    ref = jax.block_until_ready(dense_capsule_ref(x, weight, routings=routings))

    assert out.shape == (B, out_num_caps, out_dim_caps)
    # Tolerance covers MXU pass precision + EUP approx reciprocals vs the
    # exact-f32 elementwise reference.
    assert jnp.allclose(out, ref, rtol=3e-2, atol=2e-4), (
        "mismatch vs reference, max abs diff = %e" % float(jnp.max(jnp.abs(out - ref))))

    print("KERNEL_OK")
</pallas_src>

<mosaic_0001>
module attributes {stable_mosaic.version = 11 : i64} {
  func.func @_dense_capsule_kernel(%arg0: i32, %arg1: memref<64x8x8xf32, #tpu.memory_space<vmem>>, %arg2: memref<64x8x128xf32, #tpu.memory_space<vmem>>, %arg3: memref<8x128xf32, #tpu.memory_space<vmem>>) attributes {dimension_semantics = [#tpu.dimension_semantics<parallel>], iteration_bounds = array<i64: 2>, scalar_prefetch = 0 : i64, scratch_operands = 0 : i64, tpu.core_type = #tpu.core_type<tc>, window_params = [{transform_indices = @transform_0, window_bounds = array<i64: 64, 8, 8>}, {pipeline_mode = #tpu.pipeline_mode<synchronous>, transform_indices = @transform_1, window_bounds = array<i64: 64, 8, 128>}, {transform_indices = @transform_2, window_bounds = array<i64: 8, 128>}]} {
    %c0 = arith.constant 0 : index
    %c0_0 = arith.constant 0 : index
    %c0_1 = arith.constant 0 : index
    %0 = vector.load %arg1[%c0, %c0_0, %c0_1] : memref<64x8x8xf32, #tpu.memory_space<vmem>>, vector<64x8x8xf32>
    %c0_2 = arith.constant 0 : index
    %c0_3 = arith.constant 0 : index
    %c0_4 = arith.constant 0 : index
    %1 = vector.load %arg2[%c0_2, %c0_3, %c0_4] : memref<64x8x128xf32, #tpu.memory_space<vmem>>, vector<64x8x128xf32>
    %cst = arith.constant dense<0.000000e+00> : vector<64x8x128xf32>
    %2 = tpu.matmul %0, %1, %cst {dimension_numbers = #tpu.dot_dimension_numbers<[2], [1], [1], [2], [0, 0, 0, 1, 1, 2], [0], [0]>} : vector<64x8x8xf32>, vector<64x8x128xf32>, vector<64x8x128xf32> -> vector<64x8x128xf32>
    %3 = tpu.iota {dimensions = array<i32: 0>} : vector<8x128xi32>
    %4 = tpu.iota {dimensions = array<i32: 1>} : vector<8x128xi32>
    %c16_i32 = arith.constant 16 : i32
    %5 = vector.broadcast %c16_i32 : i32 to vector<8x128xi32>
    %6 = arith.muli %3, %5 : vector<8x128xi32>
    %7 = arith.cmpi sge, %4, %6 : vector<8x128xi32>
    %c1_i32 = arith.constant 1 : i32
    %8 = vector.broadcast %c1_i32 : i32 to vector<8x128xi32>
    %9 = arith.addi %3, %8 : vector<8x128xi32>
    %c16_i32_5 = arith.constant 16 : i32
    %10 = vector.broadcast %c16_i32_5 : i32 to vector<8x128xi32>
    %11 = arith.muli %9, %10 : vector<8x128xi32>
    %12 = arith.cmpi slt, %4, %11 : vector<8x128xi32>
    %13 = arith.andi %7, %12 : vector<8x128xi1>
    %14 = arith.extui %13 : vector<8x128xi1> to vector<8x128xi32>
    %15 = arith.sitofp %14 : vector<8x128xi32> to vector<8x128xf32>
    %16 = tpu.iota {dimensions = array<i32: 1>} : vector<128x8xi32>
    %17 = tpu.iota {dimensions = array<i32: 0>} : vector<128x8xi32>
    %c16_i32_6 = arith.constant 16 : i32
    %18 = vector.broadcast %c16_i32_6 : i32 to vector<128x8xi32>
    %19 = arith.muli %16, %18 : vector<128x8xi32>
    %20 = arith.cmpi sge, %17, %19 : vector<128x8xi32>
    %c1_i32_7 = arith.constant 1 : i32
    %21 = vector.broadcast %c1_i32_7 : i32 to vector<128x8xi32>
    %22 = arith.addi %16, %21 : vector<128x8xi32>
    %c16_i32_8 = arith.constant 16 : i32
    %23 = vector.broadcast %c16_i32_8 : i32 to vector<128x8xi32>
    %24 = arith.muli %22, %23 : vector<128x8xi32>
    %25 = arith.cmpi slt, %17, %24 : vector<128x8xi32>
    %26 = arith.andi %20, %25 : vector<128x8xi1>
    %27 = arith.extui %26 : vector<128x8xi1> to vector<128x8xi32>
    %28 = arith.sitofp %27 : vector<128x8xi32> to vector<128x8xf32>
    %cst_9 = arith.constant dense<0.000000e+00> : vector<8x128xf32>
    %29 = vector.multi_reduction <add>, %2, %cst_9 [0] : vector<64x8x128xf32> to vector<8x128xf32>
    %cst_10 = arith.constant 1.250000e-01 : f32
    %30 = vector.broadcast %cst_10 : f32 to vector<8x128xf32>
    %31 = arith.mulf %29, %30 : vector<8x128xf32>
    %32 = arith.mulf %31, %31 : vector<8x128xf32>
    %cst_11 = arith.constant dense<0.000000e+00> : vector<8x8xf32>
    %33 = tpu.matmul %32, %28, %cst_11 {dimension_numbers = #tpu.dot_dimension_numbers<[1], [0], [0], [1], [0, 0, 1, 1], [], []>} : vector<8x128xf32>, vector<128x8xf32>, vector<8x8xf32> -> vector<8x8xf32>
    %34 = math.sqrt %33 : vector<8x8xf32>
    %cst_12 = arith.constant 1.000000e+00 : f32
    %35 = vector.broadcast %cst_12 : f32 to vector<8x8xf32>
    %36 = arith.addf %35, %33 : vector<8x8xf32>
    %cst_13 = arith.constant 9.99999993E-9 : f32
    %37 = vector.broadcast %cst_13 : f32 to vector<8x8xf32>
    %38 = arith.addf %34, %37 : vector<8x8xf32>
    %39 = arith.mulf %36, %38 : vector<8x8xf32>
    %40 = tpu.reciprocal %39 {approx = true} : vector<8x8xf32> -> vector<8x8xf32>
    %41 = arith.mulf %33, %40 : vector<8x8xf32>
    %cst_14 = arith.constant dense<0.000000e+00> : vector<8x128xf32>
    %42 = tpu.matmul %41, %15, %cst_14 {dimension_numbers = #tpu.dot_dimension_numbers<[1], [0], [0], [1], [0, 0, 1, 1], [], []>} : vector<8x8xf32>, vector<8x128xf32>, vector<8x128xf32> -> vector<8x128xf32>
    %43 = arith.mulf %42, %31 : vector<8x128xf32>
    %44 = vector.shape_cast %43 : vector<8x128xf32> to vector<1x8x128xf32>
    %45 = vector.broadcast %44 : vector<1x8x128xf32> to vector<64x8x128xf32>
    %46 = arith.mulf %45, %2 : vector<64x8x128xf32>
    %47 = vector.shape_cast %46 : vector<64x8x128xf32> to vector<512x128xf32>
    %cst_15 = arith.constant dense<0.000000e+00> : vector<512x8xf32>
    %48 = tpu.matmul %47, %28, %cst_15 {dimension_numbers = #tpu.dot_dimension_numbers<[1], [0], [0], [1], [0, 0, 1, 1], [], []>} : vector<512x128xf32>, vector<128x8xf32>, vector<512x8xf32> -> vector<512x8xf32>
    %49 = vector.shape_cast %48 : vector<512x8xf32> to vector<64x8x8xf32>
    %cst_16 = arith.constant dense<0xFF800000> : vector<64x8xf32>
    %50 = vector.multi_reduction <maximumf>, %49, %cst_16 [2] : vector<64x8x8xf32> to vector<64x8xf32>
    %51 = vector.shape_cast %50 : vector<64x8xf32> to vector<64x8x1xf32>
    %52 = vector.broadcast %51 : vector<64x8x1xf32> to vector<64x8x8xf32>
    %53 = arith.subf %49, %52 : vector<64x8x8xf32>
    %54 = math.exp %53 : vector<64x8x8xf32>
    %cst_17 = arith.constant dense<0.000000e+00> : vector<64x8xf32>
    %55 = vector.multi_reduction <add>, %54, %cst_17 [2] : vector<64x8x8xf32> to vector<64x8xf32>
    %56 = vector.shape_cast %55 : vector<64x8xf32> to vector<64x8x1xf32>
    %57 = tpu.reciprocal %56 {approx = true} : vector<64x8x1xf32> -> vector<64x8x1xf32>
    %58 = vector.broadcast %57 : vector<64x8x1xf32> to vector<64x8x8xf32>
    %59 = arith.mulf %54, %58 : vector<64x8x8xf32>
    %60 = vector.shape_cast %59 : vector<64x8x8xf32> to vector<512x8xf32>
    %cst_18 = arith.constant dense<0.000000e+00> : vector<512x128xf32>
    %61 = tpu.matmul %60, %15, %cst_18 {dimension_numbers = #tpu.dot_dimension_numbers<[1], [0], [0], [1], [0, 0, 1, 1], [], []>} : vector<512x8xf32>, vector<8x128xf32>, vector<512x128xf32> -> vector<512x128xf32>
    %62 = vector.shape_cast %61 : vector<512x128xf32> to vector<64x8x128xf32>
    %63 = arith.mulf %62, %2 : vector<64x8x128xf32>
    %cst_19 = arith.constant dense<0.000000e+00> : vector<8x128xf32>
    %64 = vector.multi_reduction <add>, %63, %cst_19 [0] : vector<64x8x128xf32> to vector<8x128xf32>
    %65 = arith.mulf %64, %64 : vector<8x128xf32>
    %cst_20 = arith.constant dense<0.000000e+00> : vector<8x8xf32>
    %66 = tpu.matmul %65, %28, %cst_20 {dimension_numbers = #tpu.dot_dimension_numbers<[1], [0], [0], [1], [0, 0, 1, 1], [], []>} : vector<8x128xf32>, vector<128x8xf32>, vector<8x8xf32> -> vector<8x8xf32>
    %67 = math.sqrt %66 : vector<8x8xf32>
    %cst_21 = arith.constant 1.000000e+00 : f32
    %68 = vector.broadcast %cst_21 : f32 to vector<8x8xf32>
    %69 = arith.addf %68, %66 : vector<8x8xf32>
    %cst_22 = arith.constant 9.99999993E-9 : f32
    %70 = vector.broadcast %cst_22 : f32 to vector<8x8xf32>
    %71 = arith.addf %67, %70 : vector<8x8xf32>
    %72 = arith.mulf %69, %71 : vector<8x8xf32>
    %73 = tpu.reciprocal %72 {approx = true} : vector<8x8xf32> -> vector<8x8xf32>
    %74 = arith.mulf %66, %73 : vector<8x8xf32>
    %cst_23 = arith.constant dense<0.000000e+00> : vector<8x128xf32>
    %75 = tpu.matmul %74, %15, %cst_23 {dimension_numbers = #tpu.dot_dimension_numbers<[1], [0], [0], [1], [0, 0, 1, 1], [], []>} : vector<8x8xf32>, vector<8x128xf32>, vector<8x128xf32> -> vector<8x128xf32>
    %76 = arith.mulf %75, %64 : vector<8x128xf32>
    %77 = vector.shape_cast %76 : vector<8x128xf32> to vector<1x8x128xf32>
    %78 = vector.broadcast %77 : vector<1x8x128xf32> to vector<64x8x128xf32>
    %79 = arith.mulf %78, %2 : vector<64x8x128xf32>
    %80 = vector.shape_cast %79 : vector<64x8x128xf32> to vector<512x128xf32>
    %cst_24 = arith.constant dense<0.000000e+00> : vector<512x8xf32>
    %81 = tpu.matmul %80, %28, %cst_24 {dimension_numbers = #tpu.dot_dimension_numbers<[1], [0], [0], [1], [0, 0, 1, 1], [], []>} : vector<512x128xf32>, vector<128x8xf32>, vector<512x8xf32> -> vector<512x8xf32>
    %82 = vector.shape_cast %81 : vector<512x8xf32> to vector<64x8x8xf32>
    %83 = arith.addf %49, %82 : vector<64x8x8xf32>
    %cst_25 = arith.constant dense<0xFF800000> : vector<64x8xf32>
    %84 = vector.multi_reduction <maximumf>, %83, %cst_25 [2] : vector<64x8x8xf32> to vector<64x8xf32>
    %85 = vector.shape_cast %84 : vector<64x8xf32> to vector<64x8x1xf32>
    %86 = vector.broadcast %85 : vector<64x8x1xf32> to vector<64x8x8xf32>
    %87 = arith.subf %83, %86 : vector<64x8x8xf32>
    %88 = math.exp %87 : vector<64x8x8xf32>
    %cst_26 = arith.constant dense<0.000000e+00> : vector<64x8xf32>
    %89 = vector.multi_reduction <add>, %88, %cst_26 [2] : vector<64x8x8xf32> to vector<64x8xf32>
    %90 = vector.shape_cast %89 : vector<64x8xf32> to vector<64x8x1xf32>
    %91 = tpu.reciprocal %90 {approx = true} : vector<64x8x1xf32> -> vector<64x8x1xf32>
    %92 = vector.broadcast %91 : vector<64x8x1xf32> to vector<64x8x8xf32>
    %93 = arith.mulf %88, %92 : vector<64x8x8xf32>
    %94 = vector.shape_cast %93 : vector<64x8x8xf32> to vector<512x8xf32>
    %cst_27 = arith.constant dense<0.000000e+00> : vector<512x128xf32>
    %95 = tpu.matmul %94, %15, %cst_27 {dimension_numbers = #tpu.dot_dimension_numbers<[1], [0], [0], [1], [0, 0, 1, 1], [], []>} : vector<512x8xf32>, vector<8x128xf32>, vector<512x128xf32> -> vector<512x128xf32>
    %96 = vector.shape_cast %95 : vector<512x128xf32> to vector<64x8x128xf32>
    %97 = arith.mulf %96, %2 : vector<64x8x128xf32>
    %cst_28 = arith.constant dense<0.000000e+00> : vector<8x128xf32>
    %98 = vector.multi_reduction <add>, %97, %cst_28 [0] : vector<64x8x128xf32> to vector<8x128xf32>
    %99 = arith.mulf %98, %98 : vector<8x128xf32>
    %cst_29 = arith.constant dense<0.000000e+00> : vector<8x8xf32>
    %100 = tpu.matmul %99, %28, %cst_29 {dimension_numbers = #tpu.dot_dimension_numbers<[1], [0], [0], [1], [0, 0, 1, 1], [], []>} : vector<8x128xf32>, vector<128x8xf32>, vector<8x8xf32> -> vector<8x8xf32>
    %101 = math.sqrt %100 : vector<8x8xf32>
    %cst_30 = arith.constant 1.000000e+00 : f32
    %102 = vector.broadcast %cst_30 : f32 to vector<8x8xf32>
    %103 = arith.addf %102, %100 : vector<8x8xf32>
    %cst_31 = arith.constant 9.99999993E-9 : f32
    %104 = vector.broadcast %cst_31 : f32 to vector<8x8xf32>
    %105 = arith.addf %101, %104 : vector<8x8xf32>
    %106 = arith.mulf %103, %105 : vector<8x8xf32>
    %107 = tpu.reciprocal %106 {approx = true} : vector<8x8xf32> -> vector<8x8xf32>
    %108 = arith.mulf %100, %107 : vector<8x8xf32>
    %cst_32 = arith.constant dense<0.000000e+00> : vector<8x128xf32>
    %109 = tpu.matmul %108, %15, %cst_32 {dimension_numbers = #tpu.dot_dimension_numbers<[1], [0], [0], [1], [0, 0, 1, 1], [], []>} : vector<8x8xf32>, vector<8x128xf32>, vector<8x128xf32> -> vector<8x128xf32>
    %110 = arith.mulf %109, %98 : vector<8x128xf32>
    %c0_33 = arith.constant 0 : index
    %c0_34 = arith.constant 0 : index
    %111 = vector.load %arg3[%c0_33, %c0_34] : memref<8x128xf32, #tpu.memory_space<vmem>>, vector<8x128xf32>
    tpu.vector_store %arg3[%c0_33, %c0_34], %110 {strides = array<i32>} : memref<8x128xf32, #tpu.memory_space<vmem>>, vector<8x128xf32>,
    return
  }
  func.func @transform_0(%arg0: i32) -> (i32, i32, i32) {
    %c0_i32 = arith.constant 0 : i32
    %c0_i32_0 = arith.constant 0 : i32
    %c0_i32_1 = arith.constant 0 : i32
    return %c0_i32, %arg0, %c0_i32_0 : i32, i32, i32
  }
  func.func @transform_1(%arg0: i32) -> (i32, i32, i32) {
    %c0_i32 = arith.constant 0 : i32
    %c0_i32_0 = arith.constant 0 : i32
    %c0_i32_1 = arith.constant 0 : i32
    %c0_i32_2 = arith.constant 0 : i32
    return %c0_i32, %c0_i32_0, %c0_i32_1 : i32, i32, i32
  }
  func.func @transform_2(%arg0: i32) -> (i32, i32) {
    %c0_i32 = arith.constant 0 : i32
    %c0_i32_0 = arith.constant 0 : i32
    return %arg0, %c0_i32 : i32, i32
  }
}

</mosaic_0001>

<bundles_post_ra>
// kernel: tpu_custom_call.1
= control target key start
LH: loop header
LB: loop body
LE: loop exit
PB: predicated region body
PF: predicated region fallthrough
CT: control target
= control target key end

     0   :  { %7 = vsyncpa [#allocation4], 0  ;;  %s9781_s0 = inlined_call_operand.vmem [shape: f32[64,16,8], index: 0, kind: input, shape index: {}]   ;;  %s9782_s1 = inlined_call_operand.vmem [shape: f32[64,8,128], index: 1, kind: input, shape index: {}]   ;;  %s9783_s2 = inlined_call_operand.hbm [shape: f32[16,128], index: 2, kind: output, shape index: {}]  }
   0x1   :  { %9 = vsyncpa [#allocation4 + $0x1], 0  ;;  %s6499_s9 = smov 0   ;;  %s6501_s10 = smov 0  }
   0x2   :  { %s6503_s11 = smov 0   ;;  %s6505_s12 = smov 0  }
   0x3 LB: > { %s5545_s13 = sadd.s32 4294967295, %s6481_s12   ;;  %s5546_s14 = sadd.s32 4294967294, %s6481_s12   ;;  %s6481_s12 = sphi %s6505_s12, %s10770_s12   ;;  %s6477_s11 = sphi %s6503_s11, %s10769_s11   ;;  %s6473_s10 = sphi %s6501_s10, %s10768_s10   ;;  %s6469_s9 = sphi %s6499_s9, %s10767_s9  }
   0x4   : > { %s6522_s15 = sadd.s32 1, %s6481_s12   ;;  %s22_s16 = sadd.s32 1, %s6477_s11 }
   0x5   : > { %s19_s17 = ssub.s32 %s6481_s12, %s6522_s15  ;;  %p29_p0 = scmp.ne.s32.totalorder %s6477_s11, %s6473_s10 }
   0x6   : > { %p20_p1 = scmp.eq.s32.totalorder %s19_s17, 0  ;;  %p30_p2 = scmp.eq.s32.totalorder %s6481_s12, 0 }
   0x7   : > { %p80_p3 = scmp.eq.s32.totalorder %s5545_s13, 1  ;;  %p85_p4 = scmp.ne.s32.totalorder %s6473_s10, %s6469_s9 }
   0x8   : > { %s6535_s18 = scalar_select %p20_p1, %s6477_s11, %s22_s16  }
   0x9   : > { %p31_p5 = por %p30_p2, %p29_p0  ;;  %p6537_p6 = por %p80_p3, %p29_p0 }
   0xa   : > { %p86_p7 = scmp.eq.s32.totalorder %s5546_s14, 1  ;;  %p5548_p9 = scmp.ge.s32.totalorder %s6481_s12, 2 }
   0xc   : > { %p6541_p8 = por %p86_p7, %p85_p4  ;;  %105 = sbr.rel (%p5548_p9) target bundleno = 85 (0x55), region = 20 }
  0x11   : > { %108 = sbr.rel (!%p31_p5) target bundleno = 85 (0x55), region = 24  ;;  %s110_s21 = sand.u32 (%p31_p5), 1, %s6477_s11  }
  0x12   : > { %s5550_s22 = sshll.u32 (%p31_p5), %s6481_s12, 3  ;;  %s5549_s23 = sshll.u32 (%p31_p5), %s110_s21, 9 }
  0x13   : > { %s6553_s26 = scalar_lea.vmem (%p31_p5), %s9781_s0, %s5550_s22  ;;  %s6558_s27 = scalar_lea.vmem (%p31_p5), [#allocation2], %s5549_s23 }
  0x14   : > { %v269_v0 = vld [vmem:[%s6553_s26] sm:$0xff] (%p31_p5)  ;;  %v271_v1 = vld [vmem:[%s6553_s26 + $0x10] sm:$0xff] (%p31_p5) }
  0x15   : > { %v273_v2 = vld [vmem:[%s6553_s26 + $0x20] sm:$0xff] (%p31_p5)  ;;  %270 = vst [vmem:[%s6558_s27] sm:$0xff] (%p31_p5), %v269_v0  ;;  %v275_v3 = vld [vmem:[%s6553_s26 + $0x30] sm:$0xff] (%p31_p5) }
  0x16   : > { %272 = vst [vmem:[%s6558_s27 + $0x8] sm:$0xff] %v271_v1  ;;  %v277_v4 = vld [vmem:[%s6553_s26 + $0x40] sm:$0xff]  ;;  %v279_v5 = vld [vmem:[%s6553_s26 + $0x50] sm:$0xff] }
  0x17   : > { %274 = vst [vmem:[%s6558_s27 + $0x10] sm:$0xff] %v273_v2  ;;  %v281_v6 = vld [vmem:[%s6553_s26 + $0x60] sm:$0xff]  ;;  %v283_v7 = vld [vmem:[%s6553_s26 + $0x70] sm:$0xff] }
  0x18   : > { %276 = vst [vmem:[%s6558_s27 + $0x18] sm:$0xff] %v275_v3  ;;  %v285_v8 = vld [vmem:[%s6553_s26 + $0x80] sm:$0xff]  ;;  %v287_v9 = vld [vmem:[%s6553_s26 + $0x90] sm:$0xff] }
  0x19   : > { %278 = vst [vmem:[%s6558_s27 + $0x20] sm:$0xff] %v277_v4  ;;  %v289_v10 = vld [vmem:[%s6553_s26 + $0xa0] sm:$0xff]  ;;  %v291_v11 = vld [vmem:[%s6553_s26 + $0xb0] sm:$0xff] }
  0x1a   : > { %280 = vst [vmem:[%s6558_s27 + $0x28] sm:$0xff] %v279_v5  ;;  %v293_v12 = vld [vmem:[%s6553_s26 + $0xc0] sm:$0xff]  ;;  %v295_v13 = vld [vmem:[%s6553_s26 + $0xd0] sm:$0xff] }
  0x1b   : > { %282 = vst [vmem:[%s6558_s27 + $0x30] sm:$0xff] %v281_v6  ;;  %v297_v14 = vld [vmem:[%s6553_s26 + $0xe0] sm:$0xff]  ;;  %v299_v15 = vld [vmem:[%s6553_s26 + $0xf0] sm:$0xff] }
  0x1c   : > { %284 = vst [vmem:[%s6558_s27 + $0x38] sm:$0xff] %v283_v7  ;;  %v301_v16 = vld [vmem:[%s6553_s26 + $0x100] sm:$0xff]  ;;  %v303_v17 = vld [vmem:[%s6553_s26 + $0x110] sm:$0xff] }
  0x1d   : > { %286 = vst [vmem:[%s6558_s27 + $0x40] sm:$0xff] %v285_v8  ;;  %v305_v18 = vld [vmem:[%s6553_s26 + $0x120] sm:$0xff]  ;;  %v307_v19 = vld [vmem:[%s6553_s26 + $0x130] sm:$0xff] }
  0x1e   : > { %288 = vst [vmem:[%s6558_s27 + $0x48] sm:$0xff] %v287_v9  ;;  %v309_v20 = vld [vmem:[%s6553_s26 + $0x140] sm:$0xff]  ;;  %v311_v21 = vld [vmem:[%s6553_s26 + $0x150] sm:$0xff] }
  0x1f   : > { %290 = vst [vmem:[%s6558_s27 + $0x50] sm:$0xff] %v289_v10  ;;  %v313_v22 = vld [vmem:[%s6553_s26 + $0x160] sm:$0xff]  ;;  %v315_v23 = vld [vmem:[%s6553_s26 + $0x170] sm:$0xff] }
  0x20   : > { %292 = vst [vmem:[%s6558_s27 + $0x58] sm:$0xff] %v291_v11  ;;  %v317_v24 = vld [vmem:[%s6553_s26 + $0x180] sm:$0xff]  ;;  %v319_v25 = vld [vmem:[%s6553_s26 + $0x190] sm:$0xff] }
  0x21   : > { %294 = vst [vmem:[%s6558_s27 + $0x60] sm:$0xff] %v293_v12  ;;  %v321_v26 = vld [vmem:[%s6553_s26 + $0x1a0] sm:$0xff]  ;;  %v323_v27 = vld [vmem:[%s6553_s26 + $0x1b0] sm:$0xff] }
  0x22   : > { %296 = vst [vmem:[%s6558_s27 + $0x68] sm:$0xff] %v295_v13  ;;  %v325_v28 = vld [vmem:[%s6553_s26 + $0x1c0] sm:$0xff]  ;;  %v327_v29 = vld [vmem:[%s6553_s26 + $0x1d0] sm:$0xff] }
  0x23   : > { %298 = vst [vmem:[%s6558_s27 + $0x70] sm:$0xff] %v297_v14  ;;  %v329_v30 = vld [vmem:[%s6553_s26 + $0x1e0] sm:$0xff]  ;;  %v331_v31 = vld [vmem:[%s6553_s26 + $0x1f0] sm:$0xff] }
  0x24   : > { %300 = vst [vmem:[%s6558_s27 + $0x78] sm:$0xff] %v299_v15  ;;  %v333_v32 = vld [vmem:[%s6553_s26 + $0x200] sm:$0xff]  ;;  %v335_v33 = vld [vmem:[%s6553_s26 + $0x210] sm:$0xff] }
  0x25   : > { %302 = vst [vmem:[%s6558_s27 + $0x80] sm:$0xff] %v301_v16  ;;  %v337_v34 = vld [vmem:[%s6553_s26 + $0x220] sm:$0xff]  ;;  %v339_v35 = vld [vmem:[%s6553_s26 + $0x230] sm:$0xff] }
  0x26   : > { %304 = vst [vmem:[%s6558_s27 + $0x88] sm:$0xff] %v303_v17  ;;  %v341_v36 = vld [vmem:[%s6553_s26 + $0x240] sm:$0xff]  ;;  %v343_v37 = vld [vmem:[%s6553_s26 + $0x250] sm:$0xff] }
  0x27   : > { %306 = vst [vmem:[%s6558_s27 + $0x90] sm:$0xff] %v305_v18  ;;  %v345_v38 = vld [vmem:[%s6553_s26 + $0x260] sm:$0xff]  ;;  %v347_v39 = vld [vmem:[%s6553_s26 + $0x270] sm:$0xff] }
  0x28   : > { %308 = vst [vmem:[%s6558_s27 + $0x98] sm:$0xff] %v307_v19  ;;  %v349_v40 = vld [vmem:[%s6553_s26 + $0x280] sm:$0xff]  ;;  %v351_v41 = vld [vmem:[%s6553_s26 + $0x290] sm:$0xff] }
  0x29   : > { %310 = vst [vmem:[%s6558_s27 + $0xa0] sm:$0xff] %v309_v20  ;;  %v353_v42 = vld [vmem:[%s6553_s26 + $0x2a0] sm:$0xff]  ;;  %v355_v43 = vld [vmem:[%s6553_s26 + $0x2b0] sm:$0xff] }
  0x2a   : > { %312 = vst [vmem:[%s6558_s27 + $0xa8] sm:$0xff] %v311_v21  ;;  %v357_v44 = vld [vmem:[%s6553_s26 + $0x2c0] sm:$0xff]  ;;  %v359_v45 = vld [vmem:[%s6553_s26 + $0x2d0] sm:$0xff] }
  0x2b   : > { %314 = vst [vmem:[%s6558_s27 + $0xb0] sm:$0xff] %v313_v22  ;;  %v361_v46 = vld [vmem:[%s6553_s26 + $0x2e0] sm:$0xff]  ;;  %v363_v47 = vld [vmem:[%s6553_s26 + $0x2f0] sm:$0xff] }
  0x2c   : > { %316 = vst [vmem:[%s6558_s27 + $0xb8] sm:$0xff] %v315_v23  ;;  %v365_v48 = vld [vmem:[%s6553_s26 + $0x300] sm:$0xff]  ;;  %v367_v49 = vld [vmem:[%s6553_s26 + $0x310] sm:$0xff] }
  0x2d   : > { %318 = vst [vmem:[%s6558_s27 + $0xc0] sm:$0xff] %v317_v24  ;;  %v369_v50 = vld [vmem:[%s6553_s26 + $0x320] sm:$0xff]  ;;  %v371_v51 = vld [vmem:[%s6553_s26 + $0x330] sm:$0xff] }
  0x2e   : > { %320 = vst [vmem:[%s6558_s27 + $0xc8] sm:$0xff] %v319_v25  ;;  %v373_v52 = vld [vmem:[%s6553_s26 + $0x340] sm:$0xff]  ;;  %v375_v53 = vld [vmem:[%s6553_s26 + $0x350] sm:$0xff] }
  0x2f   : > { %322 = vst [vmem:[%s6558_s27 + $0xd0] sm:$0xff] %v321_v26  ;;  %v377_v54 = vld [vmem:[%s6553_s26 + $0x360] sm:$0xff]  ;;  %v379_v55 = vld [vmem:[%s6553_s26 + $0x370] sm:$0xff] }
  0x30   : > { %324 = vst [vmem:[%s6558_s27 + $0xd8] sm:$0xff] %v323_v27  ;;  %v381_v56 = vld [vmem:[%s6553_s26 + $0x380] sm:$0xff]  ;;  %v383_v57 = vld [vmem:[%s6553_s26 + $0x390] sm:$0xff] }
  0x31   : > { %326 = vst [vmem:[%s6558_s27 + $0xe0] sm:$0xff] %v325_v28  ;;  %v385_v58 = vld [vmem:[%s6553_s26 + $0x3a0] sm:$0xff]  ;;  %v387_v59 = vld [vmem:[%s6553_s26 + $0x3b0] sm:$0xff] }
  0x32   : > { %328 = vst [vmem:[%s6558_s27 + $0xe8] sm:$0xff] %v327_v29  ;;  %v389_v60 = vld [vmem:[%s6553_s26 + $0x3c0] sm:$0xff]  ;;  %v391_v61 = vld [vmem:[%s6553_s26 + $0x3d0] sm:$0xff] }
  0x33   : > { %330 = vst [vmem:[%s6558_s27 + $0xf0] sm:$0xff] %v329_v30  ;;  %v393_v62 = vld [vmem:[%s6553_s26 + $0x3e0] sm:$0xff]  ;;  %v395_v63 = vld [vmem:[%s6553_s26 + $0x3f0] sm:$0xff] }
  0x34   : > { %332 = vst [vmem:[%s6558_s27 + $0xf8] sm:$0xff] %v331_v31 }
  0x35   : > { %334 = vst [vmem:[%s6558_s27 + $0x100] sm:$0xff] %v333_v32 }
  0x36   : > { %336 = vst [vmem:[%s6558_s27 + $0x108] sm:$0xff] %v335_v33 }
  0x37   : > { %338 = vst [vmem:[%s6558_s27 + $0x110] sm:$0xff] %v337_v34 }
  0x38   : > { %340 = vst [vmem:[%s6558_s27 + $0x118] sm:$0xff] %v339_v35 }
  0x39   : > { %342 = vst [vmem:[%s6558_s27 + $0x120] sm:$0xff] %v341_v36 }
  0x3a   : > { %344 = vst [vmem:[%s6558_s27 + $0x128] sm:$0xff] %v343_v37 }
  0x3b   : > { %346 = vst [vmem:[%s6558_s27 + $0x130] sm:$0xff] %v345_v38 }
  0x3c   : > { %348 = vst [vmem:[%s6558_s27 + $0x138] sm:$0xff] %v347_v39 }
  0x3d   : > { %350 = vst [vmem:[%s6558_s27 + $0x140] sm:$0xff] %v349_v40 }
  0x3e   : > { %352 = vst [vmem:[%s6558_s27 + $0x148] sm:$0xff] %v351_v41 }
  0x3f   : > { %354 = vst [vmem:[%s6558_s27 + $0x150] sm:$0xff] %v353_v42 }
  0x40   : > { %356 = vst [vmem:[%s6558_s27 + $0x158] sm:$0xff] %v355_v43 }
  0x41   : > { %358 = vst [vmem:[%s6558_s27 + $0x160] sm:$0xff] %v357_v44 }
  0x42   : > { %360 = vst [vmem:[%s6558_s27 + $0x168] sm:$0xff] %v359_v45 }
  0x43   : > { %362 = vst [vmem:[%s6558_s27 + $0x170] sm:$0xff] %v361_v46 }
  0x44   : > { %364 = vst [vmem:[%s6558_s27 + $0x178] sm:$0xff] %v363_v47 }
  0x45   : > { %366 = vst [vmem:[%s6558_s27 + $0x180] sm:$0xff] %v365_v48 }
  0x46   : > { %368 = vst [vmem:[%s6558_s27 + $0x188] sm:$0xff] %v367_v49 }
  0x47   : > { %370 = vst [vmem:[%s6558_s27 + $0x190] sm:$0xff] %v369_v50 }
  0x48   : > { %372 = vst [vmem:[%s6558_s27 + $0x198] sm:$0xff] %v371_v51 }
  0x49   : > { %374 = vst [vmem:[%s6558_s27 + $0x1a0] sm:$0xff] %v373_v52 }
  0x4a   : > { %376 = vst [vmem:[%s6558_s27 + $0x1a8] sm:$0xff] %v375_v53 }
  0x4b   : > { %378 = vst [vmem:[%s6558_s27 + $0x1b0] sm:$0xff] %v377_v54 }
  0x4c   : > { %380 = vst [vmem:[%s6558_s27 + $0x1b8] sm:$0xff] %v379_v55 }
  0x4d   : > { %382 = vst [vmem:[%s6558_s27 + $0x1c0] sm:$0xff] %v381_v56 }
  0x4e   : > { %384 = vst [vmem:[%s6558_s27 + $0x1c8] sm:$0xff] %v383_v57 }
  0x4f   : > { %386 = vst [vmem:[%s6558_s27 + $0x1d0] sm:$0xff] %v385_v58 }
  0x50   : > { %388 = vst [vmem:[%s6558_s27 + $0x1d8] sm:$0xff] %v387_v59 }
  0x51   : > { %390 = vst [vmem:[%s6558_s27 + $0x1e0] sm:$0xff] %v389_v60 }
  0x52   : > { %392 = vst [vmem:[%s6558_s27 + $0x1e8] sm:$0xff] %v391_v61 }
  0x53   : > { %394 = vst [vmem:[%s6558_s27 + $0x1f0] sm:$0xff] %v393_v62 }
  0x54   : > { %396 = vst [vmem:[%s6558_s27 + $0x1f8] sm:$0xff] %v395_v63 }
  0x55 PF: > { %p5551_p10 = scmp.ge.s32.totalorder %s6481_s12, 1  ;;  %p401_p11 = scmp.lt.s32.totalorder %s6481_s12, 3 }
  0x57   : > { %p402_p12 = pnand %p5551_p10, %p401_p11 }
  0x59   : > { %405 = sbr.rel (%p402_p12) target bundleno = 4309 (0x10d5), region = 62 }
  0x5e   : > { %v495_v0 = vld [vmem:[%s9782_s1 + $0x10] sm:$0xff]  ;;  %s6691_s30 = sand.u32 1, %s6473_s10   ;;  %v496_v1 = vld [vmem:[%s9782_s1 + $0x18] sm:$0xff]  ;;  %v493_v2 = vld [vmem:[%s9782_s1] sm:$0xff]  ;;  %vm9798_vm0 = vcmask 64512   ;;  %s5852_s17 = sshll.u32 %s5545_s13, 3 }
  0x5f   : > { %622 = vmatpush.msra.mxu2 %v495_v0  ;;  %s5552_s7 = sshll.u32 %s6691_s30, 9  ;;  %576 = vmatpush.msra.mxu0 %v493_v2  ;;  %v494_v3 = vld [vmem:[%s9782_s1 + $0x8] sm:$0xff]  ;;  %v497_v4 = vld [vmem:[%s9782_s1 + $0x20] sm:$0xff]  ;;  %v499_v5 = vld [vmem:[%s9782_s1 + $0x30] sm:$0xff]  ;;  %s5476_s23 = scalar_lea.hbm %s9783_s2, %s5852_s17 }
  0x60   : > { %599 = vmatpush.msra.mxu1 %v494_v3  ;;  %v498_v6 = vld [vmem:[%s9782_s1 + $0x28] sm:$0xff]  ;;  %v500_v7 = vld [vmem:[%s9782_s1 + $0x38] sm:$0xff]  ;;  %s6715_s27 = scalar_lea.vmem [#allocation2], %s5552_s7  ;;  %v501_v12 = vld [vmem:[%s9782_s1 + $0x40] sm:$0xff]  ;;  %s5480_s26 = sshll.u32 %s5476_s23, 4  ;;  %s5481_s26 = int_to_ptr.hbm [resolvable:$true] %s5480_s26 }
  0x61   : > { %645 = vmatpush.msrb.mxu2 %v496_v1  ;;  %v431_v8 = vld [vmem:[%s6715_s27 + $0x10] sm:$0xff]  ;;  %v429_v9 = vld [vmem:[%s6715_s27] sm:$0xff]  ;;  %v430_v10 = vld [vmem:[%s6715_s27 + $0x8] sm:$0xff]  ;;  %668 = vmatpush.msrb.mxu0 %v497_v4  ;;  %s5466_s28 = scalar_lea.sflag [#allocation4], %s6691_s30  ;;  %s6433_s29 = sshra.s32 %s5481_s26, 4  ;;  %s6434_s29 = int_to_ptr.hbm [resolvable:$true] %s6433_s29 }
  0x62   : > { %691 = vmatpush.msrb.mxu1 %v498_v6  ;;  %5556 = vmatmul.msk.f32.vlgmr.msra.gmra.mxu2 %vm9798_vm0, %v431_v8  ;;  %v436_v11 = vld [vmem:[%s6715_s27 + $0x38] sm:$0xff]  ;;  %v502_v14 = vld [vmem:[%s9782_s1 + $0x48] sm:$0xff]  ;;  %v433_v17 = vld [vmem:[%s6715_s27 + $0x20] sm:$0xff]  ;;  %s6435_s3 = scalar_lea.hbm %s6434_s29, 8  ;;  %s6439_s5 = scalar_lea.hbm %s9783_s2, 16 }
  0x63   : > { %5554 = vmatmul.msk.f32.vlgmr.msra.gmra.mxu0 %vm9798_vm0, %v429_v9  ;;  %5555 = vmatmul.msk.f32.vlgmr.msra.gmra.mxu1 %vm9798_vm0, %v430_v10  ;;  %v504_v13 = vld [vmem:[%s9782_s1 + $0x58] sm:$0xff]  ;;  %v503_v18 = vld [vmem:[%s9782_s1 + $0x50] sm:$0xff]  ;;  %v434_v19 = vld [vmem:[%s6715_s27 + $0x28] sm:$0xff]  ;;  %p6436_p13 = scmp.ne.s32.totalorder %s6434_s29, %s6435_s3  ;;  %p6440_p2 = scmp.lt.s32.totalorder %s6434_s29, %s9783_s2 }
  0x64   : > { %714 = vmatpush.msra.mxu2 %v499_v5  ;;  %737 = vmatpush.msra.mxu3 %v500_v7  ;;  %v508_v15 = vld [vmem:[%s9782_s1 + $0x78] sm:$0xff]  ;;  %v505_v20 = vld [vmem:[%s9782_s1 + $0x60] sm:$0xff]  ;;  %v506_v21 = vld [vmem:[%s9782_s1 + $0x68] sm:$0xff]  ;;  %p6441_p3 = scmp.lt.s32.totalorder %s6439_s5, %s6435_s3 }
  0x65   : > { %760 = vmatpush.msra.mxu0 %v501_v12  ;;  %5561 = vmatmul.msk.f32.vlgmr.msra.gmra.mxu3 %vm9798_vm0, %v436_v11  ;;  %v432_v16 = vld [vmem:[%s6715_s27 + $0x18] sm:$0xff]  ;;  %v435_v24 = vld [vmem:[%s6715_s27 + $0x30] sm:$0xff]  ;;  %v437_v25 = vld [vmem:[%s6715_s27 + $0x40] sm:$0xff]  ;;  %p6437_p0 = pnand %p6436_p13, %p6537_p6 }
  0x66   : > { %783 = vmatpush.msra.mxu1 %v502_v14  ;;  %829 = vmatpush.msrb.mxu3 %v504_v13  ;;  %v440_v22 = vld [vmem:[%s6715_s27 + $0x58] sm:$0xff]  ;;  %v507_v26 = vld [vmem:[%s9782_s1 + $0x70] sm:$0xff]  ;;  %v438_v27 = vld [vmem:[%s6715_s27 + $0x48] sm:$0xff]  ;;  %p6442_p4 = por %p6441_p3, %p6440_p2 }
  0x67   : > { %v512_v23 = vld [vmem:[%s9782_s1 + $0x98] sm:$0xff]  ;;  %v509_v28 = vld [vmem:[%s9782_s1 + $0x80] sm:$0xff]  ;;  %v510_v29 = vld [vmem:[%s9782_s1 + $0x88] sm:$0xff]  ;;  %p6438_p1 = pneg %p6437_p0 }
  0x68   : > { %921 = vmatpush.msra.mxu3 %v508_v15  ;;  %v444_v30 = vld [vmem:[%s6715_s27 + $0x78] sm:$0xff]  ;;  %v439_v32 = vld [vmem:[%s6715_s27 + $0x50] sm:$0xff]  ;;  %v441_v33 = vld [vmem:[%s6715_s27 + $0x60] sm:$0xff] }
  0x69   : > { %v516_v31 = vld [vmem:[%s9782_s1 + $0xb8] sm:$0xff]  ;;  %v511_v34 = vld [vmem:[%s9782_s1 + $0x90] sm:$0xff]  ;;  %v442_v35 = vld [vmem:[%s6715_s27 + $0x68] sm:$0xff]  ;;  %p6443_p5 = pnand %p6442_p4, %p6438_p1 }
  0x6a   : > { %5557 = vmatmul.msk.f32.vlgmr.msrb.gmra.mxu2 %vm9798_vm0, %v432_v16  ;;  %v513_v36 = vld [vmem:[%s9782_s1 + $0xa0] sm:$0xff]  ;;  %v514_v37 = vld [vmem:[%s9782_s1 + $0xa8] sm:$0xff]  ;;  %v448_v38 = vld [vmem:[%s6715_s27 + $0x98] sm:$0xff] }
  0x6b   : > { %5558 = vmatmul.msk.f32.vlgmr.msrb.gmra.mxu0 %vm9798_vm0, %v433_v17  ;;  %806 = vmatpush.msrb.mxu2 %v503_v18  ;;  %v520_v39 = vld [vmem:[%s9782_s1 + $0xd8] sm:$0xff]  ;;  %v443_v40 = vld [vmem:[%s6715_s27 + $0x70] sm:$0xff]  ;;  %v445_v41 = vld [vmem:[%s6715_s27 + $0x80] sm:$0xff] }
  0x6c   : > { %5559 = vmatmul.msk.f32.vlgmr.msrb.gmra.mxu1 %vm9798_vm0, %v434_v19  ;;  %852 = vmatpush.msrb.mxu0 %v505_v20  ;;  %v515_v42 = vld [vmem:[%s9782_s1 + $0xb0] sm:$0xff]  ;;  %v446_v43 = vld [vmem:[%s6715_s27 + $0x88] sm:$0xff]  ;;  %v517_v44 = vld [vmem:[%s9782_s1 + $0xc0] sm:$0xff] }
  0x6d   : > { %875 = vmatpush.msrb.mxu1 %v506_v21  ;;  %5565 = vmatmul.msk.f32.vlgmr.msrb.gmra.mxu3 %vm9798_vm0, %v440_v22  ;;  %v518_v45 = vld [vmem:[%s9782_s1 + $0xc8] sm:$0xff]  ;;  %v452_v46 = vld [vmem:[%s6715_s27 + $0xb8] sm:$0xff]  ;;  %v447_v48 = vld [vmem:[%s6715_s27 + $0x90] sm:$0xff] }
  0x6e   : > { %1013 = vmatpush.msrb.mxu3 %v512_v23  ;;  %v524_v47 = vld [vmem:[%s9782_s1 + $0xf8] sm:$0xff]  ;;  %v449_v49 = vld [vmem:[%s6715_s27 + $0xa0] sm:$0xff]  ;;  %v519_v50 = vld [vmem:[%s9782_s1 + $0xd0] sm:$0xff] }
  0x6f   : > { %v450_v51 = vld [vmem:[%s6715_s27 + $0xa8] sm:$0xff]  ;;  %v521_v52 = vld [vmem:[%s9782_s1 + $0xe0] sm:$0xff]  ;;  %v456_v54 = vld [vmem:[%s6715_s27 + $0xd8] sm:$0xff] }
  0x70   : > { %v522_v53 = vld [vmem:[%s9782_s1 + $0xe8] sm:$0xff]  ;;  %v528_v55 = vld [vmem:[%s9782_s1 + $0x118] sm:$0xff]  ;;  %v451_v56 = vld [vmem:[%s6715_s27 + $0xb0] sm:$0xff] }
  0x71   : > { %v453_v57 = vld [vmem:[%s6715_s27 + $0xc0] sm:$0xff]  ;;  %v523_v58 = vld [vmem:[%s9782_s1 + $0xf0] sm:$0xff]  ;;  %v454_v59 = vld [vmem:[%s6715_s27 + $0xc8] sm:$0xff] }
  0x72   : > { %5560 = vmatmul.msk.f32.vlgmr.msra.gmra.mxu2 %vm9798_vm0, %v435_v24  ;;  %v525_v60 = vld [vmem:[%s9782_s1 + $0x100] sm:$0xff]  ;;  %v526_v61 = vld [vmem:[%s9782_s1 + $0x108] sm:$0xff]  ;;  %v460_v62 = vld [vmem:[%s6715_s27 + $0xf8] sm:$0xff] }
  0x73   : > { %5562 = vmatmul.msk.f32.vlgmr.msra.gmra.mxu0 %vm9798_vm0, %v437_v25  ;;  %898 = vmatpush.msra.mxu2 %v507_v26  ;;  %v532_v63 = vld [vmem:[%s9782_s1 + $0x138] sm:$0xff]  ;;  %v455_v0 = vld [vmem:[%s6715_s27 + $0xd0] sm:$0xff]  ;;  %v457_v1 = vld [vmem:[%s6715_s27 + $0xe0] sm:$0xff] }
  0x74   : > { %5563 = vmatmul.msk.f32.vlgmr.msra.gmra.mxu1 %vm9798_vm0, %v438_v27  ;;  %944 = vmatpush.msra.mxu0 %v509_v28  ;;  %v527_v2 = vld [vmem:[%s9782_s1 + $0x110] sm:$0xff]  ;;  %v458_v3 = vld [vmem:[%s6715_s27 + $0xe8] sm:$0xff]  ;;  %v529_v4 = vld [vmem:[%s9782_s1 + $0x120] sm:$0xff] }
  0x75   : > { %967 = vmatpush.msra.mxu1 %v510_v29  ;;  %5569 = vmatmul.msk.f32.vlgmr.msra.gmra.mxu3 %vm9798_vm0, %v444_v30  ;;  %v530_v5 = vld [vmem:[%s9782_s1 + $0x128] sm:$0xff]  ;;  %v464_v6 = vld [vmem:[%s6715_s27 + $0x118] sm:$0xff]  ;;  %v459_v8 = vld [vmem:[%s6715_s27 + $0xf0] sm:$0xff] }
  0x76   : > { %1105 = vmatpush.msra.mxu3 %v516_v31  ;;  %v536_v7 = vld [vmem:[%s9782_s1 + $0x158] sm:$0xff]  ;;  %v461_v9 = vld [vmem:[%s6715_s27 + $0x100] sm:$0xff]  ;;  %v531_v10 = vld [vmem:[%s9782_s1 + $0x130] sm:$0xff] }
  0x77   : > { %v462_v11 = vld [vmem:[%s6715_s27 + $0x108] sm:$0xff]  ;;  %v533_v12 = vld [vmem:[%s9782_s1 + $0x140] sm:$0xff]  ;;  %v468_v14 = vld [vmem:[%s6715_s27 + $0x138] sm:$0xff] }
  0x78   : > { %v534_v13 = vld [vmem:[%s9782_s1 + $0x148] sm:$0xff]  ;;  %v540_v15 = vld [vmem:[%s9782_s1 + $0x178] sm:$0xff]  ;;  %v463_v16 = vld [vmem:[%s6715_s27 + $0x110] sm:$0xff] }
  0x79   : > { %v465_v17 = vld [vmem:[%s6715_s27 + $0x120] sm:$0xff]  ;;  %v535_v18 = vld [vmem:[%s9782_s1 + $0x150] sm:$0xff]  ;;  %v466_v19 = vld [vmem:[%s6715_s27 + $0x128] sm:$0xff] }
  0x7a   : > { %5564 = vmatmul.msk.f32.vlgmr.msrb.gmra.mxu2 %vm9798_vm0, %v439_v32  ;;  %v537_v20 = vld [vmem:[%s9782_s1 + $0x160] sm:$0xff]  ;;  %v538_v21 = vld [vmem:[%s9782_s1 + $0x168] sm:$0xff]  ;;  %v472_v22 = vld [vmem:[%s6715_s27 + $0x158] sm:$0xff] }
  0x7b   : > { %5566 = vmatmul.msk.f32.vlgmr.msrb.gmra.mxu0 %vm9798_vm0, %v441_v33  ;;  %990 = vmatpush.msrb.mxu2 %v511_v34  ;;  %v544_v23 = vld [vmem:[%s9782_s1 + $0x198] sm:$0xff]  ;;  %v467_v24 = vld [vmem:[%s6715_s27 + $0x130] sm:$0xff]  ;;  %v469_v25 = vld [vmem:[%s6715_s27 + $0x140] sm:$0xff] }
  0x7c   : > { %5567 = vmatmul.msk.f32.vlgmr.msrb.gmra.mxu1 %vm9798_vm0, %v442_v35  ;;  %1036 = vmatpush.msrb.mxu0 %v513_v36  ;;  %v539_v26 = vld [vmem:[%s9782_s1 + $0x170] sm:$0xff]  ;;  %v470_v27 = vld [vmem:[%s6715_s27 + $0x148] sm:$0xff]  ;;  %v541_v28 = vld [vmem:[%s9782_s1 + $0x180] sm:$0xff] }
  0x7d   : > { %1059 = vmatpush.msrb.mxu1 %v514_v37  ;;  %5573 = vmatmul.msk.f32.vlgmr.msrb.gmra.mxu3 %vm9798_vm0, %v448_v38  ;;  %v542_v29 = vld [vmem:[%s9782_s1 + $0x188] sm:$0xff]  ;;  %v476_v30 = vld [vmem:[%s6715_s27 + $0x178] sm:$0xff]  ;;  %v471_v32 = vld [vmem:[%s6715_s27 + $0x150] sm:$0xff] }
  0x7e   : > { %1197 = vmatpush.msrb.mxu3 %v520_v39  ;;  %v548_v31 = vld [vmem:[%s9782_s1 + $0x1b8] sm:$0xff]  ;;  %v473_v33 = vld [vmem:[%s6715_s27 + $0x160] sm:$0xff]  ;;  %v543_v34 = vld [vmem:[%s9782_s1 + $0x190] sm:$0xff] }
  0x7f   : > { %v474_v35 = vld [vmem:[%s6715_s27 + $0x168] sm:$0xff]  ;;  %v545_v36 = vld [vmem:[%s9782_s1 + $0x1a0] sm:$0xff]  ;;  %v480_v38 = vld [vmem:[%s6715_s27 + $0x198] sm:$0xff] }
  0x80   : > { %v546_v37 = vld [vmem:[%s9782_s1 + $0x1a8] sm:$0xff]  ;;  %v552_v39 = vld [vmem:[%s9782_s1 + $0x1d8] sm:$0xff] }
  0x82   : > { %5568 = vmatmul.msk.f32.vlgmr.msra.gmra.mxu2 %vm9798_vm0, %v443_v40  ;;  %v475_v40 = vld [vmem:[%s6715_s27 + $0x170] sm:$0xff] }
  0x83   : > { %5570 = vmatmul.msk.f32.vlgmr.msra.gmra.mxu0 %vm9798_vm0, %v445_v41  ;;  %1082 = vmatpush.msra.mxu2 %v515_v42  ;;  %v477_v41 = vld [vmem:[%s6715_s27 + $0x180] sm:$0xff]  ;;  %v547_v42 = vld [vmem:[%s9782_s1 + $0x1b0] sm:$0xff] }
  0x84   : > { %5571 = vmatmul.msk.f32.vlgmr.msra.gmra.mxu1 %vm9798_vm0, %v446_v43  ;;  %1128 = vmatpush.msra.mxu0 %v517_v44  ;;  %v478_v43 = vld [vmem:[%s6715_s27 + $0x188] sm:$0xff]  ;;  %v549_v44 = vld [vmem:[%s9782_s1 + $0x1c0] sm:$0xff] }
  0x85   : > { %1151 = vmatpush.msra.mxu1 %v518_v45  ;;  %5577 = vmatmul.msk.f32.vlgmr.msra.gmra.mxu3 %vm9798_vm0, %v452_v46  ;;  %v550_v45 = vld [vmem:[%s9782_s1 + $0x1c8] sm:$0xff]  ;;  %v484_v46 = vld [vmem:[%s6715_s27 + $0x1b8] sm:$0xff] }
  0x86   : > { %1289 = vmatpush.msra.mxu3 %v524_v47  ;;  %v556_v47 = vld [vmem:[%s9782_s1 + $0x1f8] sm:$0xff] }
  0x8a   : > { %5572 = vmatmul.msk.f32.vlgmr.msrb.gmra.mxu2 %vm9798_vm0, %v447_v48  ;;  %v479_v48 = vld [vmem:[%s6715_s27 + $0x190] sm:$0xff] }
  0x8b   : > { %5574 = vmatmul.msk.f32.vlgmr.msrb.gmra.mxu0 %vm9798_vm0, %v449_v49  ;;  %1174 = vmatpush.msrb.mxu2 %v519_v50  ;;  %v481_v49 = vld [vmem:[%s6715_s27 + $0x1a0] sm:$0xff]  ;;  %v551_v50 = vld [vmem:[%s9782_s1 + $0x1d0] sm:$0xff] }
  0x8c   : > { %5575 = vmatmul.msk.f32.vlgmr.msrb.gmra.mxu1 %vm9798_vm0, %v450_v51  ;;  %1220 = vmatpush.msrb.mxu0 %v521_v52  ;;  %v482_v51 = vld [vmem:[%s6715_s27 + $0x1a8] sm:$0xff]  ;;  %v553_v52 = vld [vmem:[%s9782_s1 + $0x1e0] sm:$0xff] }
  0x8d   : > { %1243 = vmatpush.msrb.mxu1 %v522_v53  ;;  %5581 = vmatmul.msk.f32.vlgmr.msrb.gmra.mxu3 %vm9798_vm0, %v456_v54  ;;  %v554_v53 = vld [vmem:[%s9782_s1 + $0x1e8] sm:$0xff]  ;;  %v488_v54 = vld [vmem:[%s6715_s27 + $0x1d8] sm:$0xff] }
  0x8e   : > { %1381 = vmatpush.msrb.mxu3 %v528_v55  ;;  %v483_v55 = vld [vmem:[%s6715_s27 + $0x1b0] sm:$0xff] }
  0x92   : > { %5576 = vmatmul.msk.f32.vlgmr.msra.gmra.mxu2 %vm9798_vm0, %v451_v56  ;;  %v485_v56 = vld [vmem:[%s6715_s27 + $0x1c0] sm:$0xff] }
  0x93   : > { %5578 = vmatmul.msk.f32.vlgmr.msra.gmra.mxu0 %vm9798_vm0, %v453_v57  ;;  %1266 = vmatpush.msra.mxu2 %v523_v58  ;;  %v555_v57 = vld [vmem:[%s9782_s1 + $0x1f0] sm:$0xff]  ;;  %v486_v58 = vld [vmem:[%s6715_s27 + $0x1c8] sm:$0xff] }
  0x94   : > { %5579 = vmatmul.msk.f32.vlgmr.msra.gmra.mxu1 %vm9798_vm0, %v454_v59  ;;  %1312 = vmatpush.msra.mxu0 %v525_v60  ;;  %v492_v59 = vld [vmem:[%s6715_s27 + $0x1f8] sm:$0xff]  ;;  %v487_v60 = vld [vmem:[%s6715_s27 + $0x1d0] sm:$0xff] }
  0x95   : > { %1335 = vmatpush.msra.mxu1 %v526_v61  ;;  %5585 = vmatmul.msk.f32.vlgmr.msra.gmra.mxu3 %vm9798_vm0, %v460_v62  ;;  %v489_v61 = vld [vmem:[%s6715_s27 + $0x1e0] sm:$0xff]  ;;  %v490_v62 = vld [vmem:[%s6715_s27 + $0x1e8] sm:$0xff] }
  0x96   : > { %1473 = vmatpush.msra.mxu3 %v532_v63  ;;  %v491_v63 = vld [vmem:[%s6715_s27 + $0x1f0] sm:$0xff]  ;;  %s5553_s27 = sshll.u32 %s6691_s30, 3 }
  0x97   : > { %s428_s24 = scalar_lea.vmem [#allocation3], %s5553_s27 }
  0x98   : > { %s5478_s25 = sshll.u32 %s428_s24, 4  ;;  %s5479_s25 = int_to_ptr.vmem [resolvable:$true] %s5478_s25 }
  0x9a   : > { %5580 = vmatmul.msk.f32.vlgmr.msrb.gmra.mxu2 %vm9798_vm0, %v455_v0 }
  0x9b   : > { %5582 = vmatmul.msk.f32.vlgmr.msrb.gmra.mxu0 %vm9798_vm0, %v457_v1  ;;  %1358 = vmatpush.msrb.mxu2 %v527_v2 }
  0x9c   : > { %5583 = vmatmul.msk.f32.vlgmr.msrb.gmra.mxu1 %vm9798_vm0, %v458_v3  ;;  %1404 = vmatpush.msrb.mxu0 %v529_v4 }
  0x9d   : > { %1427 = vmatpush.msrb.mxu1 %v530_v5  ;;  %5589 = vmatmul.msk.f32.vlgmr.msrb.gmra.mxu3 %vm9798_vm0, %v464_v6 }
  0x9e   : > { %1565 = vmatpush.msrb.mxu3 %v536_v7 }
  0xa2   : > { %5584 = vmatmul.msk.f32.vlgmr.msra.gmra.mxu2 %vm9798_vm0, %v459_v8 }
  0xa3   : > { %5586 = vmatmul.msk.f32.vlgmr.msra.gmra.mxu0 %vm9798_vm0, %v461_v9  ;;  %1450 = vmatpush.msra.mxu2 %v531_v10 }
  0xa4   : > { %5587 = vmatmul.msk.f32.vlgmr.msra.gmra.mxu1 %vm9798_vm0, %v462_v11  ;;  %1496 = vmatpush.msra.mxu0 %v533_v12 }
  0xa5   : > { %1519 = vmatpush.msra.mxu1 %v534_v13  ;;  %5593 = vmatmul.msk.f32.vlgmr.msra.gmra.mxu3 %vm9798_vm0, %v468_v14 }
  0xa6   : > { %1657 = vmatpush.msra.mxu3 %v540_v15 }
  0xaa   : > { %5588 = vmatmul.msk.f32.vlgmr.msrb.gmra.mxu2 %vm9798_vm0, %v463_v16 }
  0xab   : > { %5590 = vmatmul.msk.f32.vlgmr.msrb.gmra.mxu0 %vm9798_vm0, %v465_v17  ;;  %1542 = vmatpush.msrb.mxu2 %v535_v18 }
  0xac   : > { %5591 = vmatmul.msk.f32.vlgmr.msrb.gmra.mxu1 %vm9798_vm0, %v466_v19  ;;  %1588 = vmatpush.msrb.mxu0 %v537_v20 }
  0xad   : > { %1611 = vmatpush.msrb.mxu1 %v538_v21  ;;  %5597 = vmatmul.msk.f32.vlgmr.msrb.gmra.mxu3 %vm9798_vm0, %v472_v22 }
  0xae   : > { %1749 = vmatpush.msrb.mxu3 %v544_v23 }
  0xb2   : > { %5592 = vmatmul.msk.f32.vlgmr.msra.gmra.mxu2 %vm9798_vm0, %v467_v24 }
  0xb3   : > { %5594 = vmatmul.msk.f32.vlgmr.msra.gmra.mxu0 %vm9798_vm0, %v469_v25  ;;  %1634 = vmatpush.msra.mxu2 %v539_v26 }
  0xb4   : > { %5595 = vmatmul.msk.f32.vlgmr.msra.gmra.mxu1 %vm9798_vm0, %v470_v27  ;;  %1680 = vmatpush.msra.mxu0 %v541_v28 }
  0xb5   : > { %1703 = vmatpush.msra.mxu1 %v542_v29  ;;  %5601 = vmatmul.msk.f32.vlgmr.msra.gmra.mxu3 %vm9798_vm0, %v476_v30 }
  0xb6   : > { %1841 = vmatpush.msra.mxu3 %v548_v31 }
  0xba   : > { %5596 = vmatmul.msk.f32.vlgmr.msrb.gmra.mxu2 %vm9798_vm0, %v471_v32 }
  0xbb   : > { %5598 = vmatmul.msk.f32.vlgmr.msrb.gmra.mxu0 %vm9798_vm0, %v473_v33  ;;  %1726 = vmatpush.msrb.mxu2 %v543_v34 }
  0xbc   : > { %5599 = vmatmul.msk.f32.vlgmr.msrb.gmra.mxu1 %vm9798_vm0, %v474_v35  ;;  %1772 = vmatpush.msrb.mxu0 %v545_v36 }
  0xbd   : > { %1795 = vmatpush.msrb.mxu1 %v546_v37  ;;  %5605 = vmatmul.msk.f32.vlgmr.msrb.gmra.mxu3 %vm9798_vm0, %v480_v38 }
  0xbe   : > { %1933 = vmatpush.msrb.mxu3 %v552_v39 }
  0xc2   : > { %5600 = vmatmul.msk.f32.vlgmr.msra.gmra.mxu2 %vm9798_vm0, %v475_v40 }
  0xc3   : > { %5602 = vmatmul.msk.f32.vlgmr.msra.gmra.mxu0 %vm9798_vm0, %v477_v41  ;;  %1818 = vmatpush.msra.mxu2 %v547_v42 }
  0xc4   : > { %5603 = vmatmul.msk.f32.vlgmr.msra.gmra.mxu1 %vm9798_vm0, %v478_v43  ;;  %1864 = vmatpush.msra.mxu0 %v549_v44 }
  0xc5   : > { %1887 = vmatpush.msra.mxu1 %v550_v45  ;;  %5609 = vmatmul.msk.f32.vlgmr.msra.gmra.mxu3 %vm9798_vm0, %v484_v46 }
  0xc6   : > { %2025 = vmatpush.msra.mxu3 %v556_v47 }
  0xca   : > { %5604 = vmatmul.msk.f32.vlgmr.msrb.gmra.mxu2 %vm9798_vm0, %v479_v48 }
  0xcb   : > { %5606 = vmatmul.msk.f32.vlgmr.msrb.gmra.mxu0 %vm9798_vm0, %v481_v49  ;;  %1910 = vmatpush.msrb.mxu2 %v551_v50 }
  0xcc   : > { %5607 = vmatmul.msk.f32.vlgmr.msrb.gmra.mxu1 %vm9798_vm0, %v482_v51  ;;  %1956 = vmatpush.msrb.mxu0 %v553_v52 }
  0xcd   : > { %1979 = vmatpush.msrb.mxu1 %v554_v53  ;;  %5613 = vmatmul.msk.f32.vlgmr.msrb.gmra.mxu3 %vm9798_vm0, %v488_v54 }
  0xd2   : > { %5608 = vmatmul.msk.f32.vlgmr.msra.gmra.mxu2 %vm9798_vm0, %v483_v55 }
  0xd3   : > { %5610 = vmatmul.msk.f32.vlgmr.msra.gmra.mxu0 %vm9798_vm0, %v485_v56  ;;  %2002 = vmatpush.msra.mxu2 %v555_v57 }
  0xd4   : > { %5611 = vmatmul.msk.f32.vlgmr.msra.gmra.mxu1 %vm9798_vm0, %v486_v58 }
  0xd5   : > { %5617 = vmatmul.msk.f32.vlgmr.msra.gmra.mxu3 %vm9798_vm0, %v492_v59 }
  0xda   : > { %5612 = vmatmul.msk.f32.vlgmr.msrb.gmra.mxu2 %vm9798_vm0, %v487_v60 }
  0xdb   : > { %5614 = vmatmul.msk.f32.vlgmr.msrb.gmra.mxu0 %vm9798_vm0, %v489_v61 }
  0xdc   : > { %5615 = vmatmul.msk.f32.vlgmr.msrb.gmra.mxu1 %vm9798_vm0, %v490_v62 }
  0xe0   : > { %v7012_v0 = vpop.f32.mrf.mxu0  ;;  %v7014_v1 = vpop.f32.mrf.mxu1 }
  0xe1   : > { %9998 = vst [vmem:[#allocation6_spill] sm:$0xff] %v7012_v0  ;;  %v2140_v4 = vadd.f32 %v7014_v1, %v7012_v0 }
  0xe2   : > { %9999 = vst [vmem:[#allocation7_spill] sm:$0xff] %v7014_v1  ;;  %5616 = vmatmul.msk.f32.vlgmr.msra.gmra.mxu2 %vm9798_vm0, %v491_v63 }
  0xe5   : > { %v7017_v2 = vpop.f32.mrf.mxu2 }
  0xe6   : > { %v2141_v7 = vadd.f32 %v2140_v4, %v7017_v2  ;;  %v2030_v4 = vlaneseq }
  0xe8   : > { %v7019_v3 = vpop.f32.mrf.mxu0  ;;  %v7025_v6 = vpop.f32.mrf.mxu3 }
  0xe9   : > { %v7023_v5 = vpop.f32.mrf.mxu1 }
  0xed   : > { %v7028_v8 = vpop.f32.mrf.mxu2 }
  0xee   : > { %10000 = vst [vmem:[#allocation8_spill] sm:$0xff] %v7028_v8  ;;  %v2142_v9 = vadd.f32 %v2141_v7, %v7028_v8 }
  0xf0   : > { %v7031_v10 = vpop.f32.mrf.mxu0  ;;  %v2143_v11 = vadd.f32 %v2142_v9, %v7019_v3  ;;  %v7036_v13 = vpop.f32.mrf.mxu3 }
  0xf1   : > { %v7034_v12 = vpop.f32.mrf.mxu1 }
  0xf2   : > { %v2144_v14 = vadd.f32 %v2143_v11, %v7023_v5  ;;  %v7116_v11 = vand.u32 127, %v2030_v4 }
  0xf5   : > { %v7039_v15 = vpop.f32.mrf.mxu2 }
  0xf6   : > { %v2145_v16 = vadd.f32 %v2144_v14, %v7039_v15 }
  0xf8   : > { %v7042_v17 = vpop.f32.mrf.mxu0  ;;  %v2146_v18 = vadd.f32 %v2145_v16, %v7025_v6  ;;  %v7047_v20 = vpop.f32.mrf.mxu3 }
  0xf9   : > { %v7045_v19 = vpop.f32.mrf.mxu1  ;;  %10001 = vst [vmem:[#allocation9_spill] sm:$0xff] %v7047_v20 }
  0xfa   : > { %v2147_v21 = vadd.f32 %v2146_v18, %v7031_v10 }
  0xfc   : > { %v2148_v22 = vadd.f32 %v2147_v21, %v7034_v12  ;;  %v7123_v21 = vshrl.u32 %v2030_v4, 7 }
  0xfd   : > { %v7051_v23 = vpop.f32.mrf.mxu2 }
  0xfe   : > { %v2149_v24 = vadd.f32 %v2148_v22, %v7051_v23  ;;  %v2074_v22 = vadd.s32 1, %v7116_v11 }
 0x100   : > { %v7054_v25 = vpop.f32.mrf.mxu0  ;;  %v2150_v26 = vadd.f32 %v2149_v24, %v7036_v13  ;;  %v7059_v28 = vpop.f32.mrf.mxu3 }
 0x101   : > { %10002 = vst [vmem:[#allocation10_spill] sm:$0xff] %v7054_v25  ;;  %v7057_v27 = vpop.f32.mrf.mxu1 }
 0x102   : > { %10003 = vst [vmem:[#allocation11_spill] sm:$0xff] %v7057_v27  ;;  %v2151_v29 = vadd.f32 %v2150_v26, %v7042_v17  ;;  %v2056_v26 = vadd.s32 120, %v7123_v21 }
 0x103   : > { %10004 = vst [vmem:[#allocation12_spill] sm:$0xff] %v7059_v28 }
 0x104   : > { %v2152_v30 = vadd.f32 %v2151_v29, %v7045_v19  ;;  %v7129_v29 = vmul.u32 16, %v7116_v11 }
 0x105   : > { %v7063_v31 = vpop.f32.mrf.mxu2 }
 0x106   : > { %v2153_v32 = vadd.f32 %v2152_v30, %v7063_v31  ;;  %v7131_v30 = vmul.u32 16, %v2074_v22  ;;  %vm2073_vm1 = vcmp.ge.s32.totalorder %v2056_v26, %v7129_v29  ;;  %v2051_v22 = vadd.s32 80, %v7123_v21 }
 0x108   : > { %v7066_v33 = vpop.f32.mrf.mxu0  ;;  %v2154_v34 = vadd.f32 %v2153_v32, %v7047_v20  ;;  %v7071_v36 = vpop.f32.mrf.mxu3  ;;  %vm2091_vm2 = vcmp.lt.s32.totalorder %v2056_v26, %v7131_v30 }
 0x109   : > { %10005 = vst [vmem:[#allocation13_spill] sm:$0xff] %v7066_v33  ;;  %v7069_v35 = vpop.f32.mrf.mxu1  ;;  %vm7140_vm3 = vmand %vm2073_vm1, %vm2091_vm2  ;;  %vm2068_vm1 = vcmp.ge.s32.totalorder %v2051_v22, %v7129_v29  ;;  %vm2086_vm2 = vcmp.lt.s32.totalorder %v2051_v22, %v7131_v30 }
 0x10a   : > { %10006 = vst [vmem:[#allocation14_spill] sm:$0xff] %v7069_v35  ;;  %v2155_v37 = vadd.f32 %v2154_v34, %v7054_v25 }
 0x10b   : > { %10007 = vst [vmem:[#allocation15_spill] sm:$0xff] %v7071_v36 }
 0x10c   : > { %v2156_v38 = vadd.f32 %v2155_v37, %v7057_v27  ;;  %v2055_v37 = vadd.s32 112, %v7123_v21 }
 0x10d   : > { %v7075_v39 = vpop.f32.mrf.mxu2 }
 0x10e   : > { %10008 = vst [vmem:[#allocation16_spill] sm:$0xff] %v7075_v39  ;;  %v2157_v40 = vadd.f32 %v2156_v38, %v7075_v39  ;;  %vm2072_vm4 = vcmp.ge.s32.totalorder %v2055_v37, %v7129_v29  ;;  %vm2090_vm5 = vcmp.lt.s32.totalorder %v2055_v37, %v7131_v30  ;;  %v2050_v37 = vadd.s32 72, %v7123_v21 }
 0x10f   : > { %vm7158_vm6 = vmand %vm2072_vm4, %vm2090_vm5 }
 0x110   : > { %v7078_v41 = vpop.f32.mrf.mxu0  ;;  %v2158_v42 = vadd.f32 %v2157_v40, %v7059_v28  ;;  %v7083_v44 = vpop.f32.mrf.mxu3  ;;  %vm7220_vm4 = vmand %vm2068_vm1, %vm2086_vm2  ;;  %vm2067_vm5 = vcmp.ge.s32.totalorder %v2050_v37, %v7129_v29 }
 0x111   : > { %10009 = vst [vmem:[#allocation17_spill] sm:$0xff] %v7078_v41  ;;  %v7081_v43 = vpop.f32.mrf.mxu1 }
 0x112   : > { %10010 = vst [vmem:[#allocation18_spill] sm:$0xff] %v7081_v43  ;;  %v2159_v45 = vadd.f32 %v2158_v42, %v7066_v33 }
 0x113   : > { %10011 = vst [vmem:[#allocation19_spill] sm:$0xff] %v7083_v44 }
 0x114   : > { %v2160_v46 = vadd.f32 %v2159_v45, %v7069_v35  ;;  %v9831_v45 = vmov 1.0  }
 0x115   : > { %v7087_v47 = vpop.f32.mrf.mxu2  ;;  %5635 = vmatpush.msk.msrb.mxu3 %vm7140_vm3, %v9831_v45  ;;  %5653 = vmatpush.msk.msrb.mxu2 %vm7140_vm3, %v9831_v45 }
 0x116   : > { %10012 = vst [vmem:[#allocation20_spill] sm:$0xff] %v7087_v47  ;;  %v2161_v48 = vadd.f32 %v2160_v46, %v7087_v47  ;;  %v2054_v46 = vadd.s32 104, %v7123_v21 }
 0x117   : > { %5636 = vmatpush.msk.msrb.mxu3 %vm7158_vm6, %v9831_v45  ;;  %5654 = vmatpush.msk.msrb.mxu2 %vm7158_vm6, %v9831_v45 }
 0x118   : > { %v7090_v49 = vpop.f32.mrf.mxu0  ;;  %v2162_v50 = vadd.f32 %v2161_v48, %v7071_v36  ;;  %v7095_v52 = vpop.f32.mrf.mxu3  ;;  %vm2071_vm7 = vcmp.ge.s32.totalorder %v2054_v46, %v7129_v29  ;;  %vm2089_vm8 = vcmp.lt.s32.totalorder %v2054_v46, %v7131_v30 }
 0x119   : > { %10013 = vst [vmem:[#allocation21_spill] sm:$0xff] %v7090_v49  ;;  %v7093_v51 = vpop.f32.mrf.mxu1  ;;  %vm7172_vm9 = vmand %vm2071_vm7, %vm2089_vm8  ;;  %vm2085_vm7 = vcmp.lt.s32.totalorder %v2050_v37, %v7131_v30 }
 0x11a   : > { %10014 = vst [vmem:[#allocation22_spill] sm:$0xff] %v7093_v51  ;;  %v2163_v53 = vadd.f32 %v2162_v50, %v7078_v41  ;;  %5637 = vmatpush.msk.msrb.mxu3 %vm7172_vm9, %v9831_v45  ;;  %5655 = vmatpush.msk.msrb.mxu2 %vm7172_vm9, %v9831_v45  ;;  %vm7236_vm8 = vmand %vm2067_vm5, %vm2085_vm7 }
 0x11b   : > { %10015 = vst [vmem:[#allocation23_spill] sm:$0xff] %v7095_v52 }
 0x11c   : > { %v2164_v54 = vadd.f32 %v2163_v53, %v7081_v43 }
 0x11d   : > { %v7099_v55 = vpop.f32.mrf.mxu2 }
 0x11e   : > { %10016 = vst [vmem:[#allocation24_spill] sm:$0xff] %v7099_v55  ;;  %v2165_v56 = vadd.f32 %v2164_v54, %v7099_v55  ;;  %v2053_v54 = vadd.s32 96, %v7123_v21 }
 0x120   : > { %v7102_v57 = vpop.f32.mrf.mxu0  ;;  %v2166_v58 = vadd.f32 %v2165_v56, %v7083_v44  ;;  %v7107_v60 = vpop.f32.mrf.mxu3  ;;  %vm2070_vm10 = vcmp.ge.s32.totalorder %v2053_v54, %v7129_v29  ;;  %vm2088_vm11 = vcmp.lt.s32.totalorder %v2053_v54, %v7131_v30  ;;  %v2049_v54 = vadd.s32 64, %v7123_v21 }
 0x121   : > { %10017 = vst [vmem:[#allocation25_spill] sm:$0xff] %v7102_v57  ;;  %v7105_v59 = vpop.f32.mrf.mxu1  ;;  %vm7188_vm12 = vmand %vm2070_vm10, %vm2088_vm11 }
 0x122   : > { %10018 = vst [vmem:[#allocation26_spill] sm:$0xff] %v7105_v59  ;;  %v2167_v61 = vadd.f32 %v2166_v58, %v7090_v49  ;;  %5638 = vmatpush.msk.msrb.mxu3 %vm7188_vm12, %v9831_v45  ;;  %5656 = vmatpush.msk.msrb.mxu2 %vm7188_vm12, %v9831_v45  ;;  %vm2066_vm10 = vcmp.ge.s32.totalorder %v2049_v54, %v7129_v29 }
 0x123   : > { %10019 = vst [vmem:[#allocation27_spill] sm:$0xff] %v7107_v60  ;;  %vm2084_vm11 = vcmp.lt.s32.totalorder %v2049_v54, %v7131_v30  ;;  %v2047_v54 = vadd.s32 48, %v7123_v21 }
 0x124   : > { %v2168_v62 = vadd.f32 %v2167_v61, %v7093_v51 }
 0x125   : > { %v7111_v63 = vpop.f32.mrf.mxu2  ;;  %vm2064_vm5 = vcmp.ge.s32.totalorder %v2047_v54, %v7129_v29  ;;  %vm2082_vm7 = vcmp.lt.s32.totalorder %v2047_v54, %v7131_v30  ;;  %v2045_v54 = vadd.s32 32, %v7123_v21 }
 0x126   : > { %10020 = vst [vmem:[#allocation28_spill] sm:$0xff] %v7111_v63  ;;  %v2169_v7 = vadd.f32 %v2168_v62, %v7111_v63  ;;  %v2052_v62 = vadd.s32 88, %v7123_v21 }
 0x128   : > { %v7114_v9 = vpop.f32.mrf.mxu0  ;;  %v2170_v14 = vadd.f32 %v2169_v7, %v7095_v52  ;;  %v7121_v18 = vpop.f32.mrf.mxu3  ;;  %vm2069_vm13 = vcmp.ge.s32.totalorder %v2052_v62, %v7129_v29  ;;  %vm2087_vm14 = vcmp.lt.s32.totalorder %v2052_v62, %v7131_v30 }
 0x129   : > { %10021 = vst [vmem:[#allocation29_spill] sm:$0xff] %v7114_v9  ;;  %v7119_v16 = vpop.f32.mrf.mxu1  ;;  %vm7204_vm15 = vmand %vm2069_vm13, %vm2087_vm14 }
 0x12a   : > { %10022 = vst [vmem:[#allocation30_spill] sm:$0xff] %v7119_v16  ;;  %v2171_v24 = vadd.f32 %v2170_v14, %v7102_v57  ;;  %5639 = vmatpush.msk.msrb.mxu3 %vm7204_vm15, %v9831_v45  ;;  %5657 = vmatpush.msk.msrb.mxu2 %vm7204_vm15, %v9831_v45  ;;  %vm7250_vm13 = vmand %vm2066_vm10, %vm2084_vm11 }
 0x12b   : > { %10023 = vst [vmem:[#allocation31_spill] sm:$0xff] %v7121_v18  ;;  %vm7282_vm10 = vmand %vm2064_vm5, %vm2082_vm7  ;;  %vm2062_vm5 = vcmp.ge.s32.totalorder %v2045_v54, %v7129_v29  ;;  %vm2080_vm7 = vcmp.lt.s32.totalorder %v2045_v54, %v7131_v30  ;;  %v2043_v54 = vadd.s32 16, %v7123_v21 }
 0x12c   : > { %v2172_v32 = vadd.f32 %v2171_v24, %v7105_v59  ;;  %5640 = vmatpush.msk.msrb.mxu3 %vm7220_vm4, %v9831_v45  ;;  %5658 = vmatpush.msk.msrb.mxu2 %vm7220_vm4, %v9831_v45 }
 0x12d   : > { %v7134_v34 = vpop.f32.mrf.mxu2 }
 0x12e   : > { %10024 = vst [vmem:[#allocation32_spill] sm:$0xff] %v7134_v34  ;;  %v2173_v38 = vadd.f32 %v2172_v32, %v7134_v34  ;;  %5641 = vmatpush.msk.msrb.mxu3 %vm7236_vm8, %v9831_v45  ;;  %5659 = vmatpush.msk.msrb.mxu2 %vm7236_vm8, %v9831_v45 }
 0x130   : > { %v7144_v42 = vpop.f32.mrf.mxu0  ;;  %v2174_v48 = vadd.f32 %v2173_v38, %v7107_v60  ;;  %v7176_v61 = vpop.f32.mrf.mxu3  ;;  %5642 = vmatpush.msk.msrb.mxu3 %vm7250_vm13, %v9831_v45  ;;  %5660 = vmatpush.msk.msrb.mxu2 %vm7250_vm13, %v9831_v45 }
 0x131   : > { %10027 = vst [vmem:[#allocation33_spill] sm:$0xff] %v7144_v42  ;;  %v7156_v50 = vpop.f32.mrf.mxu1 }
 0x132   : > { %10028 = vst [vmem:[#allocation34_spill] sm:$0xff] %v7156_v50  ;;  %v2175_v56 = vadd.f32 %v2174_v48, %v7114_v9 }
 0x133   : > { %10033 = vst [vmem:[#allocation35_spill] sm:$0xff] %v7176_v61 }
 0x134   : > { %v2176_v4 = vadd.f32 %v2175_v56, %v7119_v16  ;;  %v2042_v16 = vadd.s32 8, %v7123_v21 }
 0x135   : > { %v7192_v14 = vpop.f32.mrf.mxu2 }
 0x136   : > { %10036 = vst [vmem:[#allocation36_spill] sm:$0xff] %v7192_v14  ;;  %v2177_v24 = vadd.f32 %v2176_v4, %v7192_v14  ;;  %v2048_v4 = vadd.s32 56, %v7123_v21 }
 0x138   : > { %v7208_v32 = vpop.f32.mrf.mxu0  ;;  %v2178_v38 = vadd.f32 %v2177_v24, %v7121_v18  ;;  %vm2065_vm14 = vcmp.ge.s32.totalorder %v2048_v4, %v7129_v29  ;;  %vm2083_vm1 = vcmp.lt.s32.totalorder %v2048_v4, %v7131_v30  ;;  %v2046_v4 = vadd.s32 40, %v7123_v21 }
 0x139   : > { %10039 = vst [vmem:[#allocation37_spill] sm:$0xff] %v7208_v32  ;;  %v7224_v48 = vpop.f32.mrf.mxu1  ;;  %vm7268_vm2 = vmand %vm2065_vm14, %vm2083_vm1 }
 0x13a   : > { %10042 = vst [vmem:[#allocation38_spill] sm:$0xff] %v7224_v48  ;;  %v2179_v56 = vadd.f32 %v2178_v38, %v7144_v42  ;;  %v7256_v38 = vpop.f32.mrf.mxu3  ;;  %5643 = vmatpush.msk.msrb.mxu3 %vm7268_vm2, %v9831_v45  ;;  %5661 = vmatpush.msk.msrb.mxu2 %vm7268_vm2, %v9831_v45  ;;  %vm2063_vm11 = vcmp.ge.s32.totalorder %v2046_v4, %v7129_v29 }
 0x13b   : > { %10048 = vst [vmem:[#allocation40_spill] sm:$0xff] %v7256_v38  ;;  %vm2081_vm14 = vcmp.lt.s32.totalorder %v2046_v4, %v7131_v30  ;;  %v2044_v4 = vadd.s32 24, %v7123_v21 }
 0x13c   : > { %v2180_v22 = vadd.f32 %v2179_v56, %v7156_v50  ;;  %v10049_v50 = vmov 0  ;;  %5644 = vmatpush.msk.msrb.mxu3 %vm7282_vm10, %v9831_v45  ;;  %5662 = vmatpush.msk.msrb.mxu2 %vm7282_vm10, %v9831_v45  ;;  %vm7298_vm1 = vmand %vm2063_vm11, %vm2081_vm14 }
 0x13d   : > { %v7254_v37 = vpop.f32.mrf.mxu2  ;;  %v10050_v50 = vsel %vm7268_vm2, 4294967295, %v10049_v50  ;;  %vm7314_vm11 = vmand %vm2062_vm5, %vm2080_vm7  ;;  %vm2061_vm14 = vcmp.ge.s32.totalorder %v2044_v4, %v7129_v29  ;;  %vm2079_vm0 = vcmp.lt.s32.totalorder %v2044_v4, %v7131_v30  ;;  %vm2059_vm7 = vcmp.ge.s32.totalorder %v2042_v16, %v7129_v29 }
 0x13e   : > { %10047 = vst [vmem:[#allocation39_spill] sm:$0xff] %v7254_v37  ;;  %v2181_v56 = vadd.f32 %v2180_v22, %v7254_v37  ;;  %v10051_v37 = vmov 0  ;;  %5645 = vmatpush.msk.msrb.mxu3 %vm7298_vm1, %v9831_v45  ;;  %5663 = vmatpush.msk.msrb.mxu2 %vm7298_vm1, %v9831_v45  ;;  %vm7330_vm5 = vmand %vm2061_vm14, %vm2079_vm0  ;;  %vm2076_vm0 = vcmp.lt.s32.totalorder %v7123_v21, %v7131_v30 }
 0x13f   : > { %v10052_v37 = vsel %vm7282_vm10, 4294967295, %v10051_v37  ;;  %vm2077_vm10 = vcmp.lt.s32.totalorder %v2042_v16, %v7131_v30 }
 0x140   : > { %v2182_v22 = vadd.f32 %v2181_v56, %v7176_v61  ;;  %v7286_v42 = vpop.f32.mrf.mxu0  ;;  %v10054_v61 = vmov 0  ;;  %5646 = vmatpush.msk.msrb.mxu3 %vm7314_vm11, %v9831_v45  ;;  %5664 = vmatpush.msk.msrb.mxu2 %vm7314_vm11, %v9831_v45  ;;  %vm7359_vm2 = vmand %vm2059_vm7, %vm2077_vm10 }
 0x141   : > { %10053 = vst [vmem:[#allocation41_spill] sm:$0xff] %v7286_v42  ;;  %v10055_v61 = vsel %vm7298_vm1, 4294967295, %v10054_v61  ;;  %v7302_v18 = vpop.f32.mrf.mxu1  ;;  %vm2060_vm1 = vcmp.ge.s32.totalorder %v2043_v54, %v7129_v29 }
 0x142   : > { %v2183_v56 = vadd.f32 %v2182_v22, %v7208_v32  ;;  %10056 = vst [vmem:[#allocation42_spill] sm:$0xff] %v7302_v18  ;;  %v10057_v32 = vmov 0  ;;  %v7337_v9 = vpop.f32.mrf.mxu3  ;;  %5647 = vmatpush.msk.msrb.mxu3 %vm7330_vm5, %v9831_v45  ;;  %5665 = vmatpush.msk.msrb.mxu2 %vm7330_vm5, %v9831_v45 }
 0x143   : > { %v10058_v32 = vsel %vm7314_vm11, 4294967295, %v10057_v32  ;;  %10062 = vst [vmem:[#allocation44_spill] sm:$0xff] %v7337_v9  ;;  %vm2078_vm11 = vcmp.lt.s32.totalorder %v2043_v54, %v7131_v30 }
 0x144   : > { %v2184_v22 = vadd.f32 %v2183_v56, %v7224_v48  ;;  %vm7350_vm14 = vmand %vm2060_vm1, %vm2078_vm11  ;;  %vm10067_vm1 = vcmp.ge.s32.totalorder %v7123_v21, %v7129_v29 }
 0x145   : > { %v7318_v14 = vpop.f32.mrf.mxu2  ;;  %5648 = vmatpush.msk.msrb.mxu3 %vm7350_vm14, %v9831_v45  ;;  %5666 = vmatpush.msk.msrb.mxu2 %vm7350_vm14, %v9831_v45  ;;  %vm7370_vm11 = vmand %vm10067_vm1, %vm2076_vm0 }
 0x146   : > { %10059 = vst [vmem:[#allocation43_spill] sm:$0xff] %v7318_v14  ;;  %v2185_v56 = vadd.f32 %v2184_v22, %v7318_v14 }
 0x147   : > { %5649 = vmatpush.msk.msrb.mxu3 %vm7359_vm2, %v9831_v45  ;;  %5667 = vmatpush.msk.msrb.mxu2 %vm7359_vm2, %v9831_v45 }
 0x148   : > { %v2186_v4 = vadd.f32 %v2185_v56, %v7256_v38  ;;  %v7374_v16 = vpop.f32.mrf.mxu0 }
 0x149   : > { %10070 = vst [vmem:[#allocation45_spill] sm:$0xff] %v7374_v16  ;;  %5650 = vmatpush.msk.msrb.mxu3 %vm7370_vm11, %v9831_v45  ;;  %5668 = vmatpush.msk.msrb.mxu2 %vm7370_vm11, %v9831_v45 }
 0x14a   : > { %v2187_v56 = vadd.f32 %v2186_v4, %v7286_v42  ;;  %v7385_v42 = vpop.f32.mrf.mxu1  ;;  %v7395_v60 = vpop.f32.mrf.mxu3 }
 0x14b   : > { %10072 = vst [vmem:[#allocation47_spill] sm:$0xff] %v7385_v42 }
 0x14c   : > { %v2188_v30 = vadd.f32 %v2187_v56, %v7302_v18  ;;  %10073 = vst [vmem:[#allocation48_spill] sm:$0xff] %v7395_v60 }
 0x14d   : > { %v7383_v4 = vpop.f32.mrf.mxu2 }
 0x14e   : > { %10071 = vst [vmem:[#allocation46_spill] sm:$0xff] %v7383_v4  ;;  %v2189_v29 = vadd.f32 %v2188_v30, %v7383_v4 }
 0x150   : > { %v2190_v14 = vadd.f32 %v2189_v29, %v7337_v9  ;;  %v7401_v59 = vpop.f32.mrf.mxu0 }
 0x151   : > { %10075 = vst [vmem:[#allocation50_spill] sm:$0xff] %v7401_v59 }
 0x152   : > { %v2191_v56 = vadd.f32 %v2190_v14, %v7374_v16  ;;  %v7404_v52 = vpop.f32.mrf.mxu1  ;;  %v7408_v4 = vpop.f32.mrf.mxu3 }
 0x153   : > { %10076 = vst [vmem:[#allocation51_spill] sm:$0xff] %v7404_v52 }
 0x154   : > { %v2192_v18 = vadd.f32 %v2191_v56, %v7385_v42  ;;  %10077 = vst [vmem:[#allocation52_spill] sm:$0xff] %v7408_v4 }
 0x155   : > { %v7399_v34 = vpop.f32.mrf.mxu2 }
 0x156   : > { %10074 = vst [vmem:[#allocation49_spill] sm:$0xff] %v7399_v34  ;;  %v2193_v57 = vadd.f32 %v2192_v18, %v7399_v34 }
 0x158   : > { %v2194_v45 = vadd.f32 %v2193_v57, %v7395_v60  ;;  %v7414_v56 = vpop.f32.mrf.mxu0 }
 0x159   : > { %10079 = vst [vmem:[#allocation54_spill] sm:$0xff] %v7414_v56 }
 0x15a   : > { %v2195_v30 = vadd.f32 %v2194_v45, %v7401_v59  ;;  %v7417_v16 = vpop.f32.mrf.mxu1  ;;  %v7423_v45 = vpop.f32.mrf.mxu3 }
 0x15b   : > { %10080 = vst [vmem:[#allocation55_spill] sm:$0xff] %v7417_v16 }
 0x15c   : > { %v2196_v29 = vadd.f32 %v2195_v30, %v7404_v52  ;;  %10082 = vst [vmem:[#allocation57_spill] sm:$0xff] %v7423_v45 }
 0x15d   : > { %v7411_v9 = vpop.f32.mrf.mxu2 }
 0x15e   : > { %10078 = vst [vmem:[#allocation53_spill] sm:$0xff] %v7411_v9  ;;  %v2197_v14 = vadd.f32 %v2196_v29, %v7411_v9 }
 0x160   : > { %v2198_v42 = vadd.f32 %v2197_v14, %v7408_v4  ;;  %v2034_v14 = vmul.u32 16, %v7123_v21 }
 0x162   : > { %v2199_v18 = vadd.f32 %v2198_v42, %v7414_v56  ;;  %v2036_v42 = vadd.s32 1, %v7123_v21  ;;  %vm2035_vm10 = vcmp.ge.s32.totalorder %v7116_v11, %v2034_v14 }
 0x164   : > { %v2200_v57 = vadd.f32 %v2199_v18, %v7417_v16  ;;  %v2037_v18 = vmul.u32 16, %v2036_v42 }
 0x165   : > { %v7421_v60 = vpop.f32.mrf.mxu2 }
 0x166   : > { %10081 = vst [vmem:[#allocation56_spill] sm:$0xff] %v7421_v60  ;;  %v2201_v30 = vadd.f32 %v2200_v57, %v7421_v60  ;;  %vm2038_vm7 = vcmp.lt.s32.totalorder %v7116_v11, %v2037_v18  ;;  %v10085_v57 = vmov 1.0  }
 0x167   : > { %vm7435_vm0 = vmand %vm2035_vm10, %vm2038_vm7 }
 0x168   : > { %v2202_v52 = vadd.f32 %v2201_v30, %v7423_v45  ;;  %5651 = vmatpush.msk.msra.mxu1 %vm7435_vm0, %v10085_v57  ;;  %5669 = vmatpush.msk.msra.mxu3 %vm7435_vm0, %v10085_v57 }
 0x169   : > { %5750 = vmatpush.msk.msra.mxu0 %vm7435_vm0, %v10085_v57 }
 0x16a   : > { %v7427_v59 = vmul.f32 0.125, %v2202_v52  ;;  %5734 = vmatpush.msk.msrb.mxu1 %vm7140_vm3, %v10085_v57 }
 0x16b   : > { %5752 = vmatpush.msk.msrb.mxu0 %vm7140_vm3, %v10085_v57 }
 0x16c   : > { %v2204_v29 = vmul.f32 %v7427_v59, %v7427_v59  ;;  %5735 = vmatpush.msk.msrb.mxu1 %vm7158_vm6, %v10085_v57 }
 0x16d   : > { %5753 = vmatpush.msk.msrb.mxu0 %vm7158_vm6, %v10085_v57 }
 0x16e   : > { %2221 = vmatmul.f32.vlgmr.msrb.gmra.mxu3 %v2204_v29  ;;  %5736 = vmatpush.msk.msrb.mxu1 %vm7172_vm9, %v10085_v57 }
 0x16f   : > { %5833 = vmatpush.msk.msrb.mxu3 %vm7140_vm3, %v10085_v57  ;;  %5754 = vmatpush.msk.msrb.mxu0 %vm7172_vm9, %v10085_v57  ;;  %vm10086_vm3 = vnez %v10050_v50 }
 0x170   : > { %5737 = vmatpush.msk.msrb.mxu1 %vm7188_vm12, %v10085_v57 }
 0x171   : > { %5834 = vmatpush.msk.msrb.mxu3 %vm7158_vm6, %v10085_v57  ;;  %5755 = vmatpush.msk.msrb.mxu0 %vm7188_vm12, %v10085_v57  ;;  %vm10087_vm6 = vnez %v10052_v37 }
 0x172   : > { %5738 = vmatpush.msk.msrb.mxu1 %vm7204_vm15, %v10085_v57 }
 0x173   : > { %5835 = vmatpush.msk.msrb.mxu3 %vm7172_vm9, %v10085_v57  ;;  %5756 = vmatpush.msk.msrb.mxu0 %vm7204_vm15, %v10085_v57  ;;  %vm10088_vm9 = vnez %v10055_v61 }
 0x174   : > { %5739 = vmatpush.msk.msrb.mxu1 %vm7220_vm4, %v10085_v57 }
 0x175   : > { %5836 = vmatpush.msk.msrb.mxu3 %vm7188_vm12, %v10085_v57  ;;  %5757 = vmatpush.msk.msrb.mxu0 %vm7220_vm4, %v10085_v57  ;;  %vm10089_vm12 = vnez %v10058_v32 }
 0x176   : > { %5740 = vmatpush.msk.msrb.mxu1 %vm7236_vm8, %v10085_v57 }
 0x177   : > { %5837 = vmatpush.msk.msrb.mxu3 %vm7204_vm15, %v10085_v57  ;;  %5758 = vmatpush.msk.msrb.mxu0 %vm7236_vm8, %v10085_v57 }
 0x178   : > { %5741 = vmatpush.msk.msrb.mxu1 %vm7250_vm13, %v10085_v57 }
 0x179   : > { %5838 = vmatpush.msk.msrb.mxu3 %vm7220_vm4, %v10085_v57  ;;  %5759 = vmatpush.msk.msrb.mxu0 %vm7250_vm13, %v10085_v57 }
 0x17a   : > { %5742 = vmatpush.msk.msrb.mxu1 %vm10086_vm3, %v10085_v57 }
 0x17b   : > { %5839 = vmatpush.msk.msrb.mxu3 %vm7236_vm8, %v10085_v57  ;;  %5760 = vmatpush.msk.msrb.mxu0 %vm10086_vm3, %v10085_v57  ;;  %vm10090_vm8 = vcmask 64512  }
 0x17c   : > { %5743 = vmatpush.msk.msrb.mxu1 %vm10087_vm6, %v10085_v57 }
 0x17d   : > { %5840 = vmatpush.msk.msrb.mxu3 %vm7250_vm13, %v10085_v57  ;;  %5761 = vmatpush.msk.msrb.mxu0 %vm10087_vm6, %v10085_v57  ;;  %vm10092_vm13 = vmmov %vm10090_vm8 }
 0x17e   : > { %5744 = vmatpush.msk.msrb.mxu1 %vm10088_vm9, %v10085_v57 }
 0x17f   : > { %5841 = vmatpush.msk.msrb.mxu3 %vm10086_vm3, %v10085_v57  ;;  %5762 = vmatpush.msk.msrb.mxu0 %vm10088_vm9, %v10085_v57 }
 0x180   : > { %5745 = vmatpush.msk.msrb.mxu1 %vm10089_vm12, %v10085_v57 }
 0x181   : > { %5842 = vmatpush.msk.msrb.mxu3 %vm10087_vm6, %v10085_v57  ;;  %5763 = vmatpush.msk.msrb.mxu0 %vm10089_vm12, %v10085_v57 }
 0x182   : > { %5746 = vmatpush.msk.msrb.mxu1 %vm7330_vm5, %v10085_v57 }
 0x183   : > { %5843 = vmatpush.msk.msrb.mxu3 %vm10088_vm9, %v10085_v57  ;;  %5764 = vmatpush.msk.msrb.mxu0 %vm7330_vm5, %v10085_v57 }
 0x184   : > { %5747 = vmatpush.msk.msrb.mxu1 %vm7350_vm14, %v10085_v57 }
 0x185   : > { %5844 = vmatpush.msk.msrb.mxu3 %vm10089_vm12, %v10085_v57  ;;  %5765 = vmatpush.msk.msrb.mxu0 %vm7350_vm14, %v10085_v57 }
 0x186   : > { %5748 = vmatpush.msk.msrb.mxu1 %vm7359_vm2, %v10085_v57 }
 0x187   : > { %5845 = vmatpush.msk.msrb.mxu3 %vm7330_vm5, %v10085_v57  ;;  %5766 = vmatpush.msk.msrb.mxu0 %vm7359_vm2, %v10085_v57 }
 0x188   : > { %5749 = vmatpush.msk.msrb.mxu1 %vm7370_vm11, %v10085_v57 }
 0x189   : > { %5846 = vmatpush.msk.msrb.mxu3 %vm7350_vm14, %v10085_v57  ;;  %5767 = vmatpush.msk.msrb.mxu0 %vm7370_vm11, %v10085_v57 }
 0x18b   : > { %5847 = vmatpush.msk.msrb.mxu3 %vm7359_vm2, %v10085_v57  ;;  %vm10094_vm2 = vmmov %vm10090_vm8 }
 0x18c   : > { %vm10096_vm5 = vmmov %vm10094_vm2 }
 0x18d   : > { %5848 = vmatpush.msk.msrb.mxu3 %vm7370_vm11, %v10085_v57  ;;  %vm10098_vm14 = vmmov %vm10094_vm2 }
 0x18e   : > { %vm10100_vm1 = vmmov %vm10094_vm2 }
 0x18f   : > { %vm10102_vm11 = vmmov %vm10100_vm1 }
 0x190   : > { %vm10104_vm10 = vmmov %vm10100_vm1 }
 0x191   : > { %vm10106_vm7 = vmmov %vm10100_vm1 }
 0x192   : > { %vm10116_vm3 = vmmov %vm10100_vm1 }
 0x193   : > { %vm10119_vm6 = vmmov %vm10100_vm1 }
 0x194   : > { %vm10120_vm9 = vmmov %vm10100_vm1 }
 0x195   : > { %vm10123_vm12 = vmmov %vm10100_vm1 }
 0x1f1   : > { %v2222_v52 = vpop.f32.mrf.mxu3 }
 0x1f2   : > { %5895 = vrsqrt.f32 %v2222_v52  ;;  %vm2232_vm15 = vcmp.eq.f32.partialorder %v2222_v52, inf  ;;  %v2235_v7 = vand.u32 2147483648, %v2222_v52  ;;  %vm2234_vm4 = vcmp.eq.f32.partialorder %v2222_v52, 0.0 }
 0x1f3   : > { %v2237_v46 = vadd.f32 1.0, %v2222_v52 }
 0x1f8   : > { %v5896_v11 = vpop.eup %5895 }
 0x1f9   : > { %v2226_v21 = vmul.f32 %v5896_v11, %v2222_v52 }
 0x1fb   : > { %v2227_v40 = vmul.f32 %v5896_v11, %v2226_v21 }
 0x1fd   : > { %v2228_v50 = vmul.f32 0.5, %v2227_v40 }
 0x1ff   : > { %v2229_v53 = vsub.f32 1.5, %v2228_v50 }
 0x201   : > { %v2230_v58 = vmul.f32 %v5896_v11, %v2229_v53 }
 0x203   : > { %v2231_v61 = vmul.f32 %v2230_v58, %v2222_v52 }
 0x205   : > { %v2233_v26 = vsel %vm2232_vm15, %v2222_v52, %v2231_v61  ;;  %vm10124_vm15 = vmmov %vm10100_vm1 }
 0x206   : > { %v2236_v32 = vsel %vm2234_vm4, %v2235_v7, %v2233_v26  ;;  %vm10127_vm4 = vmmov %vm10100_vm1 }
 0x207   : > { %v2238_v48 = vadd.f32 1e-08, %v2236_v32 }
 0x209   : > { %v2239_v62 = vmul.f32 %v2238_v48, %v2237_v46 }
 0x20b   : > { %5897 = vrcp.f32 %v2239_v62 }
 0x211   : > { %v5898_v24 = vpop.eup %5897 }
 0x212   : > { %v2241_v37 = vmul.f32 %v5898_v24, %v2222_v52 }
 0x214   : > { %5652 = vmatmul.msk.f32.vlgmr.msra.gmra.mxu1 %vm10090_vm8, %v2241_v37  ;;  %vm10128_vm8 = vmmov %vm10100_vm1 }
 0x215   : > { %5768 = vmatpush.msk.msra.mxu1 %vm7435_vm0, %v10085_v57 }
 0x291   : > { %v2262_v22 = vpop.f32.mrf.mxu1 }
 0x292   : > { %v7597_v38 = vmul.f32 %v2262_v22, %v7427_v59 }
 0x294   : > { %v2266_v54 = vmul.f32 %v7597_v38, %v7012_v0  ;;  %v2267_v30 = vmul.f32 %v7597_v38, %v7014_v1  ;;  %v2268_v29 = vmul.f32 %v7597_v38, %v7017_v2  ;;  %v2269_v14 = vmul.f32 %v7597_v38, %v7028_v8 }
 0x295   : > { %v2270_v59 = vmul.f32 %v7597_v38, %v7019_v3  ;;  %v2271_v42 = vmul.f32 %v7597_v38, %v7023_v5  ;;  %v2272_v18 = vmul.f32 %v7597_v38, %v7039_v15  ;;  %v2273_v52 = vmul.f32 %v7597_v38, %v7025_v6 }
 0x296   : > { %2346 = vmatmul.f32.vlgmr.msrb.gmra.mxu2 %v2266_v54  ;;  %v2274_v11 = vmul.f32 %v7597_v38, %v7031_v10  ;;  %v2275_v21 = vmul.f32 %v7597_v38, %v7034_v12  ;;  %v2276_v40 = vmul.f32 %v7597_v38, %v7051_v23  ;;  %v2277_v50 = vmul.f32 %v7597_v38, %v7036_v13 }
 0x297   : > { %v2278_v53 = vmul.f32 %v7597_v38, %v7042_v17  ;;  %v2279_v58 = vmul.f32 %v7597_v38, %v7045_v19  ;;  %v2280_v61 = vmul.f32 %v7597_v38, %v7063_v31  ;;  %v2281_v7 = vmul.f32 %v7597_v38, %v7047_v20 }
 0x298   : > { %v2282_v26 = vmul.f32 %v7597_v38, %v7054_v25  ;;  %v2283_v48 = vmul.f32 %v7597_v38, %v7057_v27  ;;  %v2284_v37 = vmul.f32 %v7597_v38, %v7075_v39 }
 0x29e   : > { %2349 = vmatmul.f32.gmra.mxu2 %v2267_v30  ;;  %v2285_v30 = vmul.f32 %v7597_v38, %v7059_v28 }
 0x2a6   : > { %2352 = vmatmul.f32.gmra.mxu2 %v2268_v29 }
 0x2ae   : > { %2355 = vmatmul.f32.gmra.mxu2 %v2269_v14 }
 0x2b6   : > { %2358 = vmatmul.f32.gmra.mxu2 %v2270_v59  ;;  %v2286_v59 = vmul.f32 %v7597_v38, %v7066_v33  ;;  %v10157_v33 = vld [vmem:[#allocation40_spill] sm:$0xff] }
 0x2be   : > { %2361 = vmatmul.f32.gmra.mxu2 %v2271_v42 }
 0x2c6   : > { %2364 = vmatmul.f32.gmra.mxu2 %v2272_v18 }
 0x2ce   : > { %2367 = vmatmul.f32.gmra.mxu2 %v2273_v52  ;;  %v2287_v52 = vmul.f32 %v7597_v38, %v7069_v35 }
 0x2d6   : > { %2370 = vmatmul.f32.gmra.mxu2 %v2274_v11 }
 0x2de   : > { %2373 = vmatmul.f32.gmra.mxu2 %v2275_v21 }
 0x2e6   : > { %2376 = vmatmul.f32.gmra.mxu2 %v2276_v40  ;;  %v2288_v40 = vmul.f32 %v7597_v38, %v7087_v47 }
 0x2ee   : > { %2379 = vmatmul.f32.gmra.mxu2 %v2277_v50 }
 0x2f6   : > { %2382 = vmatmul.f32.gmra.mxu2 %v2278_v53 }
 0x2fe   : > { %2385 = vmatmul.f32.gmra.mxu2 %v2279_v58  ;;  %v2289_v58 = vmul.f32 %v7597_v38, %v7071_v36  ;;  %v10151_v36 = vld [vmem:[#allocation37_spill] sm:$0xff] }
 0x2ff   : > { %v2310_v47 = vmul.f32 %v7597_v38, %v10151_v36 }
 0x306   : > { %2388 = vmatmul.f32.gmra.mxu2 %v2280_v61 }
 0x30e   : > { %2391 = vmatmul.f32.gmra.mxu2 %v2281_v7 }
 0x316   : > { %2394 = vmatmul.f32.gmra.mxu2 %v2282_v26  ;;  %v2290_v26 = vmul.f32 %v7597_v38, %v7078_v41  ;;  %v10148_v41 = vld [vmem:[#allocation39_spill] sm:$0xff] }
 0x319   : > { %v7633_v32 = vpop.f32.mrf.mxu2 }
 0x31a   : > { %10091 = vst [vmem:[#allocation58_spill] sm:$0xff] %v7633_v32  ;;  %v2539_v46 = vsel %vm10092_vm13, %v7633_v32, -inf  ;;  %vm10130_vm13 = vmmov %vm10100_vm1 }
 0x31b   : > { %2540 = vmax.xlane.f32.xlu0 %v2539_v46 }
 0x31e   : > { %2397 = vmatmul.f32.gmra.mxu2 %v2283_v48  ;;  %v2291_v48 = vmul.f32 %v7597_v38, %v7081_v43 }
 0x321   : > { %v7639_v62 = vpop.f32.mrf.mxu2 }
 0x322   : > { %10093 = vst [vmem:[#allocation59_spill] sm:$0xff] %v7639_v62  ;;  %v2542_v24 = vsel %vm10094_vm2, %v7639_v62, -inf  ;;  %vm10131_vm2 = vmmov %vm10100_vm1 }
 0x323   : > { %2543 = vmax.xlane.f32.xlu0 %v2542_v24 }
 0x326   : > { %2400 = vmatmul.f32.gmra.mxu2 %v2284_v37  ;;  %v2292_v37 = vmul.f32 %v7597_v38, %v7099_v55 }
 0x329   : > { %v7645_v22 = vpop.f32.mrf.mxu2 }
 0x32a   : > { %10095 = vst [vmem:[#allocation60_spill] sm:$0xff] %v7645_v22  ;;  %v2545_v54 = vsel %vm10096_vm5, %v7645_v22, -inf  ;;  %vm10134_vm5 = vmmov %vm10100_vm1 }
 0x32b   : > { %2546 = vmax.xlane.f32.xlu1 %v2545_v54 }
 0x32e   : > { %2403 = vmatmul.f32.gmra.mxu2 %v2285_v30  ;;  %v2293_v30 = vmul.f32 %v7597_v38, %v7083_v44 }
 0x331   : > { %v7651_v29 = vpop.f32.mrf.mxu2 }
 0x332   : > { %10097 = vst [vmem:[#allocation61_spill] sm:$0xff] %v7651_v29  ;;  %v2548_v14 = vsel %vm10098_vm14, %v7651_v29, -inf  ;;  %vm10135_vm14 = vmmov %vm10100_vm1 }
 0x333   : > { %2549 = vmax.xlane.f32.xlu1 %v2548_v14  ;;  %v2294_v14 = vmul.f32 %v7597_v38, %v7090_v49 }
 0x336   : > { %2406 = vmatmul.f32.gmra.mxu2 %v2286_v59 }
 0x339   : > { %v7657_v42 = vpop.f32.mrf.mxu2 }
 0x33a   : > { %10099 = vst [vmem:[#allocation62_spill] sm:$0xff] %v7657_v42  ;;  %v2551_v18 = vsel %vm10100_vm1, %v7657_v42, -inf }
 0x33b   : > { %2552 = vmax.xlane.f32.xlu2 %v2551_v18  ;;  %v2295_v18 = vmul.f32 %v7597_v38, %v7093_v51 }
 0x33e   : > { %2409 = vmatmul.f32.gmra.mxu2 %v2287_v52 }
 0x341   : > { %v7663_v11 = vpop.f32.mrf.mxu2 }
 0x342   : > { %10101 = vst [vmem:[#allocation63_spill] sm:$0xff] %v7663_v11  ;;  %v2554_v21 = vsel %vm10102_vm11, %v7663_v11, -inf  ;;  %vm10138_vm11 = vmmov %vm10100_vm1 }
 0x343   : > { %2555 = vmax.xlane.f32.xlu2 %v2554_v21  ;;  %v2296_v21 = vmul.f32 %v7597_v38, %v7111_v63 }
 0x346   : > { %2412 = vmatmul.f32.gmra.mxu2 %v2288_v40 }
 0x349   : > { %v7669_v50 = vpop.f32.mrf.mxu2 }
 0x34a   : > { %10103 = vst [vmem:[#allocation64_spill] sm:$0xff] %v7669_v50  ;;  %v2557_v53 = vsel %vm10104_vm10, %v7669_v50, -inf  ;;  %vm10141_vm10 = vmmov %vm10100_vm1 }
 0x34b   : > { %2558 = vmax.xlane.f32.xlu0 %v2557_v53  ;;  %v10113_v53 = vld [vmem:[#allocation23_spill] sm:$0xff] }
 0x34e   : > { %2415 = vmatmul.f32.gmra.mxu2 %v2289_v58  ;;  %v2297_v58 = vmul.f32 %v7597_v38, %v10113_v53 }
 0x351   : > { %v7675_v61 = vpop.f32.mrf.mxu2 }
 0x352   : > { %10105 = vst [vmem:[#allocation65_spill] sm:$0xff] %v7675_v61  ;;  %v2560_v7 = vsel %vm10106_vm7, %v7675_v61, -inf  ;;  %vm10142_vm7 = vmmov %vm10100_vm1 }
 0x353   : > { %2561 = vmax.xlane.f32.xlu2 %v2560_v7 }
 0x356   : > { %2418 = vmatmul.f32.gmra.mxu2 %v2290_v26 }
 0x359   : > { %v7681_v46 = vpop.f32.mrf.mxu2 }
 0x35a   : > { %10107 = vst [vmem:[#allocation66_spill] sm:$0xff] %v7681_v46 }
 0x35e   : > { %2421 = vmatmul.f32.gmra.mxu2 %v2291_v48 }
 0x361   : > { %v7685_v24 = vpop.f32.mrf.mxu2 }
 0x362   : > { %10108 = vst [vmem:[#allocation67_spill] sm:$0xff] %v7685_v24 }
 0x366   : > { %2424 = vmatmul.f32.gmra.mxu2 %v2292_v37 }
 0x369   : > { %v7689_v54 = vpop.f32.mrf.mxu2 }
 0x36a   : > { %10109 = vst [vmem:[#allocation68_spill] sm:$0xff] %v7689_v54 }
 0x36e   : > { %2427 = vmatmul.f32.gmra.mxu2 %v2293_v30  ;;  %v10115_v30 = vld [vmem:[#allocation25_spill] sm:$0xff] }
 0x371   : > { %v7695_v59 = vpop.f32.mrf.mxu2 }
 0x372   : > { %10110 = vst [vmem:[#allocation69_spill] sm:$0xff] %v7695_v59  ;;  %v2572_v44 = vsel %vm10131_vm2, %v7695_v59, -inf }
 0x376   : > { %2430 = vmatmul.f32.gmra.mxu2 %v2294_v14  ;;  %v2298_v14 = vmul.f32 %v7597_v38, %v10115_v30 }
 0x379   : > { %v7699_v52 = vpop.f32.mrf.mxu2 }
 0x37a   : > { %10111 = vst [vmem:[#allocation70_spill] sm:$0xff] %v7699_v52 }
 0x37e   : > { %2433 = vmatmul.f32.gmra.mxu2 %v2295_v18 }
 0x381   : > { %v7703_v40 = vpop.f32.mrf.mxu2 }
 0x382   : > { %10112 = vst [vmem:[#allocation71_spill] sm:$0xff] %v7703_v40 }
 0x386   : > { %2436 = vmatmul.f32.gmra.mxu2 %v2296_v21 }
 0x389   : > { %v7708_v37 = vpop.f32.mrf.mxu2 }
 0x38a   : > { %10114 = vst [vmem:[#allocation72_spill] sm:$0xff] %v7708_v37 }
 0x38e   : > { %v2541_v7 = vpop.xlane.xlu0 %2540  ;;  %2439 = vmatmul.f32.gmra.mxu2 %v2297_v58  ;;  %v10117_v58 = vld [vmem:[#allocation26_spill] sm:$0xff] }
 0x38f   : > { %v2731_v26 = vsub.f32 %v7633_v32, %v2541_v7  ;;  %v2299_v7 = vmul.f32 %v7597_v38, %v10117_v58 }
 0x391   : > { %v2795_v48 = vmul.f32 1.442695, %v2731_v26  ;;  %v7719_v26 = vpop.f32.mrf.mxu2 }
 0x392   : > { %10118 = vst [vmem:[#allocation73_spill] sm:$0xff] %v7719_v26 }
 0x393   : > { %5899 = vpow2.f32 %v2795_v48 }
 0x396   : > { %v2544_v18 = vpop.xlane.xlu0 %2543  ;;  %2442 = vmatmul.f32.gmra.mxu2 %v2298_v14 }
 0x397   : > { %v2732_v21 = vsub.f32 %v7639_v62, %v2544_v18  ;;  %v2563_v62 = vsel %vm10120_vm9, %v7681_v46, -inf  ;;  %vm10163_vm9 = vmmov %vm10100_vm1 }
 0x399   : > { %v7713_v63 = vpop.eup %5899  ;;  %v2797_v51 = vmul.f32 1.442695, %v2732_v21 }
 0x39a   : > { %v2923_v53 = vsel %vm10116_vm3, %v7713_v63, 0.0  ;;  %vm10145_vm3 = vmmov %vm10100_vm1 }
 0x39b   : > { %5901 = vpow2.f32 %v2797_v51  ;;  %2924 = vadd.xlane.f32.xlu1 %v2923_v53  ;;  %v10121_v51 = vld [vmem:[#allocation32_spill] sm:$0xff] }
 0x39c   : > { %v2300_v53 = vmul.f32 %v7597_v38, %v10121_v51 }
 0x39e   : > { %v2547_v48 = vpop.xlane.xlu1 %2546  ;;  %2445 = vmatmul.f32.gmra.mxu2 %v2299_v7  ;;  %v7730_v7 = vpop.f32.mrf.mxu2 }
 0x39f   : > { %v2733_v32 = vsub.f32 %v7645_v22, %v2547_v48  ;;  %10122 = vst [vmem:[#allocation74_spill] sm:$0xff] %v7730_v7 }
 0x3a1   : > { %v7722_v14 = vpop.eup %5901  ;;  %v2799_v18 = vmul.f32 1.442695, %v2733_v32 }
 0x3a2   : > { %v2926_v21 = vsel %vm10119_vm6, %v7722_v14, 0.0  ;;  %vm10160_vm6 = vmmov %vm10100_vm1 }
 0x3a3   : > { %5903 = vpow2.f32 %v2799_v18  ;;  %2927 = vadd.xlane.f32.xlu0 %v2926_v21  ;;  %2564 = vmax.xlane.f32.xlu1 %v2563_v62  ;;  %v2566_v18 = vsel %vm10124_vm15, %v7685_v24, -inf  ;;  %v10125_v62 = vld [vmem:[#allocation27_spill] sm:$0xff] }
 0x3a4   : > { %v2301_v21 = vmul.f32 %v7597_v38, %v10125_v62 }
 0x3a6   : > { %v2550_v58 = vpop.xlane.xlu1 %2549  ;;  %2448 = vmatmul.f32.gmra.mxu2 %v2300_v53 }
 0x3a7   : > { %v2734_v48 = vsub.f32 %v7651_v29, %v2550_v58  ;;  %v7744_v29 = vpop.f32.mrf.mxu2 }
 0x3a8   : > { %10126 = vst [vmem:[#allocation75_spill] sm:$0xff] %v7744_v29 }
 0x3a9   : > { %v7733_v22 = vpop.eup %5903  ;;  %v2801_v32 = vmul.f32 1.442695, %v2734_v48 }
 0x3aa   : > { %v2929_v30 = vsel %vm10123_vm12, %v7733_v22, 0.0 }
 0x3ab   : > { %5905 = vpow2.f32 %v2801_v32  ;;  %2930 = vadd.xlane.f32.xlu2 %v2929_v30  ;;  %2567 = vmax.xlane.f32.xlu0 %v2566_v18  ;;  %v2569_v32 = vsel %vm10128_vm8, %v7689_v54, -inf  ;;  %v10129_v30 = vld [vmem:[#allocation29_spill] sm:$0xff] }
 0x3ac   : > { %v2302_v18 = vmul.f32 %v7597_v38, %v10129_v30  ;;  %v2575_v30 = vsel %vm10135_vm14, %v7699_v52, -inf }
 0x3ae   : > { %v2553_v53 = vpop.xlane.xlu2 %2552  ;;  %2451 = vmatmul.f32.gmra.mxu2 %v2301_v21 }
 0x3af   : > { %v2735_v51 = vsub.f32 %v7657_v42, %v2553_v53  ;;  %v7759_v55 = vpop.f32.mrf.mxu2 }
 0x3b0   : > { %10132 = vst [vmem:[#allocation76_spill] sm:$0xff] %v7759_v55 }
 0x3b1   : > { %v7742_v58 = vpop.eup %5905  ;;  %v2803_v48 = vmul.f32 1.442695, %v2735_v51 }
 0x3b2   : > { %v2932_v49 = vsel %vm10127_vm4, %v7742_v58, 0.0 }
 0x3b3   : > { %5907 = vpow2.f32 %v2803_v48  ;;  %2933 = vadd.xlane.f32.xlu1 %v2932_v49  ;;  %2570 = vmax.xlane.f32.xlu2 %v2569_v32  ;;  %v10133_v49 = vld [vmem:[#allocation30_spill] sm:$0xff] }
 0x3b4   : > { %v2303_v48 = vmul.f32 %v7597_v38, %v10133_v49 }
 0x3b6   : > { %v2556_v21 = vpop.xlane.xlu2 %2555  ;;  %2454 = vmatmul.f32.gmra.mxu2 %v2302_v18 }
 0x3b7   : > { %v2736_v53 = vsub.f32 %v7663_v11, %v2556_v21 }
 0x3b9   : > { %v7753_v42 = vpop.eup %5907  ;;  %v2805_v62 = vmul.f32 1.442695, %v2736_v53 }
 0x3ba   : > { %v2935_v51 = vsel %vm10130_vm13, %v7753_v42, 0.0 }
 0x3bb   : > { %5909 = vpow2.f32 %v2805_v62  ;;  %2936 = vadd.xlane.f32.xlu0 %v2935_v51  ;;  %2573 = vmax.xlane.f32.xlu1 %v2572_v44  ;;  %v10136_v44 = vld [vmem:[#allocation36_spill] sm:$0xff]  ;;  %v7772_v51 = vpop.f32.mrf.mxu2 }
 0x3bc   : > { %v2304_v62 = vmul.f32 %v7597_v38, %v10136_v44  ;;  %10137 = vst [vmem:[#allocation77_spill] sm:$0xff] %v7772_v51 }
 0x3be   : > { %v2559_v32 = vpop.xlane.xlu0 %2558  ;;  %2457 = vmatmul.f32.gmra.mxu2 %v2303_v48 }
 0x3bf   : > { %v2737_v18 = vsub.f32 %v7669_v50, %v2559_v32 }
 0x3c1   : > { %v7764_v21 = vpop.eup %5909  ;;  %v2807_v53 = vmul.f32 1.442695, %v2737_v18 }
 0x3c2   : > { %v2938_v11 = vsel %vm10134_vm5, %v7764_v21, 0.0 }
 0x3c3   : > { %5911 = vpow2.f32 %v2807_v53  ;;  %2939 = vadd.xlane.f32.xlu2 %v2938_v11  ;;  %2576 = vmax.xlane.f32.xlu0 %v2575_v30  ;;  %v2578_v53 = vsel %vm10138_vm11, %v7703_v40, -inf  ;;  %v10139_v11 = vld [vmem:[#allocation31_spill] sm:$0xff]  ;;  %v7783_v44 = vpop.f32.mrf.mxu2 }
 0x3c4   : > { %v2305_v30 = vmul.f32 %v7597_v38, %v10139_v11  ;;  %10140 = vst [vmem:[#allocation78_spill] sm:$0xff] %v7783_v44 }
 0x3c6   : > { %v2562_v48 = vpop.xlane.xlu2 %2561  ;;  %2460 = vmatmul.f32.gmra.mxu2 %v2304_v62 }
 0x3c7   : > { %v2738_v32 = vsub.f32 %v7675_v61, %v2562_v48  ;;  %v10143_v61 = vld [vmem:[#allocation33_spill] sm:$0xff] }
 0x3c9   : > { %v7775_v50 = vpop.eup %5911  ;;  %v2809_v18 = vmul.f32 1.442695, %v2738_v32  ;;  %v2581_v32 = vsel %vm10142_vm7, %v7708_v37, -inf }
 0x3ca   : > { %v2941_v49 = vsel %vm10100_vm1, %v7775_v50, 0.0 }
 0x3cb   : > { %5913 = vpow2.f32 %v2809_v18  ;;  %2942 = vadd.xlane.f32.xlu1 %v2941_v49  ;;  %2579 = vmax.xlane.f32.xlu2 %v2578_v53  ;;  %v2306_v49 = vmul.f32 %v7597_v38, %v10143_v61  ;;  %v7793_v18 = vpop.f32.mrf.mxu2  ;;  %v2584_v53 = vsel %vm10145_vm3, %v7719_v26, -inf }
 0x3cc   : > { %10144 = vst [vmem:[#allocation79_spill] sm:$0xff] %v7793_v18 }
 0x3ce   : > { %2463 = vmatmul.f32.gmra.mxu2 %v2305_v30  ;;  %v10146_v30 = vld [vmem:[#allocation34_spill] sm:$0xff] }
 0x3cf   : > { %v2307_v11 = vmul.f32 %v7597_v38, %v10146_v30  ;;  %v10153_v30 = vld [vmem:[#allocation38_spill] sm:$0xff] }
 0x3d1   : > { %v7785_v62 = vpop.eup %5913 }
 0x3d2   : > { %v2944_v48 = vsel %vm10141_vm10, %v7785_v62, 0.0 }
 0x3d3   : > { %2945 = vadd.xlane.f32.xlu0 %v2944_v48  ;;  %2582 = vmax.xlane.f32.xlu1 %v2581_v32  ;;  %v7799_v43 = vpop.f32.mrf.mxu2  ;;  %v2308_v48 = vmul.f32 %v7597_v38, %v10148_v41  ;;  %v10149_v32 = vld [vmem:[#allocation35_spill] sm:$0xff] }
 0x3d4   : > { %10147 = vst [vmem:[#allocation80_spill] sm:$0xff] %v7799_v43  ;;  %v2309_v61 = vmul.f32 %v7597_v38, %v10149_v32  ;;  %v10155_v41 = vld [vmem:[#allocation43_spill] sm:$0xff] }
 0x3d6   : > { %2466 = vmatmul.f32.gmra.mxu2 %v2306_v49 }
 0x3db   : > { %2585 = vmax.xlane.f32.xlu0 %v2584_v53  ;;  %v7805_v49 = vpop.f32.mrf.mxu2 }
 0x3dc   : > { %10150 = vst [vmem:[#allocation81_spill] sm:$0xff] %v7805_v49 }
 0x3de   : > { %2469 = vmatmul.f32.gmra.mxu2 %v2307_v11  ;;  %v2311_v11 = vmul.f32 %v7597_v38, %v10153_v30 }
 0x3e3   : > { %v7809_v53 = vpop.f32.mrf.mxu2 }
 0x3e4   : > { %10152 = vst [vmem:[#allocation82_spill] sm:$0xff] %v7809_v53 }
 0x3e6   : > { %2472 = vmatmul.f32.gmra.mxu2 %v2308_v48  ;;  %v2312_v48 = vmul.f32 %v7597_v38, %v10155_v41 }
 0x3eb   : > { %v7813_v35 = vpop.f32.mrf.mxu2 }
 0x3ec   : > { %10154 = vst [vmem:[#allocation83_spill] sm:$0xff] %v7813_v35 }
 0x3ee   : > { %2475 = vmatmul.f32.gmra.mxu2 %v2309_v61  ;;  %v2313_v61 = vmul.f32 %v7597_v38, %v10157_v33 }
 0x3f3   : > { %v7817_v32 = vpop.f32.mrf.mxu2 }
 0x3f4   : > { %10156 = vst [vmem:[#allocation84_spill] sm:$0xff] %v7817_v32 }
 0x3f6   : > { %2478 = vmatmul.f32.gmra.mxu2 %v2310_v47  ;;  %v10158_v47 = vld [vmem:[#allocation41_spill] sm:$0xff] }
 0x3f7   : > { %v2314_v36 = vmul.f32 %v7597_v38, %v10158_v47 }
 0x3fb   : > { %v7823_v30 = vpop.f32.mrf.mxu2 }
 0x3fc   : > { %10159 = vst [vmem:[#allocation85_spill] sm:$0xff] %v7823_v30 }
 0x3fe   : > { %2481 = vmatmul.f32.gmra.mxu2 %v2311_v11 }
 0x406   : > { %2484 = vmatmul.f32.gmra.mxu2 %v2312_v48 }
 0x40e   : > { %v2925_v28 = vpop.xlane.xlu1 %2924  ;;  %2487 = vmatmul.f32.gmra.mxu2 %v2313_v61 }
 0x40f   : > { %5915 = vrcp.f32 %v2925_v28  ;;  %v10161_v28 = vld [vmem:[#allocation42_spill] sm:$0xff] }
 0x410   : > { %v2315_v61 = vmul.f32 %v7597_v38, %v10161_v28 }
 0x415   : > { %v5916_v39 = vpop.eup %5915 }
 0x416   : > { %v3179_v11 = vmul.f32 %v5916_v39, %v7713_v63  ;;  %v2928_v27 = vpop.xlane.xlu0 %2927  ;;  %v2565_v25 = vpop.xlane.xlu1 %2564  ;;  %2490 = vmatmul.f32.gmra.mxu2 %v2314_v36 }
 0x417   : > { %5917 = vrcp.f32 %v2928_v27  ;;  %v2739_v48 = vsub.f32 %v7681_v46, %v2565_v25  ;;  %v7834_v27 = vpop.f32.mrf.mxu2 }
 0x418   : > { %5670 = vmatmul.msk.f32.vlgmr.msra.gmra.mxu3 %vm10160_vm6, %v3179_v11  ;;  %10162 = vst [vmem:[#allocation86_spill] sm:$0xff] %v7834_v27 }
 0x419   : > { %v2811_v33 = vmul.f32 1.442695, %v2739_v48  ;;  %5849 = vmatpush.msk.msra.mxu3 %vm7435_vm0, %v10085_v57  ;;  %vm10164_vm0 = vmmov %vm10100_vm1  ;;  %v10165_v57 = vld [vmem:[#allocation46_spill] sm:$0xff] }
 0x41a   : > { %v2316_v11 = vmul.f32 %v7597_v38, %v10165_v57  ;;  %vm10166_vm12 = vmmov %vm10164_vm0 }
 0x41b   : > { %5919 = vpow2.f32 %v2811_v33  ;;  %vm10168_vm15 = vmmov %vm10164_vm0 }
 0x41c   : > { %vm10169_vm4 = vmmov %vm10164_vm0 }
 0x41d   : > { %v5918_v47 = vpop.eup %5917  ;;  %vm10171_vm8 = vmmov %vm10164_vm0 }
 0x41e   : > { %v2931_v41 = vpop.xlane.xlu2 %2930  ;;  %v2568_v39 = vpop.xlane.xlu0 %2567  ;;  %2493 = vmatmul.f32.gmra.mxu2 %v2315_v61  ;;  %v3180_v36 = vmul.f32 %v5918_v47, %v7722_v14  ;;  %vm10172_vm13 = vmmov %vm10164_vm0 }
 0x41f   : > { %5921 = vrcp.f32 %v2931_v41  ;;  %v2740_v25 = vsub.f32 %v7685_v24, %v2568_v39  ;;  %vm10173_vm2 = vmmov %vm10164_vm0 }
 0x420   : > { %5671 = vmatmul.msk.f32.gmra.mxu3 %vm10163_vm9, %v3180_v36  ;;  %v7849_v36 = vpop.f32.mrf.mxu2  ;;  %vm10176_vm5 = vmmov %vm10164_vm0 }
 0x421   : > { %v7838_v63 = vpop.eup %5919  ;;  %v2813_v16 = vmul.f32 1.442695, %v2740_v25  ;;  %10167 = vst [vmem:[#allocation87_spill] sm:$0xff] %v7849_v36  ;;  %vm10177_vm14 = vmmov %vm10164_vm0 }
 0x422   : > { %v2947_v33 = vsel %vm10164_vm0, %v7838_v63, 0.0  ;;  %vm10178_vm1 = vmmov %vm10164_vm0 }
 0x423   : > { %5923 = vpow2.f32 %v2813_v16  ;;  %2948 = vadd.xlane.f32.xlu2 %v2947_v33  ;;  %v2587_v33 = vsel %vm10169_vm4, %v7730_v7, -inf  ;;  %vm10181_vm11 = vmmov %vm10164_vm0 }
 0x424   : > { %vm10182_vm10 = vmmov %vm10164_vm0 }
 0x425   : > { %v5922_v48 = vpop.eup %5921  ;;  %vm10183_vm7 = vmmov %vm10164_vm0 }
 0x426   : > { %v2934_v14 = vpop.xlane.xlu1 %2933  ;;  %v2571_v47 = vpop.xlane.xlu2 %2570  ;;  %2496 = vmatmul.f32.gmra.mxu2 %v2316_v11  ;;  %v3181_v41 = vmul.f32 %v5922_v48, %v7733_v22  ;;  %v10170_v22 = vld [vmem:[#allocation44_spill] sm:$0xff]  ;;  %vm10185_vm3 = vmmov %vm10164_vm0 }
 0x427   : > { %5925 = vrcp.f32 %v2934_v14  ;;  %v2741_v61 = vsub.f32 %v7689_v54, %v2571_v47  ;;  %v2317_v11 = vmul.f32 %v7597_v38, %v10170_v22  ;;  %vm10186_vm6 = vmmov %vm10164_vm0 }
 0x428   : > { %5672 = vmatmul.msk.f32.gmra.mxu3 %vm10166_vm12, %v3181_v41  ;;  %vm10187_vm9 = vmmov %vm10164_vm0 }
 0x429   : > { %v7847_v39 = vpop.eup %5923  ;;  %v2815_v25 = vmul.f32 1.442695, %v2741_v61  ;;  %vm10190_vm12 = vmmov %vm10164_vm0 }
 0x42a   : > { %v2950_v16 = vsel %vm10168_vm15, %v7847_v39, 0.0  ;;  %vm10191_vm15 = vmmov %vm10164_vm0 }
 0x42b   : > { %5927 = vpow2.f32 %v2815_v25  ;;  %2951 = vadd.xlane.f32.xlu1 %v2950_v16  ;;  %2588 = vmax.xlane.f32.xlu2 %v2587_v33  ;;  %v2590_v16 = vsel %vm10173_vm2, %v7744_v29, -inf  ;;  %v7866_v33 = vpop.f32.mrf.mxu2  ;;  %vm10193_vm4 = vmmov %vm10164_vm0 }
 0x42c   : > { %10174 = vst [vmem:[#allocation88_spill] sm:$0xff] %v7866_v33  ;;  %vm10204_vm2 = vmmov %vm10164_vm0 }
 0x42d   : > { %v5926_v48 = vpop.eup %5925 }
 0x42e   : > { %v2937_v14 = vpop.xlane.xlu0 %2936  ;;  %v2574_v47 = vpop.xlane.xlu1 %2573  ;;  %2499 = vmatmul.f32.gmra.mxu2 %v2317_v11  ;;  %v3182_v41 = vmul.f32 %v5926_v48, %v7742_v58  ;;  %v10175_v58 = vld [vmem:[#allocation45_spill] sm:$0xff] }
 0x42f   : > { %5929 = vrcp.f32 %v2937_v14  ;;  %v2742_v61 = vsub.f32 %v7695_v59, %v2574_v47  ;;  %v2318_v11 = vmul.f32 %v7597_v38, %v10175_v58 }
 0x430   : > { %5673 = vmatmul.msk.f32.gmra.mxu3 %vm10171_vm8, %v3182_v41  ;;  %vm10194_vm8 = vmmov %vm10164_vm0 }
 0x431   : > { %v7860_v54 = vpop.eup %5927  ;;  %v2817_v24 = vmul.f32 1.442695, %v2742_v61 }
 0x432   : > { %v2953_v25 = vsel %vm10172_vm13, %v7860_v54, 0.0  ;;  %vm10197_vm13 = vmmov %vm10164_vm0 }
 0x433   : > { %5931 = vpow2.f32 %v2817_v24  ;;  %2954 = vadd.xlane.f32.xlu0 %v2953_v25  ;;  %2591 = vmax.xlane.f32.xlu1 %v2590_v16  ;;  %v2593_v25 = vsel %vm10178_vm1, %v7759_v55, -inf  ;;  %v10179_v16 = vld [vmem:[#allocation47_spill] sm:$0xff]  ;;  %vm10207_vm1 = vmmov %vm10164_vm0 }
 0x435   : > { %v5930_v48 = vpop.eup %5929 }
 0x436   : > { %v2940_v14 = vpop.xlane.xlu2 %2939  ;;  %v2577_v47 = vpop.xlane.xlu0 %2576  ;;  %2502 = vmatmul.f32.gmra.mxu2 %v2318_v11  ;;  %v3183_v41 = vmul.f32 %v5930_v48, %v7753_v42  ;;  %v2319_v42 = vmul.f32 %v7597_v38, %v10179_v16 }
 0x437   : > { %5933 = vrcp.f32 %v2940_v14  ;;  %v2743_v61 = vsub.f32 %v7699_v52, %v2577_v47  ;;  %v7881_v48 = vpop.f32.mrf.mxu2 }
 0x438   : > { %5674 = vmatmul.msk.f32.gmra.mxu3 %vm10176_vm5, %v3183_v41  ;;  %10180 = vst [vmem:[#allocation89_spill] sm:$0xff] %v7881_v48  ;;  %vm10205_vm5 = vmmov %vm10164_vm0 }
 0x439   : > { %v7873_v59 = vpop.eup %5931  ;;  %v2819_v46 = vmul.f32 1.442695, %v2743_v61 }
 0x43a   : > { %v2956_v24 = vsel %vm10177_vm14, %v7873_v59, 0.0  ;;  %vm10206_vm14 = vmmov %vm10164_vm0 }
 0x43b   : > { %5935 = vpow2.f32 %v2819_v46  ;;  %2957 = vadd.xlane.f32.xlu2 %v2956_v24  ;;  %2594 = vmax.xlane.f32.xlu0 %v2593_v25  ;;  %v2596_v25 = vsel %vm10183_vm7, %v7772_v51, -inf  ;;  %vm10210_vm7 = vmmov %vm10164_vm0 }
 0x43d   : > { %v5934_v11 = vpop.eup %5933 }
 0x43e   : > { %v2943_v14 = vpop.xlane.xlu1 %2942  ;;  %v2580_v47 = vpop.xlane.xlu2 %2579  ;;  %2505 = vmatmul.f32.gmra.mxu2 %v2319_v42  ;;  %v3184_v41 = vmul.f32 %v5934_v11, %v7764_v21  ;;  %v2320_v21 = vmul.f32 %v7597_v38, %v7399_v34 }
 0x43f   : > { %5937 = vrcp.f32 %v2943_v14  ;;  %v2744_v61 = vsub.f32 %v7703_v40, %v2580_v47 }
 0x440   : > { %5675 = vmatmul.msk.f32.gmra.mxu3 %vm10181_vm11, %v3184_v41  ;;  %vm10208_vm11 = vmmov %vm10164_vm0 }
 0x441   : > { %v7886_v52 = vpop.eup %5935  ;;  %v2821_v46 = vmul.f32 1.442695, %v2744_v61  ;;  %v7896_v61 = vpop.f32.mrf.mxu2 }
 0x442   : > { %v2959_v24 = vsel %vm10182_vm10, %v7886_v52, 0.0  ;;  %10184 = vst [vmem:[#allocation90_spill] sm:$0xff] %v7896_v61  ;;  %vm10209_vm10 = vmmov %vm10164_vm0 }
 0x443   : > { %5939 = vpow2.f32 %v2821_v46  ;;  %2960 = vadd.xlane.f32.xlu1 %v2959_v24  ;;  %2597 = vmax.xlane.f32.xlu2 %v2596_v25  ;;  %v2599_v25 = vsel %vm10187_vm9, %v7783_v44, -inf  ;;  %vm10213_vm9 = vmmov %vm10164_vm0 }
 0x445   : > { %v5938_v42 = vpop.eup %5937 }
 0x446   : > { %v2946_v11 = vpop.xlane.xlu0 %2945  ;;  %v2583_v14 = vpop.xlane.xlu1 %2582  ;;  %2508 = vmatmul.f32.gmra.mxu2 %v2320_v21  ;;  %v3185_v47 = vmul.f32 %v5938_v42, %v7775_v50  ;;  %v10188_v50 = vld [vmem:[#allocation48_spill] sm:$0xff] }
 0x447   : > { %5941 = vrcp.f32 %v2946_v11  ;;  %v2745_v41 = vsub.f32 %v7708_v37, %v2583_v14  ;;  %v2321_v21 = vmul.f32 %v7597_v38, %v10188_v50 }
 0x448   : > { %5676 = vmatmul.msk.f32.gmra.mxu3 %vm10185_vm3, %v3185_v47  ;;  %vm10211_vm3 = vmmov %vm10164_vm0 }
 0x449   : > { %v7899_v40 = vpop.eup %5939  ;;  %v2823_v46 = vmul.f32 1.442695, %v2745_v41  ;;  %v7912_v34 = vpop.f32.mrf.mxu2 }
 0x44a   : > { %v2962_v24 = vsel %vm10186_vm6, %v7899_v40, 0.0  ;;  %10189 = vst [vmem:[#allocation91_spill] sm:$0xff] %v7912_v34  ;;  %vm10212_vm6 = vmmov %vm10164_vm0 }
 0x44b   : > { %5943 = vpow2.f32 %v2823_v46  ;;  %2963 = vadd.xlane.f32.xlu0 %v2962_v24  ;;  %2600 = vmax.xlane.f32.xlu1 %v2599_v25  ;;  %v2602_v24 = vsel %vm10191_vm15, %v7793_v18, -inf  ;;  %v10192_v25 = vld [vmem:[#allocation50_spill] sm:$0xff]  ;;  %vm10215_vm15 = vmmov %vm10164_vm0 }
 0x44d   : > { %v5942_v42 = vpop.eup %5941 }
 0x44e   : > { %v2586_v11 = vpop.xlane.xlu0 %2585  ;;  %2511 = vmatmul.f32.gmra.mxu2 %v2321_v21  ;;  %v3186_v14 = vmul.f32 %v5942_v42, %v7785_v62  ;;  %v2322_v62 = vmul.f32 %v7597_v38, %v10192_v25 }
 0x44f   : > { %v2746_v47 = vsub.f32 %v7719_v26, %v2586_v11  ;;  %v2605_v11 = vsel %vm10194_vm8, %v7799_v43, -inf  ;;  %v2326_v26 = vmul.f32 %v7597_v38, %v7414_v56  ;;  %vm10217_vm8 = vmmov %vm10164_vm0 }
 0x450   : > { %5677 = vmatmul.msk.f32.gmra.mxu3 %vm10164_vm0, %v3186_v14 }
 0x451   : > { %v7910_v41 = vpop.eup %5943  ;;  %v2825_v37 = vmul.f32 1.442695, %v2746_v47  ;;  %v7926_v14 = vpop.f32.mrf.mxu2  ;;  %v10196_v47 = vld [vmem:[#allocation51_spill] sm:$0xff] }
 0x452   : > { %v2965_v46 = vsel %vm10190_vm12, %v7910_v41, 0.0  ;;  %10195 = vst [vmem:[#allocation92_spill] sm:$0xff] %v7926_v14  ;;  %vm10214_vm12 = vmmov %vm10164_vm0 }
 0x453   : > { %5945 = vpow2.f32 %v2825_v37  ;;  %2966 = vadd.xlane.f32.xlu2 %v2965_v46  ;;  %2603 = vmax.xlane.f32.xlu0 %v2602_v24  ;;  %v2323_v37 = vmul.f32 %v7597_v38, %v10196_v47  ;;  %v2608_v46 = vsel %vm10197_vm13, %v7805_v49, -inf  ;;  %v2324_v24 = vmul.f32 %v7597_v38, %v7411_v9  ;;  %v10201_v47 = vld [vmem:[#allocation55_spill] sm:$0xff]  ;;  %vm10218_vm13 = vmmov %vm10164_vm0 }
 0x456   : > { %2514 = vmatmul.f32.gmra.mxu2 %v2322_v62 }
 0x459   : > { %v7920_v21 = vpop.eup %5945  ;;  %v7934_v62 = vpop.f32.mrf.mxu2 }
 0x45a   : > { %v2968_v42 = vsel %vm10193_vm4, %v7920_v21, 0.0  ;;  %10198 = vst [vmem:[#allocation93_spill] sm:$0xff] %v7934_v62  ;;  %vm10216_vm4 = vmmov %vm10164_vm0 }
 0x45b   : > { %2969 = vadd.xlane.f32.xlu1 %v2968_v42  ;;  %2606 = vmax.xlane.f32.xlu2 %v2605_v11  ;;  %v2325_v42 = vmul.f32 %v7597_v38, %v7408_v4 }
 0x45e   : > { %2517 = vmatmul.f32.gmra.mxu2 %v2323_v37 }
 0x461   : > { %v7938_v11 = vpop.f32.mrf.mxu2 }
 0x462   : > { %10199 = vst [vmem:[#allocation94_spill] sm:$0xff] %v7938_v11 }
 0x463   : > { %2609 = vmax.xlane.f32.xlu1 %v2608_v46  ;;  %v2327_v46 = vmul.f32 %v7597_v38, %v10201_v47 }
 0x466   : > { %2520 = vmatmul.f32.gmra.mxu2 %v2324_v24  ;;  %v2328_v24 = vmul.f32 %v7597_v38, %v7421_v60 }
 0x469   : > { %v7942_v37 = vpop.f32.mrf.mxu2 }
 0x46a   : > { %10200 = vst [vmem:[#allocation95_spill] sm:$0xff] %v7942_v37 }
 0x46e   : > { %2523 = vmatmul.f32.gmra.mxu2 %v2325_v42  ;;  %v2329_v42 = vmul.f32 %v7597_v38, %v7423_v45 }
 0x471   : > { %v7946_v9 = vpop.f32.mrf.mxu2 }
 0x472   : > { %10202 = vst [vmem:[#allocation96_spill] sm:$0xff] %v7946_v9 }
 0x476   : > { %2526 = vmatmul.f32.gmra.mxu2 %v2326_v26 }
 0x479   : > { %v7952_v4 = vpop.f32.mrf.mxu2 }
 0x47a   : > { %10203 = vst [vmem:[#allocation97_spill] sm:$0xff] %v7952_v4 }
 0x47e   : > { %2529 = vmatmul.f32.gmra.mxu2 %v2327_v46 }
 0x486   : > { %2532 = vmatmul.f32.gmra.mxu2 %v2328_v24 }
 0x48e   : > { %2535 = vmatmul.f32.gmra.mxu2 %v2329_v42 }
 0x496   : > { %v2949_v56 = vpop.xlane.xlu2 %2948 }
 0x497   : > { %5947 = vrcp.f32 %v2949_v56 }
 0x49d   : > { %v5948_v26 = vpop.eup %5947 }
 0x49e   : > { %v2952_v25 = vpop.xlane.xlu1 %2951  ;;  %v2589_v50 = vpop.xlane.xlu2 %2588  ;;  %v3187_v47 = vmul.f32 %v5948_v26, %v7838_v63 }
 0x49f   : > { %5949 = vrcp.f32 %v2952_v25  ;;  %v2747_v46 = vsub.f32 %v7730_v7, %v2589_v50 }
 0x4a0   : > { %5678 = vmatmul.msk.f32.gmra.mxu3 %vm10204_vm2, %v3187_v47  ;;  %vm10219_vm2 = vmmov %vm10164_vm0 }
 0x4a1   : > { %v2827_v60 = vmul.f32 1.442695, %v2747_v46 }
 0x4a3   : > { %5951 = vpow2.f32 %v2827_v60 }
 0x4a5   : > { %v5950_v24 = vpop.eup %5949 }
 0x4a6   : > { %v2955_v16 = vpop.xlane.xlu0 %2954  ;;  %v2592_v38 = vpop.xlane.xlu1 %2591  ;;  %v3188_v45 = vmul.f32 %v5950_v24, %v7847_v39  ;;  %v2611_v24 = vsel %vm10209_vm10, %v7809_v53, -inf  ;;  %vm10224_vm10 = vmmov %vm10164_vm0 }
 0x4a7   : > { %5953 = vrcp.f32 %v2955_v16  ;;  %v2748_v56 = vsub.f32 %v7744_v29, %v2592_v38 }
 0x4a8   : > { %5679 = vmatmul.msk.f32.gmra.mxu3 %vm10205_vm5, %v3188_v45  ;;  %vm10220_vm5 = vmmov %vm10164_vm0 }
 0x4a9   : > { %v7960_v42 = vpop.eup %5951  ;;  %v2829_v63 = vmul.f32 1.442695, %v2748_v56 }
 0x4aa   : > { %v2971_v50 = vsel %vm10206_vm14, %v7960_v42, 0.0  ;;  %vm10221_vm14 = vmmov %vm10164_vm0 }
 0x4ab   : > { %5955 = vpow2.f32 %v2829_v63  ;;  %2972 = vadd.xlane.f32.xlu0 %v2971_v50 }
 0x4ad   : > { %v5954_v25 = vpop.eup %5953 }
 0x4ae   : > { %v2958_v60 = vpop.xlane.xlu2 %2957  ;;  %v2595_v47 = vpop.xlane.xlu0 %2594  ;;  %v3189_v26 = vmul.f32 %v5954_v25, %v7860_v54 }
 0x4af   : > { %5957 = vrcp.f32 %v2958_v60  ;;  %v2749_v39 = vsub.f32 %v7759_v55, %v2595_v47 }
 0x4b0   : > { %5680 = vmatmul.msk.f32.gmra.mxu3 %vm10207_vm1, %v3189_v26  ;;  %v2614_v26 = vsel %vm10212_vm6, %v7813_v35, -inf  ;;  %vm10222_vm1 = vmmov %vm10164_vm0 }
 0x4b1   : > { %v7967_v16 = vpop.eup %5955  ;;  %v2831_v45 = vmul.f32 1.442695, %v2749_v39  ;;  %vm10227_vm6 = vmmov %vm10164_vm0 }
 0x4b2   : > { %v2974_v46 = vsel %vm10208_vm11, %v7967_v16, 0.0  ;;  %vm10223_vm11 = vmmov %vm10164_vm0 }
 0x4b3   : > { %5959 = vpow2.f32 %v2831_v45  ;;  %2975 = vadd.xlane.f32.xlu2 %v2974_v46  ;;  %2612 = vmax.xlane.f32.xlu0 %v2611_v24 }
 0x4b5   : > { %v5958_v38 = vpop.eup %5957 }
 0x4b6   : > { %v2961_v56 = vpop.xlane.xlu1 %2960  ;;  %v2598_v54 = vpop.xlane.xlu2 %2597  ;;  %v3190_v63 = vmul.f32 %v5958_v38, %v7873_v59 }
 0x4b7   : > { %5961 = vrcp.f32 %v2961_v56  ;;  %v2750_v50 = vsub.f32 %v7772_v51, %v2598_v54 }
 0x4b8   : > { %5681 = vmatmul.msk.f32.gmra.mxu3 %vm10210_vm7, %v3190_v63  ;;  %v2617_v63 = vsel %vm10214_vm12, %v7817_v32, -inf  ;;  %vm10225_vm7 = vmmov %vm10164_vm0 }
 0x4b9   : > { %v7976_v25 = vpop.eup %5959  ;;  %v2833_v60 = vmul.f32 1.442695, %v2750_v50  ;;  %vm10229_vm12 = vmmov %vm10164_vm0 }
 0x4ba   : > { %v2977_v47 = vsel %vm10211_vm3, %v7976_v25, 0.0  ;;  %vm10226_vm3 = vmmov %vm10164_vm0 }
 0x4bb   : > { %5963 = vpow2.f32 %v2833_v60  ;;  %2978 = vadd.xlane.f32.xlu1 %v2977_v47  ;;  %2615 = vmax.xlane.f32.xlu2 %v2614_v26 }
 0x4bd   : > { %v5962_v39 = vpop.eup %5961 }
 0x4be   : > { %v2964_v45 = vpop.xlane.xlu0 %2963  ;;  %v2601_v59 = vpop.xlane.xlu1 %2600  ;;  %v3191_v46 = vmul.f32 %v5962_v39, %v7886_v52 }
 0x4bf   : > { %5965 = vrcp.f32 %v2964_v45  ;;  %v2751_v24 = vsub.f32 %v7783_v44, %v2601_v59 }
 0x4c0   : > { %5682 = vmatmul.msk.f32.gmra.mxu3 %vm10213_vm9, %v3191_v46  ;;  %v2620_v46 = vsel %vm10217_vm8, %v7823_v30, -inf  ;;  %vm10228_vm9 = vmmov %vm10164_vm0 }
 0x4c1   : > { %v7985_v38 = vpop.eup %5963  ;;  %v2835_v56 = vmul.f32 1.442695, %v2751_v24  ;;  %vm10232_vm8 = vmmov %vm10164_vm0 }
 0x4c2   : > { %v2980_v54 = vsel %vm10164_vm0, %v7985_v38, 0.0 }
 0x4c3   : > { %5967 = vpow2.f32 %v2835_v56  ;;  %2981 = vadd.xlane.f32.xlu0 %v2980_v54  ;;  %2618 = vmax.xlane.f32.xlu1 %v2617_v63 }
 0x4c5   : > { %v5966_v50 = vpop.eup %5965 }
 0x4c6   : > { %v2967_v60 = vpop.xlane.xlu2 %2966  ;;  %v2604_v52 = vpop.xlane.xlu0 %2603  ;;  %v3192_v47 = vmul.f32 %v5966_v50, %v7899_v40 }
 0x4c7   : > { %5969 = vrcp.f32 %v2967_v60  ;;  %v2752_v26 = vsub.f32 %v7793_v18, %v2604_v52 }
 0x4c8   : > { %5683 = vmatmul.msk.f32.gmra.mxu3 %vm10215_vm15, %v3192_v47  ;;  %v2623_v47 = vsel %vm10220_vm5, %v7834_v27, -inf  ;;  %vm10230_vm15 = vmmov %vm10164_vm0 }
 0x4c9   : > { %v7994_v39 = vpop.eup %5967  ;;  %v2837_v45 = vmul.f32 1.442695, %v2752_v26  ;;  %vm10235_vm5 = vmmov %vm10164_vm0 }
 0x4ca   : > { %v2983_v59 = vsel %vm10216_vm4, %v7994_v39, 0.0  ;;  %vm10231_vm4 = vmmov %vm10164_vm0 }
 0x4cb   : > { %5971 = vpow2.f32 %v2837_v45  ;;  %2984 = vadd.xlane.f32.xlu2 %v2983_v59  ;;  %2621 = vmax.xlane.f32.xlu0 %v2620_v46 }
 0x4cd   : > { %v5970_v24 = vpop.eup %5969 }
 0x4ce   : > { %v2970_v56 = vpop.xlane.xlu1 %2969  ;;  %v2607_v40 = vpop.xlane.xlu2 %2606  ;;  %v3193_v54 = vmul.f32 %v5970_v24, %v7910_v41 }
 0x4cf   : > { %5973 = vrcp.f32 %v2970_v56  ;;  %v2753_v63 = vsub.f32 %v7799_v43, %v2607_v40  ;;  %v2626_v40 = vsel %vm10223_vm11, %v7849_v36, -inf  ;;  %vm10238_vm11 = vmmov %vm10164_vm0 }
 0x4d0   : > { %5684 = vmatmul.msk.f32.gmra.mxu3 %vm10218_vm13, %v3193_v54  ;;  %vm10233_vm13 = vmmov %vm10164_vm0 }
 0x4d1   : > { %v8003_v50 = vpop.eup %5971  ;;  %v2839_v60 = vmul.f32 1.442695, %v2753_v63  ;;  %v2629_v63 = vsel %vm10225_vm7, %v7866_v33, -inf  ;;  %vm10240_vm7 = vmmov %vm10164_vm0 }
 0x4d2   : > { %v2986_v52 = vsel %vm10219_vm2, %v8003_v50, 0.0  ;;  %vm10234_vm2 = vmmov %vm10164_vm0 }
 0x4d3   : > { %5975 = vpow2.f32 %v2839_v60  ;;  %2987 = vadd.xlane.f32.xlu1 %v2986_v52  ;;  %2624 = vmax.xlane.f32.xlu2 %v2623_v47  ;;  %v2632_v60 = vsel %vm10226_vm3, %v7881_v48, -inf  ;;  %vm10241_vm3 = vmmov %vm10164_vm0 }
 0x4d5   : > { %v5974_v26 = vpop.eup %5973 }
 0x4d6   : > { %v2610_v45 = vpop.xlane.xlu1 %2609  ;;  %v3194_v41 = vmul.f32 %v5974_v26, %v7920_v21 }
 0x4d7   : > { %v2754_v59 = vsub.f32 %v7805_v49, %v2610_v45 }
 0x4d8   : > { %5685 = vmatmul.msk.f32.gmra.mxu3 %vm10221_vm14, %v3194_v41  ;;  %vm10236_vm14 = vmmov %vm10164_vm0 }
 0x4d9   : > { %v8012_v46 = vpop.eup %5975  ;;  %v2841_v24 = vmul.f32 1.442695, %v2754_v59 }
 0x4da   : > { %v2989_v56 = vsel %vm10222_vm1, %v8012_v46, 0.0  ;;  %vm10237_vm1 = vmmov %vm10164_vm0 }
 0x4db   : > { %5977 = vpow2.f32 %v2841_v24  ;;  %2990 = vadd.xlane.f32.xlu0 %v2989_v56  ;;  %2627 = vmax.xlane.f32.xlu1 %v2626_v40 }
 0x4e1   : > { %v8018_v54 = vpop.eup %5977 }
 0x4e2   : > { %v2992_v21 = vsel %vm10224_vm10, %v8018_v54, 0.0  ;;  %vm10239_vm10 = vmmov %vm10164_vm0 }
 0x4e3   : > { %2993 = vadd.xlane.f32.xlu2 %v2992_v21  ;;  %2630 = vmax.xlane.f32.xlu0 %v2629_v63 }
 0x4eb   : > { %2633 = vmax.xlane.f32.xlu2 %v2632_v60 }
 0x51e   : > { %v2973_v52 = vpop.xlane.xlu0 %2972 }
 0x51f   : > { %5979 = vrcp.f32 %v2973_v52 }
 0x525   : > { %v5980_v47 = vpop.eup %5979 }
 0x526   : > { %v2976_v26 = vpop.xlane.xlu2 %2975  ;;  %v2613_v45 = vpop.xlane.xlu0 %2612  ;;  %v3195_v41 = vmul.f32 %v5980_v47, %v7960_v42 }
 0x527   : > { %5981 = vrcp.f32 %v2976_v26  ;;  %v2755_v59 = vsub.f32 %v7809_v53, %v2613_v45 }
 0x528   : > { %5686 = vmatmul.msk.f32.gmra.mxu3 %vm10227_vm6, %v3195_v41  ;;  %vm10242_vm6 = vmmov %vm10164_vm0 }
 0x529   : > { %v2843_v24 = vmul.f32 1.442695, %v2755_v59 }
 0x52b   : > { %5983 = vpow2.f32 %v2843_v24 }
 0x52d   : > { %v5982_v56 = vpop.eup %5981 }
 0x52e   : > { %v2979_v40 = vpop.xlane.xlu1 %2978  ;;  %v2616_v21 = vpop.xlane.xlu2 %2615  ;;  %v3196_v63 = vmul.f32 %v5982_v56, %v7967_v16 }
 0x52f   : > { %5985 = vrcp.f32 %v2979_v40  ;;  %v2756_v60 = vsub.f32 %v7813_v35, %v2616_v21  ;;  %v2635_v21 = vsel %vm10231_vm4, %v7896_v61, -inf  ;;  %vm10246_vm4 = vmmov %vm10164_vm0 }
 0x530   : > { %5687 = vmatmul.msk.f32.gmra.mxu3 %vm10228_vm9, %v3196_v63  ;;  %vm10243_vm9 = vmmov %vm10164_vm0 }
 0x531   : > { %v8032_v52 = vpop.eup %5983  ;;  %v2845_v42 = vmul.f32 1.442695, %v2756_v60 }
 0x532   : > { %v2995_v47 = vsel %vm10164_vm0, %v8032_v52, 0.0 }
 0x533   : > { %5987 = vpow2.f32 %v2845_v42  ;;  %2996 = vadd.xlane.f32.xlu1 %v2995_v47 }
 0x535   : > { %v5986_v26 = vpop.eup %5985 }
 0x536   : > { %v2982_v45 = vpop.xlane.xlu0 %2981  ;;  %v2619_v41 = vpop.xlane.xlu1 %2618  ;;  %v3197_v59 = vmul.f32 %v5986_v26, %v7976_v25 }
 0x537   : > { %5989 = vrcp.f32 %v2982_v45  ;;  %v2757_v16 = vsub.f32 %v7817_v32, %v2619_v41 }
 0x538   : > { %5688 = vmatmul.msk.f32.gmra.mxu3 %vm10229_vm12, %v3197_v59  ;;  %v2638_v59 = vsel %vm10234_vm2, %v7912_v34, -inf  ;;  %vm10244_vm12 = vmmov %vm10164_vm0 }
 0x539   : > { %v8039_v24 = vpop.eup %5987  ;;  %v2847_v56 = vmul.f32 1.442695, %v2757_v16  ;;  %vm10249_vm2 = vmmov %vm10164_vm0 }
 0x53a   : > { %v2998_v40 = vsel %vm10230_vm15, %v8039_v24, 0.0  ;;  %vm10245_vm15 = vmmov %vm10164_vm0 }
 0x53b   : > { %5991 = vpow2.f32 %v2847_v56  ;;  %2999 = vadd.xlane.f32.xlu0 %v2998_v40  ;;  %2636 = vmax.xlane.f32.xlu1 %v2635_v21 }
 0x53d   : > { %v5990_v63 = vpop.eup %5989 }
 0x53e   : > { %v2985_v60 = vpop.xlane.xlu2 %2984  ;;  %v2622_v25 = vpop.xlane.xlu0 %2621  ;;  %v3198_v42 = vmul.f32 %v5990_v63, %v7985_v38 }
 0x53f   : > { %5993 = vrcp.f32 %v2985_v60  ;;  %v2758_v47 = vsub.f32 %v7823_v30, %v2622_v25 }
 0x540   : > { %5689 = vmatmul.msk.f32.gmra.mxu3 %vm10232_vm8, %v3198_v42  ;;  %v2641_v42 = vsel %vm10237_vm1, %v7926_v14, -inf  ;;  %vm10247_vm8 = vmmov %vm10164_vm0 }
 0x541   : > { %v8048_v26 = vpop.eup %5991  ;;  %v2849_v45 = vmul.f32 1.442695, %v2758_v47  ;;  %vm10254_vm1 = vmmov %vm10164_vm0 }
 0x542   : > { %v3001_v41 = vsel %vm10233_vm13, %v8048_v26, 0.0  ;;  %vm10248_vm13 = vmmov %vm10164_vm0 }
 0x543   : > { %5995 = vpow2.f32 %v2849_v45  ;;  %3002 = vadd.xlane.f32.xlu2 %v3001_v41  ;;  %2639 = vmax.xlane.f32.xlu0 %v2638_v59 }
 0x545   : > { %v5994_v16 = vpop.eup %5993 }
 0x546   : > { %v2988_v56 = vpop.xlane.xlu1 %2987  ;;  %v2625_v38 = vpop.xlane.xlu2 %2624  ;;  %v3199_v40 = vmul.f32 %v5994_v16, %v7994_v39 }
 0x547   : > { %5997 = vrcp.f32 %v2988_v56  ;;  %v2759_v21 = vsub.f32 %v7834_v27, %v2625_v38 }
 0x548   : > { %5690 = vmatmul.msk.f32.gmra.mxu3 %vm10235_vm5, %v3199_v40  ;;  %v2644_v40 = vsel %vm10240_vm7, %v7934_v62, -inf  ;;  %vm10251_vm5 = vmmov %vm10164_vm0 }
 0x549   : > { %v8057_v63 = vpop.eup %5995  ;;  %v2851_v60 = vmul.f32 1.442695, %v2759_v21  ;;  %vm10258_vm7 = vmmov %vm10164_vm0 }
 0x54a   : > { %v3004_v25 = vsel %vm10236_vm14, %v8057_v63, 0.0  ;;  %vm10252_vm14 = vmmov %vm10164_vm0 }
 0x54b   : > { %5999 = vpow2.f32 %v2851_v60  ;;  %3005 = vadd.xlane.f32.xlu1 %v3004_v25  ;;  %2642 = vmax.xlane.f32.xlu2 %v2641_v42 }
 0x54d   : > { %v5998_v47 = vpop.eup %5997 }
 0x54e   : > { %v2991_v45 = vpop.xlane.xlu0 %2990  ;;  %v2628_v39 = vpop.xlane.xlu1 %2627  ;;  %v3200_v41 = vmul.f32 %v5998_v47, %v8003_v50 }
 0x54f   : > { %6001 = vrcp.f32 %v2991_v45  ;;  %v2760_v59 = vsub.f32 %v7849_v36, %v2628_v39 }
 0x550   : > { %5691 = vmatmul.msk.f32.gmra.mxu3 %vm10238_vm11, %v3200_v41  ;;  %v2647_v41 = vsel %vm10243_vm9, %v7938_v11, -inf  ;;  %vm10255_vm11 = vmmov %vm10164_vm0 }
 0x551   : > { %v8066_v16 = vpop.eup %5999  ;;  %v2853_v56 = vmul.f32 1.442695, %v2760_v59  ;;  %vm10262_vm9 = vmmov %vm10164_vm0 }
 0x552   : > { %v3007_v38 = vsel %vm10239_vm10, %v8066_v16, 0.0  ;;  %vm10256_vm10 = vmmov %vm10164_vm0 }
 0x553   : > { %6003 = vpow2.f32 %v2853_v56  ;;  %3008 = vadd.xlane.f32.xlu0 %v3007_v38  ;;  %2645 = vmax.xlane.f32.xlu1 %v2644_v40 }
 0x555   : > { %v6002_v21 = vpop.eup %6001 }
 0x556   : > { %v2994_v60 = vpop.xlane.xlu2 %2993  ;;  %v2631_v50 = vpop.xlane.xlu0 %2630  ;;  %v3201_v25 = vmul.f32 %v6002_v21, %v8012_v46 }
 0x557   : > { %6005 = vrcp.f32 %v2994_v60  ;;  %v2761_v42 = vsub.f32 %v7866_v33, %v2631_v50  ;;  %v2650_v50 = vsel %vm10245_vm15, %v7942_v37, -inf  ;;  %vm10264_vm15 = vmmov %vm10164_vm0 }
 0x558   : > { %5692 = vmatmul.msk.f32.gmra.mxu3 %vm10241_vm3, %v3201_v25  ;;  %vm10259_vm3 = vmmov %vm10164_vm0 }
 0x559   : > { %v8075_v47 = vpop.eup %6003  ;;  %v2855_v45 = vmul.f32 1.442695, %v2761_v42  ;;  %v2653_v42 = vsel %vm10247_vm8, %v7946_v9, -inf  ;;  %vm10267_vm8 = vmmov %vm10164_vm0 }
 0x55a   : > { %v3010_v39 = vsel %vm10242_vm6, %v8075_v47, 0.0  ;;  %vm10260_vm6 = vmmov %vm10164_vm0 }
 0x55b   : > { %6007 = vpow2.f32 %v2855_v45  ;;  %3011 = vadd.xlane.f32.xlu2 %v3010_v39  ;;  %2648 = vmax.xlane.f32.xlu0 %v2647_v41  ;;  %v2656_v45 = vsel %vm10248_vm13, %v7952_v4, -inf  ;;  %v8098_v39 = vpop.f32.mrf.mxu3  ;;  %vm10268_vm13 = vmmov %vm10164_vm0 }
 0x55d   : > { %v6006_v59 = vpop.eup %6005 }
 0x55e   : > { %v2634_v56 = vpop.xlane.xlu2 %2633  ;;  %v3202_v46 = vmul.f32 %v6006_v59, %v8018_v54 }
 0x55f   : > { %v2762_v38 = vsub.f32 %v7881_v48, %v2634_v56 }
 0x560   : > { %5693 = vmatmul.msk.f32.gmra.mxu3 %vm10164_vm0, %v3202_v46 }
 0x561   : > { %v8084_v40 = vpop.eup %6007  ;;  %v2857_v21 = vmul.f32 1.442695, %v2762_v38 }
 0x562   : > { %v3013_v60 = vsel %vm10244_vm12, %v8084_v40, 0.0  ;;  %vm10263_vm12 = vmmov %vm10164_vm0 }
 0x563   : > { %6009 = vpow2.f32 %v2857_v21  ;;  %3014 = vadd.xlane.f32.xlu1 %v3013_v60  ;;  %2651 = vmax.xlane.f32.xlu2 %v2650_v50  ;;  %v8100_v59 = vpop.f32.mrf.mxu3  ;;  %v8105_v50 = vpop.f32.mrf.mxu2 }
 0x564   : > { %10250 = vst [vmem:[#allocation98_spill] sm:$0xff] %v8105_v50 }
 0x569   : > { %v8090_v25 = vpop.eup %6009 }
 0x56a   : > { %v3016_v54 = vsel %vm10246_vm4, %v8090_v25, 0.0  ;;  %vm10266_vm4 = vmmov %vm10164_vm0 }
 0x56b   : > { %3017 = vadd.xlane.f32.xlu0 %v3016_v54  ;;  %2654 = vmax.xlane.f32.xlu1 %v2653_v42 }
 0x573   : > { %2657 = vmax.xlane.f32.xlu0 %v2656_v45  ;;  %v8107_v45 = vpop.f32.mrf.mxu3 }
 0x5a6   : > { %v2997_v41 = vpop.xlane.xlu1 %2996 }
 0x5a7   : > { %6011 = vrcp.f32 %v2997_v41 }
 0x5ad   : > { %v6012_v56 = vpop.eup %6011 }
 0x5ae   : > { %v3000_v46 = vpop.xlane.xlu0 %2999  ;;  %v2637_v38 = vpop.xlane.xlu1 %2636  ;;  %v3203_v21 = vmul.f32 %v6012_v56, %v8032_v52 }
 0x5af   : > { %6013 = vrcp.f32 %v3000_v46  ;;  %v2763_v60 = vsub.f32 %v7896_v61, %v2637_v38  ;;  %v8116_v38 = vpop.f32.mrf.mxu2 }
 0x5b0   : > { %5694 = vmatmul.msk.f32.gmra.mxu3 %vm10249_vm2, %v3203_v21  ;;  %10253 = vst [vmem:[#allocation99_spill] sm:$0xff] %v8116_v38  ;;  %vm10269_vm2 = vmmov %vm10164_vm0 }
 0x5b1   : > { %v2859_v54 = vmul.f32 1.442695, %v2763_v60 }
 0x5b3   : > { %6015 = vpow2.f32 %v2859_v54 }
 0x5b5   : > { %v6014_v42 = vpop.eup %6013 }
 0x5b6   : > { %v3003_v41 = vpop.xlane.xlu2 %3002  ;;  %v2640_v48 = vpop.xlane.xlu0 %2639  ;;  %v3204_v33 = vmul.f32 %v6014_v42, %v8039_v24 }
 0x5b7   : > { %6017 = vrcp.f32 %v3003_v41  ;;  %v2764_v36 = vsub.f32 %v7912_v34, %v2640_v48  ;;  %v8119_v42 = vpop.f32.mrf.mxu3 }
 0x5b8   : > { %5695 = vmatmul.msk.f32.gmra.mxu3 %vm10251_vm5, %v3204_v33  ;;  %vm10270_vm5 = vmmov %vm10164_vm0 }
 0x5b9   : > { %v8112_v52 = vpop.eup %6015  ;;  %v2861_v56 = vmul.f32 1.442695, %v2764_v36 }
 0x5ba   : > { %v3019_v46 = vsel %vm10252_vm14, %v8112_v52, 0.0  ;;  %vm10272_vm14 = vmmov %vm10164_vm0 }
 0x5bb   : > { %6019 = vpow2.f32 %v2861_v56  ;;  %3020 = vadd.xlane.f32.xlu2 %v3019_v46  ;;  %v2659_v56 = vsel %vm10256_vm10, %v8105_v50, -inf  ;;  %v8129_v46 = vpop.f32.mrf.mxu2  ;;  %vm10276_vm10 = vmmov %vm10164_vm0 }
 0x5bc   : > { %10257 = vst [vmem:[#allocation100_spill] sm:$0xff] %v8129_v46 }
 0x5bd   : > { %v6018_v21 = vpop.eup %6017 }
 0x5be   : > { %v3006_v60 = vpop.xlane.xlu1 %3005  ;;  %v2643_v54 = vpop.xlane.xlu2 %2642  ;;  %v3205_v24 = vmul.f32 %v6018_v21, %v8048_v26 }
 0x5bf   : > { %6021 = vrcp.f32 %v3006_v60  ;;  %v2765_v33 = vsub.f32 %v7926_v14, %v2643_v54  ;;  %v8136_v14 = vpop.f32.mrf.mxu3 }
 0x5c0   : > { %5696 = vmatmul.msk.f32.gmra.mxu3 %vm10254_vm1, %v3205_v24  ;;  %vm10273_vm1 = vmmov %vm10164_vm0 }
 0x5c1   : > { %v8123_v36 = vpop.eup %6019  ;;  %v2863_v48 = vmul.f32 1.442695, %v2765_v33 }
 0x5c2   : > { %v3022_v41 = vsel %vm10255_vm11, %v8123_v36, 0.0  ;;  %vm10274_vm11 = vmmov %vm10164_vm0 }
 0x5c3   : > { %6023 = vpow2.f32 %v2863_v48  ;;  %3023 = vadd.xlane.f32.xlu1 %v3022_v41  ;;  %2660 = vmax.xlane.f32.xlu2 %v2659_v56  ;;  %v2662_v41 = vsel %vm10260_vm6, %v8116_v38, -inf  ;;  %vm10280_vm6 = vmmov %vm10164_vm0 }
 0x5c5   : > { %v6022_v26 = vpop.eup %6021 }
 0x5c6   : > { %v3009_v21 = vpop.xlane.xlu0 %3008  ;;  %v2646_v60 = vpop.xlane.xlu1 %2645  ;;  %v3206_v54 = vmul.f32 %v6022_v26, %v8057_v63 }
 0x5c7   : > { %6025 = vrcp.f32 %v3009_v21  ;;  %v2766_v24 = vsub.f32 %v7934_v62, %v2646_v60  ;;  %v8143_v60 = vpop.f32.mrf.mxu2 }
 0x5c8   : > { %5697 = vmatmul.msk.f32.gmra.mxu3 %vm10258_vm7, %v3206_v54  ;;  %10261 = vst [vmem:[#allocation101_spill] sm:$0xff] %v8143_v60  ;;  %vm10277_vm7 = vmmov %vm10164_vm0 }
 0x5c9   : > { %v8134_v33 = vpop.eup %6023  ;;  %v2865_v34 = vmul.f32 1.442695, %v2766_v24 }
 0x5ca   : > { %v3025_v48 = vsel %vm10259_vm3, %v8134_v33, 0.0  ;;  %vm10279_vm3 = vmmov %vm10164_vm0 }
 0x5cb   : > { %6027 = vpow2.f32 %v2865_v34  ;;  %3026 = vadd.xlane.f32.xlu0 %v3025_v48  ;;  %2663 = vmax.xlane.f32.xlu1 %v2662_v41  ;;  %v2665_v48 = vsel %vm10263_vm12, %v8129_v46, -inf  ;;  %v8153_v41 = vpop.f32.mrf.mxu3  ;;  %vm10284_vm12 = vmmov %vm10164_vm0 }
 0x5cd   : > { %v6026_v63 = vpop.eup %6025 }
 0x5ce   : > { %v3012_v56 = vpop.xlane.xlu2 %3011  ;;  %v2649_v26 = vpop.xlane.xlu0 %2648  ;;  %v3207_v21 = vmul.f32 %v6026_v63, %v8066_v16 }
 0x5cf   : > { %6029 = vrcp.f32 %v3012_v56  ;;  %v2767_v54 = vsub.f32 %v7938_v11, %v2649_v26  ;;  %v8160_v11 = vpop.f32.mrf.mxu2 }
 0x5d0   : > { %5698 = vmatmul.msk.f32.gmra.mxu3 %vm10262_vm9, %v3207_v21  ;;  %10265 = vst [vmem:[#allocation102_spill] sm:$0xff] %v8160_v11  ;;  %vm10282_vm9 = vmmov %vm10164_vm0 }
 0x5d1   : > { %v8147_v24 = vpop.eup %6027  ;;  %v2867_v62 = vmul.f32 1.442695, %v2767_v54 }
 0x5d2   : > { %v3028_v34 = vsel %vm10164_vm0, %v8147_v24, 0.0 }
 0x5d3   : > { %6031 = vpow2.f32 %v2867_v62  ;;  %3029 = vadd.xlane.f32.xlu2 %v3028_v34  ;;  %2666 = vmax.xlane.f32.xlu0 %v2665_v48  ;;  %v2668_v34 = vsel %vm10267_vm8, %v8143_v60, -inf  ;;  %v8166_v48 = vpop.f32.mrf.mxu3  ;;  %vm10288_vm8 = vmmov %vm10164_vm0 }
 0x5d5   : > { %v6030_v16 = vpop.eup %6029 }
 0x5d6   : > { %v3015_v63 = vpop.xlane.xlu1 %3014  ;;  %v2652_v56 = vpop.xlane.xlu2 %2651  ;;  %v3208_v26 = vmul.f32 %v6030_v16, %v8075_v47 }
 0x5d7   : > { %6033 = vrcp.f32 %v3015_v63  ;;  %v2768_v21 = vsub.f32 %v7942_v37, %v2652_v56 }
 0x5d8   : > { %5699 = vmatmul.msk.f32.gmra.mxu3 %vm10264_vm15, %v3208_v26  ;;  %vm10285_vm15 = vmmov %vm10164_vm0 }
 0x5d9   : > { %v8158_v54 = vpop.eup %6031  ;;  %v2869_v61 = vmul.f32 1.442695, %v2768_v21 }
 0x5da   : > { %v3031_v62 = vsel %vm10266_vm4, %v8158_v54, 0.0  ;;  %vm10286_vm4 = vmmov %vm10164_vm0 }
 0x5db   : > { %6035 = vpow2.f32 %v2869_v61  ;;  %3032 = vadd.xlane.f32.xlu1 %v3031_v62  ;;  %2669 = vmax.xlane.f32.xlu2 %v2668_v34  ;;  %v2671_v62 = vsel %vm10270_vm5, %v8160_v11, -inf  ;;  %v8177_v34 = vpop.f32.mrf.mxu2  ;;  %vm10292_vm5 = vmmov %vm10164_vm0 }
 0x5dc   : > { %10271 = vst [vmem:[#allocation103_spill] sm:$0xff] %v8177_v34 }
 0x5dd   : > { %v6034_v47 = vpop.eup %6033 }
 0x5de   : > { %v3018_v16 = vpop.xlane.xlu0 %3017  ;;  %v2655_v63 = vpop.xlane.xlu1 %2654  ;;  %v3209_v56 = vmul.f32 %v6034_v47, %v8084_v40 }
 0x5df   : > { %6037 = vrcp.f32 %v3018_v16  ;;  %v2769_v26 = vsub.f32 %v7946_v9, %v2655_v63 }
 0x5e0   : > { %5700 = vmatmul.msk.f32.gmra.mxu3 %vm10268_vm13, %v3209_v56  ;;  %v8181_v56 = vpop.f32.mrf.mxu3  ;;  %vm10289_vm13 = vmmov %vm10164_vm0 }
 0x5e1   : > { %v8171_v21 = vpop.eup %6035  ;;  %v2871_v37 = vmul.f32 1.442695, %v2769_v26 }
 0x5e2   : > { %v3034_v61 = vsel %vm10269_vm2, %v8171_v21, 0.0  ;;  %vm10290_vm2 = vmmov %vm10164_vm0 }
 0x5e3   : > { %6039 = vpow2.f32 %v2871_v37  ;;  %3035 = vadd.xlane.f32.xlu0 %v3034_v61  ;;  %2672 = vmax.xlane.f32.xlu1 %v2671_v62  ;;  %v2674_v37 = vsel %vm10274_vm11, %v8177_v34, -inf  ;;  %v8190_v61 = vpop.f32.mrf.mxu2  ;;  %vm10295_vm11 = vmmov %vm10164_vm0 }
 0x5e4   : > { %10275 = vst [vmem:[#allocation104_spill] sm:$0xff] %v8190_v61 }
 0x5e5   : > { %v6038_v40 = vpop.eup %6037 }
 0x5e6   : > { %v2658_v47 = vpop.xlane.xlu0 %2657  ;;  %v3210_v16 = vmul.f32 %v6038_v40, %v8090_v25  ;;  %v2677_v40 = vsel %vm10277_vm7, %v8190_v61, -inf  ;;  %vm10298_vm7 = vmmov %vm10164_vm0 }
 0x5e7   : > { %v2770_v63 = vsub.f32 %v7952_v4, %v2658_v47 }
 0x5e8   : > { %5701 = vmatmul.msk.f32.gmra.mxu3 %vm10272_vm14, %v3210_v16  ;;  %vm10293_vm14 = vmmov %vm10164_vm0 }
 0x5e9   : > { %v8184_v26 = vpop.eup %6039  ;;  %v2873_v9 = vmul.f32 1.442695, %v2770_v63 }
 0x5ea   : > { %v3037_v27 = vsel %vm10273_vm1, %v8184_v26, 0.0  ;;  %vm10294_vm1 = vmmov %vm10164_vm0 }
 0x5eb   : > { %6041 = vpow2.f32 %v2873_v9  ;;  %3038 = vadd.xlane.f32.xlu2 %v3037_v27  ;;  %2675 = vmax.xlane.f32.xlu0 %v2674_v37  ;;  %v8198_v47 = vpop.f32.mrf.mxu2  ;;  %v8202_v9 = vpop.f32.mrf.mxu3 }
 0x5ec   : > { %10278 = vst [vmem:[#allocation105_spill] sm:$0xff] %v8198_v47  ;;  %v2680_v16 = vsel %vm10279_vm3, %v8198_v47, -inf  ;;  %vm10299_vm3 = vmmov %vm10164_vm0 }
 0x5f1   : > { %v8192_v25 = vpop.eup %6041 }
 0x5f2   : > { %v3040_v62 = vsel %vm10276_vm10, %v8192_v25, 0.0  ;;  %vm10297_vm10 = vmmov %vm10164_vm0 }
 0x5f3   : > { %3041 = vadd.xlane.f32.xlu1 %v3040_v62  ;;  %2678 = vmax.xlane.f32.xlu2 %v2677_v40  ;;  %v8204_v27 = vpop.f32.mrf.mxu3  ;;  %v8215_v53 = vpop.f32.mrf.mxu2 }
 0x5f4   : > { %10281 = vst [vmem:[#allocation106_spill] sm:$0xff] %v8215_v53 }
 0x5fb   : > { %2681 = vmax.xlane.f32.xlu1 %v2680_v16  ;;  %v8206_v63 = vpop.f32.mrf.mxu3 }
 0x603   : > { %v8208_v37 = vpop.f32.mrf.mxu3 }
 0x60b   : > { %v8210_v30 = vpop.f32.mrf.mxu3 }
 0x613   : > { %v8217_v18 = vpop.f32.mrf.mxu3 }
 0x62e   : > { %v3021_v4 = vpop.xlane.xlu2 %3020 }
 0x62f   : > { %6043 = vrcp.f32 %v3021_v4 }
 0x635   : > { %v6044_v62 = vpop.eup %6043 }
 0x636   : > { %v3024_v40 = vpop.xlane.xlu1 %3023  ;;  %v2661_v32 = vpop.xlane.xlu2 %2660  ;;  %v3211_v35 = vmul.f32 %v6044_v62, %v8112_v52 }
 0x637   : > { %6045 = vrcp.f32 %v3024_v40  ;;  %v2771_v16 = vsub.f32 %v8105_v50, %v2661_v32  ;;  %v8226_v62 = vpop.f32.mrf.mxu2 }
 0x638   : > { %5702 = vmatmul.msk.f32.gmra.mxu3 %vm10280_vm6, %v3211_v35  ;;  %10283 = vst [vmem:[#allocation107_spill] sm:$0xff] %v8226_v62  ;;  %vm10300_vm6 = vmmov %vm10164_vm0 }
 0x639   : > { %v2875_v49 = vmul.f32 1.442695, %v2771_v16 }
 0x63b   : > { %6047 = vpow2.f32 %v2875_v49 }
 0x63d   : > { %v6046_v43 = vpop.eup %6045 }
 0x63e   : > { %v3027_v4 = vpop.xlane.xlu0 %3026  ;;  %v2664_v44 = vpop.xlane.xlu1 %2663  ;;  %v3212_v51 = vmul.f32 %v6046_v43, %v8123_v36 }
 0x63f   : > { %6049 = vrcp.f32 %v3027_v4  ;;  %v2772_v55 = vsub.f32 %v8116_v38, %v2664_v44  ;;  %v8229_v36 = vpop.f32.mrf.mxu3 }
 0x640   : > { %5703 = vmatmul.msk.f32.gmra.mxu3 %vm10282_vm9, %v3212_v51  ;;  %vm10301_vm9 = vmmov %vm10164_vm0 }
 0x641   : > { %v8222_v52 = vpop.eup %6047  ;;  %v2877_v32 = vmul.f32 1.442695, %v2772_v55 }
 0x642   : > { %v3043_v35 = vsel %vm10164_vm0, %v8222_v52, 0.0 }
 0x643   : > { %6051 = vpow2.f32 %v2877_v32  ;;  %3044 = vadd.xlane.f32.xlu0 %v3043_v35  ;;  %v2683_v32 = vsel %vm10286_vm4, %v8215_v53, -inf  ;;  %v8239_v35 = vpop.f32.mrf.mxu2  ;;  %vm10307_vm4 = vmmov %vm10164_vm0 }
 0x644   : > { %10287 = vst [vmem:[#allocation108_spill] sm:$0xff] %v8239_v35 }
 0x645   : > { %v6050_v49 = vpop.eup %6049 }
 0x646   : > { %v3030_v40 = vpop.xlane.xlu2 %3029  ;;  %v2667_v16 = vpop.xlane.xlu0 %2666  ;;  %v3213_v43 = vmul.f32 %v6050_v49, %v8134_v33 }
 0x647   : > { %6053 = vrcp.f32 %v3030_v40  ;;  %v2773_v44 = vsub.f32 %v8129_v46, %v2667_v16  ;;  %v8246_v46 = vpop.f32.mrf.mxu3 }
 0x648   : > { %5704 = vmatmul.msk.f32.gmra.mxu3 %vm10284_vm12, %v3213_v43  ;;  %vm10303_vm12 = vmmov %vm10164_vm0 }
 0x649   : > { %v8233_v55 = vpop.eup %6051  ;;  %v2879_v51 = vmul.f32 1.442695, %v2773_v44 }
 0x64a   : > { %v3046_v4 = vsel %vm10285_vm15, %v8233_v55, 0.0  ;;  %vm10304_vm15 = vmmov %vm10164_vm0 }
 0x64b   : > { %6055 = vpow2.f32 %v2879_v51  ;;  %3047 = vadd.xlane.f32.xlu2 %v3046_v4  ;;  %2684 = vmax.xlane.f32.xlu0 %v2683_v32  ;;  %v2686_v4 = vsel %vm10290_vm2, %v8226_v62, -inf  ;;  %vm10318_vm2 = vmmov %vm10164_vm0 }
 0x64d   : > { %v6054_v33 = vpop.eup %6053 }
 0x64e   : > { %v3033_v49 = vpop.xlane.xlu1 %3032  ;;  %v2670_v40 = vpop.xlane.xlu2 %2669  ;;  %v3214_v16 = vmul.f32 %v6054_v33, %v8147_v24 }
 0x64f   : > { %6057 = vrcp.f32 %v3033_v49  ;;  %v2774_v43 = vsub.f32 %v8143_v60, %v2670_v40  ;;  %v8253_v40 = vpop.f32.mrf.mxu2  ;;  %v8259_v60 = vpop.f32.mrf.mxu3 }
 0x650   : > { %5705 = vmatmul.msk.f32.gmra.mxu3 %vm10288_vm8, %v3214_v16  ;;  %10291 = vst [vmem:[#allocation109_spill] sm:$0xff] %v8253_v40  ;;  %vm10308_vm8 = vmmov %vm10164_vm0 }
 0x651   : > { %v8244_v44 = vpop.eup %6055  ;;  %v2881_v38 = vmul.f32 1.442695, %v2774_v43 }
 0x652   : > { %v3049_v51 = vsel %vm10289_vm13, %v8244_v44, 0.0  ;;  %vm10311_vm13 = vmmov %vm10164_vm0 }
 0x653   : > { %6059 = vpow2.f32 %v2881_v38  ;;  %3050 = vadd.xlane.f32.xlu1 %v3049_v51  ;;  %2687 = vmax.xlane.f32.xlu2 %v2686_v4  ;;  %v2689_v51 = vsel %vm10294_vm1, %v8239_v35, -inf  ;;  %vm10323_vm1 = vmmov %vm10164_vm0 }
 0x655   : > { %v6058_v24 = vpop.eup %6057 }
 0x656   : > { %v3036_v32 = vpop.xlane.xlu0 %3035  ;;  %v2673_v33 = vpop.xlane.xlu1 %2672  ;;  %v3215_v49 = vmul.f32 %v6058_v24, %v8158_v54 }
 0x657   : > { %6061 = vrcp.f32 %v3036_v32  ;;  %v2775_v16 = vsub.f32 %v8160_v11, %v2673_v33 }
 0x658   : > { %5706 = vmatmul.msk.f32.gmra.mxu3 %vm10292_vm5, %v3215_v49  ;;  %vm10320_vm5 = vmmov %vm10164_vm0 }
 0x659   : > { %v8257_v43 = vpop.eup %6059  ;;  %v2883_v50 = vmul.f32 1.442695, %v2775_v16  ;;  %v8270_v16 = vpop.f32.mrf.mxu2 }
 0x65a   : > { %v3052_v38 = vsel %vm10293_vm14, %v8257_v43, 0.0  ;;  %10296 = vst [vmem:[#allocation110_spill] sm:$0xff] %v8270_v16  ;;  %vm10321_vm14 = vmmov %vm10164_vm0 }
 0x65b   : > { %6063 = vpow2.f32 %v2883_v50  ;;  %3053 = vadd.xlane.f32.xlu0 %v3052_v38  ;;  %2690 = vmax.xlane.f32.xlu1 %v2689_v51  ;;  %v2692_v38 = vsel %vm10298_vm7, %v8253_v40, -inf  ;;  %v8276_v51 = vpop.f32.mrf.mxu3  ;;  %vm10327_vm7 = vmmov %vm10164_vm0 }
 0x65d   : > { %v6062_v54 = vpop.eup %6061 }
 0x65e   : > { %v3039_v4 = vpop.xlane.xlu2 %3038  ;;  %v2676_v24 = vpop.xlane.xlu0 %2675  ;;  %v3216_v32 = vmul.f32 %v6062_v54, %v8171_v21 }
 0x65f   : > { %6065 = vrcp.f32 %v3039_v4  ;;  %v2776_v33 = vsub.f32 %v8177_v34, %v2676_v24 }
 0x660   : > { %5707 = vmatmul.msk.f32.gmra.mxu3 %vm10295_vm11, %v3216_v32  ;;  %vm10324_vm11 = vmmov %vm10164_vm0 }
 0x661   : > { %v8268_v49 = vpop.eup %6063  ;;  %v2885_v11 = vmul.f32 1.442695, %v2776_v33 }
 0x662   : > { %v3055_v50 = vsel %vm10297_vm10, %v8268_v49, 0.0  ;;  %vm10325_vm10 = vmmov %vm10164_vm0 }
 0x663   : > { %6067 = vpow2.f32 %v2885_v11  ;;  %3056 = vadd.xlane.f32.xlu2 %v3055_v50  ;;  %2693 = vmax.xlane.f32.xlu0 %v2692_v38  ;;  %v2695_v11 = vsel %vm10301_vm9, %v8270_v16, -inf  ;;  %v8287_v50 = vpop.f32.mrf.mxu2  ;;  %v8289_v38 = vpop.f32.mrf.mxu3  ;;  %vm10331_vm9 = vmmov %vm10164_vm0 }
 0x664   : > { %10302 = vst [vmem:[#allocation111_spill] sm:$0xff] %v8287_v50 }
 0x665   : > { %v6066_v21 = vpop.eup %6065 }
 0x666   : > { %v3042_v54 = vpop.xlane.xlu1 %3041  ;;  %v2679_v4 = vpop.xlane.xlu2 %2678  ;;  %v3217_v24 = vmul.f32 %v6066_v21, %v8184_v26 }
 0x667   : > { %6069 = vrcp.f32 %v3042_v54  ;;  %v2777_v32 = vsub.f32 %v8190_v61, %v2679_v4 }
 0x668   : > { %5708 = vmatmul.msk.f32.gmra.mxu3 %vm10299_vm3, %v3217_v24  ;;  %vm10328_vm3 = vmmov %vm10164_vm0 }
 0x669   : > { %v8281_v33 = vpop.eup %6067  ;;  %v2887_v34 = vmul.f32 1.442695, %v2777_v32 }
 0x66a   : > { %v3058_v29 = vsel %vm10300_vm6, %v8281_v33, 0.0  ;;  %vm10329_vm6 = vmmov %vm10164_vm0 }
 0x66b   : > { %6071 = vpow2.f32 %v2887_v34  ;;  %3059 = vadd.xlane.f32.xlu1 %v3058_v29  ;;  %2696 = vmax.xlane.f32.xlu2 %v2695_v11  ;;  %v2698_v29 = vsel %vm10304_vm15, %v8287_v50, -inf  ;;  %v8300_v34 = vpop.f32.mrf.mxu2  ;;  %v8302_v11 = vpop.f32.mrf.mxu3  ;;  %vm10333_vm15 = vmmov %vm10164_vm0 }
 0x66c   : > { %10305 = vst [vmem:[#allocation112_spill] sm:$0xff] %v8300_v34 }
 0x66d   : > { %v6070_v26 = vpop.eup %6069  ;;  %10306 = vst [vmem:[#allocation113_spill] sm:$0xff] %v8302_v11 }
 0x66e   : > { %v2682_v21 = vpop.xlane.xlu1 %2681  ;;  %v3218_v54 = vmul.f32 %v6070_v26, %v8192_v25 }
 0x66f   : > { %v2778_v4 = vsub.f32 %v8198_v47, %v2682_v21  ;;  %v2701_v21 = vsel %vm10308_vm8, %v8300_v34, -inf  ;;  %vm10336_vm8 = vmmov %vm10164_vm0 }
 0x670   : > { %5709 = vmatmul.msk.f32.gmra.mxu3 %vm10164_vm0, %v3218_v54 }
 0x671   : > { %v8294_v24 = vpop.eup %6071  ;;  %v2889_v32 = vmul.f32 1.442695, %v2778_v4 }
 0x672   : > { %v3061_v61 = vsel %vm10303_vm12, %v8294_v24, 0.0  ;;  %vm10332_vm12 = vmmov %vm10164_vm0 }
 0x673   : > { %6073 = vpow2.f32 %v2889_v32  ;;  %3062 = vadd.xlane.f32.xlu0 %v3061_v61  ;;  %2699 = vmax.xlane.f32.xlu1 %v2698_v29  ;;  %v8310_v54 = vpop.f32.mrf.mxu2  ;;  %v8312_v4 = vpop.f32.mrf.mxu3 }
 0x674   : > { %10309 = vst [vmem:[#allocation114_spill] sm:$0xff] %v8310_v54  ;;  %v2704_v61 = vsel %vm10311_vm13, %v8310_v54, -inf  ;;  %vm10337_vm13 = vmmov %vm10164_vm0 }
 0x675   : > { %10310 = vst [vmem:[#allocation115_spill] sm:$0xff] %v8312_v4 }
 0x679   : > { %v8304_v25 = vpop.eup %6073 }
 0x67a   : > { %v3064_v26 = vsel %vm10307_vm4, %v8304_v25, 0.0  ;;  %vm10335_vm4 = vmmov %vm10164_vm0 }
 0x67b   : > { %3065 = vadd.xlane.f32.xlu2 %v3064_v26  ;;  %2702 = vmax.xlane.f32.xlu0 %v2701_v21  ;;  %v8316_v32 = vpop.f32.mrf.mxu3 }
 0x67c   : > { %10312 = vst [vmem:[#allocation116_spill] sm:$0xff] %v8316_v32 }
 0x683   : > { %2705 = vmax.xlane.f32.xlu2 %v2704_v61  ;;  %v8318_v29 = vpop.f32.mrf.mxu3 }
 0x684   : > { %10313 = vst [vmem:[#allocation117_spill] sm:$0xff] %v8318_v29  ;;  %v8331_v29 = vpop.f32.mrf.mxu2 }
 0x685   : > { %10319 = vst [vmem:[#allocation122_spill] sm:$0xff] %v8331_v29 }
 0x68b   : > { %v8320_v47 = vpop.f32.mrf.mxu3 }
 0x68c   : > { %10314 = vst [vmem:[#allocation118_spill] sm:$0xff] %v8320_v47 }
 0x693   : > { %v8322_v7 = vpop.f32.mrf.mxu3 }
 0x694   : > { %10315 = vst [vmem:[#allocation119_spill] sm:$0xff] %v8322_v7 }
 0x69b   : > { %v8324_v58 = vpop.f32.mrf.mxu3 }
 0x69c   : > { %10316 = vst [vmem:[#allocation120_spill] sm:$0xff] %v8324_v58 }
 0x6a3   : > { %v8326_v21 = vpop.f32.mrf.mxu3 }
 0x6a4   : > { %10317 = vst [vmem:[#allocation121_spill] sm:$0xff] %v8326_v21 }
 0x6ab   : > { %v8333_v58 = vpop.f32.mrf.mxu3 }
 0x6b6   : > { %v3045_v26 = vpop.xlane.xlu0 %3044 }
 0x6b7   : > { %6075 = vrcp.f32 %v3045_v26 }
 0x6bd   : > { %v6076_v22 = vpop.eup %6075 }
 0x6be   : > { %v3048_v57 = vpop.xlane.xlu2 %3047  ;;  %v2685_v28 = vpop.xlane.xlu0 %2684  ;;  %v3219_v4 = vmul.f32 %v6076_v22, %v8222_v52 }
 0x6bf   : > { %6077 = vrcp.f32 %v3048_v57  ;;  %v2779_v61 = vsub.f32 %v8215_v53, %v2685_v28  ;;  %v8342_v52 = vpop.f32.mrf.mxu2 }
 0x6c0   : > { %5710 = vmatmul.msk.f32.gmra.mxu3 %vm10318_vm2, %v3219_v4  ;;  %10322 = vst [vmem:[#allocation123_spill] sm:$0xff] %v8342_v52  ;;  %vm10339_vm2 = vmmov %vm10164_vm0 }
 0x6c1   : > { %v2891_v47 = vmul.f32 1.442695, %v2779_v61 }
 0x6c3   : > { %6079 = vpow2.f32 %v2891_v47 }
 0x6c5   : > { %v6078_v7 = vpop.eup %6077 }
 0x6c6   : > { %v3051_v26 = vpop.xlane.xlu1 %3050  ;;  %v2688_v32 = vpop.xlane.xlu2 %2687  ;;  %v3220_v21 = vmul.f32 %v6078_v7, %v8233_v55 }
 0x6c7   : > { %6081 = vrcp.f32 %v3051_v26  ;;  %v2780_v11 = vsub.f32 %v8226_v62, %v2688_v32  ;;  %v8345_v55 = vpop.f32.mrf.mxu3 }
 0x6c8   : > { %5711 = vmatmul.msk.f32.gmra.mxu3 %vm10320_vm5, %v3220_v21  ;;  %vm10340_vm5 = vmmov %vm10164_vm0 }
 0x6c9   : > { %v8338_v57 = vpop.eup %6079  ;;  %v2893_v28 = vmul.f32 1.442695, %v2780_v11 }
 0x6ca   : > { %v3067_v22 = vsel %vm10321_vm14, %v8338_v57, 0.0  ;;  %vm10342_vm14 = vmmov %vm10164_vm0 }
 0x6cb   : > { %6083 = vpow2.f32 %v2893_v28  ;;  %3068 = vadd.xlane.f32.xlu1 %v3067_v22  ;;  %v2707_v28 = vsel %vm10325_vm10, %v8331_v29, -inf  ;;  %v8355_v22 = vpop.f32.mrf.mxu2  ;;  %vm10347_vm10 = vmmov %vm10164_vm0 }
 0x6cc   : > { %10326 = vst [vmem:[#allocation124_spill] sm:$0xff] %v8355_v22 }
 0x6cd   : > { %v6082_v47 = vpop.eup %6081 }
 0x6ce   : > { %v3054_v4 = vpop.xlane.xlu0 %3053  ;;  %v2691_v61 = vpop.xlane.xlu1 %2690  ;;  %v3221_v7 = vmul.f32 %v6082_v47, %v8244_v44 }
 0x6cf   : > { %6085 = vrcp.f32 %v3054_v4  ;;  %v2781_v32 = vsub.f32 %v8239_v35, %v2691_v61  ;;  %v8362_v35 = vpop.f32.mrf.mxu3 }
 0x6d0   : > { %5712 = vmatmul.msk.f32.gmra.mxu3 %vm10323_vm1, %v3221_v7  ;;  %vm10343_vm1 = vmmov %vm10164_vm0 }
 0x6d1   : > { %v8349_v11 = vpop.eup %6083  ;;  %v2895_v21 = vmul.f32 1.442695, %v2781_v32 }
 0x6d2   : > { %v3070_v26 = vsel %vm10324_vm11, %v8349_v11, 0.0  ;;  %vm10344_vm11 = vmmov %vm10164_vm0 }
 0x6d3   : > { %6087 = vpow2.f32 %v2895_v21  ;;  %3071 = vadd.xlane.f32.xlu0 %v3070_v26  ;;  %2708 = vmax.xlane.f32.xlu1 %v2707_v28  ;;  %v2710_v26 = vsel %vm10329_vm6, %v8342_v52, -inf  ;;  %vm10378_vm6 = vmmov %vm10164_vm0 }
 0x6d5   : > { %v6086_v44 = vpop.eup %6085 }
 0x6d6   : > { %v3057_v47 = vpop.xlane.xlu2 %3056  ;;  %v2694_v4 = vpop.xlane.xlu0 %2693  ;;  %v3222_v61 = vmul.f32 %v6086_v44, %v8257_v43 }
 0x6d7   : > { %6089 = vrcp.f32 %v3057_v47  ;;  %v2782_v7 = vsub.f32 %v8253_v40, %v2694_v4  ;;  %v8369_v4 = vpop.f32.mrf.mxu2 }
 0x6d8   : > { %5713 = vmatmul.msk.f32.gmra.mxu3 %vm10327_vm7, %v3222_v61  ;;  %10330 = vst [vmem:[#allocation125_spill] sm:$0xff] %v8369_v4  ;;  %vm10348_vm7 = vmmov %vm10164_vm0 }
 0x6d9   : > { %v8360_v32 = vpop.eup %6087  ;;  %v2897_v62 = vmul.f32 1.442695, %v2782_v7 }
 0x6da   : > { %v3073_v21 = vsel %vm10328_vm3, %v8360_v32, 0.0  ;;  %vm10350_vm3 = vmmov %vm10164_vm0 }
 0x6db   : > { %6091 = vpow2.f32 %v2897_v62  ;;  %3074 = vadd.xlane.f32.xlu2 %v3073_v21  ;;  %2711 = vmax.xlane.f32.xlu0 %v2710_v26  ;;  %v2713_v21 = vsel %vm10332_vm12, %v8355_v22, -inf  ;;  %v8379_v26 = vpop.f32.mrf.mxu3  ;;  %vm10388_vm12 = vmmov %vm10164_vm0 }
 0x6dd   : > { %v6090_v43 = vpop.eup %6089 }
 0x6de   : > { %v3060_v28 = vpop.xlane.xlu1 %3059  ;;  %v2697_v44 = vpop.xlane.xlu2 %2696  ;;  %v3223_v47 = vmul.f32 %v6090_v43, %v8268_v49 }
 0x6df   : > { %6093 = vrcp.f32 %v3060_v28  ;;  %v2783_v61 = vsub.f32 %v8270_v16, %v2697_v44  ;;  %v8386_v16 = vpop.f32.mrf.mxu2 }
 0x6e0   : > { %5714 = vmatmul.msk.f32.gmra.mxu3 %vm10331_vm9, %v3223_v47  ;;  %10334 = vst [vmem:[#allocation126_spill] sm:$0xff] %v8386_v16  ;;  %vm10383_vm9 = vmmov %vm10164_vm0 }
 0x6e1   : > { %v8373_v7 = vpop.eup %6091  ;;  %v2899_v40 = vmul.f32 1.442695, %v2783_v61 }
 0x6e2   : > { %v3076_v62 = vsel %vm10164_vm0, %v8373_v7, 0.0 }
 0x6e3   : > { %6095 = vpow2.f32 %v2899_v40  ;;  %3077 = vadd.xlane.f32.xlu1 %v3076_v62  ;;  %2714 = vmax.xlane.f32.xlu2 %v2713_v21  ;;  %v2716_v62 = vsel %vm10336_vm8, %v8369_v4, -inf  ;;  %v8392_v21 = vpop.f32.mrf.mxu3  ;;  %vm10392_vm8 = vmmov %vm10164_vm0 }
 0x6e5   : > { %v6094_v49 = vpop.eup %6093 }
 0x6e6   : > { %v3063_v43 = vpop.xlane.xlu0 %3062  ;;  %v2700_v28 = vpop.xlane.xlu1 %2699  ;;  %v3224_v44 = vmul.f32 %v6094_v49, %v8281_v33 }
 0x6e7   : > { %6097 = vrcp.f32 %v3063_v43  ;;  %v2784_v47 = vsub.f32 %v8287_v50, %v2700_v28 }
 0x6e8   : > { %5715 = vmatmul.msk.f32.gmra.mxu3 %vm10333_vm15, %v3224_v44  ;;  %vm10389_vm15 = vmmov %vm10164_vm0 }
 0x6e9   : > { %v8384_v61 = vpop.eup %6095  ;;  %v2901_v53 = vmul.f32 1.442695, %v2784_v47 }
 0x6ea   : > { %v3079_v40 = vsel %vm10335_vm4, %v8384_v61, 0.0  ;;  %vm10391_vm4 = vmmov %vm10164_vm0 }
 0x6eb   : > { %6099 = vpow2.f32 %v2901_v53  ;;  %3080 = vadd.xlane.f32.xlu0 %v3079_v40  ;;  %2717 = vmax.xlane.f32.xlu1 %v2716_v62  ;;  %v2719_v40 = vsel %vm10340_vm5, %v8386_v16, -inf  ;;  %v8403_v62 = vpop.f32.mrf.mxu2  ;;  %vm10398_vm5 = vmmov %vm10164_vm0 }
 0x6ec   : > { %10341 = vst [vmem:[#allocation128_spill] sm:$0xff] %v8403_v62 }
 0x6ed   : > { %v6098_v33 = vpop.eup %6097 }
 0x6ee   : > { %v3066_v49 = vpop.xlane.xlu2 %3065  ;;  %v2703_v43 = vpop.xlane.xlu0 %2702  ;;  %v3225_v28 = vmul.f32 %v6098_v33, %v8294_v24 }
 0x6ef   : > { %6101 = vrcp.f32 %v3066_v49  ;;  %v2785_v44 = vsub.f32 %v8300_v34, %v2703_v43  ;;  %v8405_v33 = vpop.f32.mrf.mxu3 }
 0x6f0   : > { %5716 = vmatmul.msk.f32.gmra.mxu3 %vm10337_vm13, %v3225_v28  ;;  %vm10394_vm13 = vmmov %vm10164_vm0 }
 0x6f1   : > { %v8397_v47 = vpop.eup %6099  ;;  %v2903_v50 = vmul.f32 1.442695, %v2785_v44 }
 0x6f2   : > { %10338 = vst [vmem:[#allocation127_spill] sm:$0xff] %v8397_v47  ;;  %v3082_v53 = vsel %vm10339_vm2, %v8397_v47, 0.0  ;;  %vm10395_vm2 = vmmov %vm10164_vm0 }
 0x6f3   : > { %6103 = vpow2.f32 %v2903_v50  ;;  %3083 = vadd.xlane.f32.xlu2 %v3082_v53  ;;  %2720 = vmax.xlane.f32.xlu0 %v2719_v40  ;;  %v2722_v50 = vsel %vm10344_vm11, %v8403_v62, -inf  ;;  %v8416_v53 = vpop.f32.mrf.mxu2  ;;  %vm10402_vm11 = vmmov %vm10164_vm0 }
 0x6f4   : > { %10345 = vst [vmem:[#allocation129_spill] sm:$0xff] %v8416_v53 }
 0x6f5   : > { %v6102_v24 = vpop.eup %6101 }
 0x6f6   : > { %v2706_v49 = vpop.xlane.xlu2 %2705  ;;  %v3226_v43 = vmul.f32 %v6102_v24, %v8304_v25 }
 0x6f7   : > { %v2786_v28 = vsub.f32 %v8310_v54, %v2706_v49  ;;  %v8418_v40 = vpop.f32.mrf.mxu3  ;;  %v2725_v49 = vsel %vm10348_vm7, %v8416_v53, -inf  ;;  %vm10405_vm7 = vmmov %vm10164_vm0 }
 0x6f8   : > { %5717 = vmatmul.msk.f32.gmra.mxu3 %vm10342_vm14, %v3226_v43  ;;  %v3645_v43 = vmul.f32 %v8100_v59, %v7014_v1  ;;  %v3648_v59 = vmul.f32 %v8136_v14, %v7019_v3  ;;  %v3653_v14 = vmul.f32 %v8204_v27, %v7034_v12  ;;  %v3658_v27 = vmul.f32 %v8229_v36, %v7063_v31  ;;  %v10355_v36 = vld [vmem:[#allocation113_spill] sm:$0xff]  ;;  %vm10399_vm14 = vmmov %vm10164_vm0 }
 0x6f9   : > { %v8410_v44 = vpop.eup %6103  ;;  %v2905_v34 = vmul.f32 1.442695, %v2786_v28  ;;  %v3646_v28 = vmul.f32 %v8107_v45, %v7017_v2  ;;  %v3650_v45 = vmul.f32 %v8166_v48, %v7039_v15 }
 0x6fa   : > { %v3085_v47 = vsel %vm10343_vm1, %v8410_v44, 0.0  ;;  %vm10401_vm1 = vmmov %vm10164_vm0 }
 0x6fb   : > { %6105 = vpow2.f32 %v2905_v34  ;;  %3086 = vadd.xlane.f32.xlu1 %v3085_v47  ;;  %2723 = vmax.xlane.f32.xlu2 %v2722_v50  ;;  %v8428_v34 = vpop.f32.mrf.mxu2  ;;  %v3644_v47 = vmul.f32 %v8098_v39, %v7012_v0  ;;  %v3649_v39 = vmul.f32 %v8153_v41, %v7023_v5 }
 0x6fc   : > { %10349 = vst [vmem:[#allocation131_spill] sm:$0xff] %v8428_v34 }
 0x6fd   : > { %v3708_v54 = vadd.f32 %v3645_v43, %v3644_v47 }
 0x6ff   : > { %v8434_v50 = vpop.f32.mrf.mxu3 }
 0x701   : > { %v8420_v25 = vpop.eup %6105 }
 0x702   : > { %10346 = vst [vmem:[#allocation130_spill] sm:$0xff] %v8420_v25  ;;  %v3088_v24 = vsel %vm10347_vm10, %v8420_v25, 0.0  ;;  %v3647_v25 = vmul.f32 %v8119_v42, %v7028_v8  ;;  %v3651_v42 = vmul.f32 %v8181_v56, %v7025_v6  ;;  %v3656_v56 = vmul.f32 %v8210_v30, %v7042_v17  ;;  %v10352_v30 = vld [vmem:[#allocation11_spill] sm:$0xff]  ;;  %vm10404_vm10 = vmmov %vm10164_vm0 }
 0x703   : > { %3089 = vadd.xlane.f32.xlu0 %v3088_v24  ;;  %2726 = vmax.xlane.f32.xlu1 %v2725_v49  ;;  %v2728_v24 = vsel %vm10350_vm3, %v8428_v34, -inf  ;;  %v3709_v49 = vadd.f32 %v3708_v54, %v3646_v28  ;;  %v3652_v54 = vmul.f32 %v8202_v9, %v7031_v10  ;;  %vm10406_vm3 = vmmov %vm10164_vm0 }
 0x705   : > { %v3710_v1 = vadd.f32 %v3709_v49, %v3647_v25 }
 0x707   : > { %v3711_v0 = vadd.f32 %v3710_v1, %v3648_v59  ;;  %v8448_v47 = vpop.f32.mrf.mxu3  ;;  %v3654_v1 = vmul.f32 %v8206_v63, %v7051_v23  ;;  %v3659_v63 = vmul.f32 %v8246_v46, %v7047_v20  ;;  %v10357_v46 = vld [vmem:[#allocation115_spill] sm:$0xff] }
 0x709   : > { %v3712_v43 = vadd.f32 %v3711_v0, %v3649_v39  ;;  %v3655_v0 = vmul.f32 %v8208_v37, %v7036_v13  ;;  %v10351_v37 = vld [vmem:[#allocation10_spill] sm:$0xff] }
 0x70b   : > { %2729 = vmax.xlane.f32.xlu0 %v2728_v24  ;;  %v3713_v8 = vadd.f32 %v3712_v43, %v3650_v45  ;;  %v3660_v45 = vmul.f32 %v8259_v60, %v10351_v37  ;;  %v10359_v60 = vld [vmem:[#allocation116_spill] sm:$0xff] }
 0x70d   : > { %v3714_v28 = vadd.f32 %v3713_v8, %v3651_v42  ;;  %v3657_v8 = vmul.f32 %v8217_v18, %v7045_v19  ;;  %v3661_v42 = vmul.f32 %v8276_v51, %v10352_v30  ;;  %v10361_v51 = vld [vmem:[#allocation117_spill] sm:$0xff] }
 0x70f   : > { %v3715_v25 = vadd.f32 %v3714_v28, %v3652_v54  ;;  %v8460_v24 = vpop.f32.mrf.mxu3 }
 0x711   : > { %v3716_v41 = vadd.f32 %v3715_v25, %v3653_v14  ;;  %v10353_v14 = vld [vmem:[#allocation16_spill] sm:$0xff] }
 0x712   : > { %v3662_v18 = vmul.f32 %v8289_v38, %v10353_v14  ;;  %v10363_v38 = vld [vmem:[#allocation118_spill] sm:$0xff]  ;;  %v10364_v14 = vld [vmem:[#allocation17_spill] sm:$0xff] }
 0x713   : > { %v3717_v48 = vadd.f32 %v3716_v41, %v3654_v1  ;;  %v10354_v1 = vld [vmem:[#allocation12_spill] sm:$0xff] }
 0x714   : > { %v3663_v41 = vmul.f32 %v10355_v36, %v10354_v1  ;;  %v10365_v36 = vld [vmem:[#allocation119_spill] sm:$0xff]  ;;  %v10366_v1 = vld [vmem:[#allocation18_spill] sm:$0xff] }
 0x715   : > { %v3718_v49 = vadd.f32 %v3717_v48, %v3655_v0  ;;  %v10356_v48 = vld [vmem:[#allocation13_spill] sm:$0xff] }
 0x717   : > { %v3719_v9 = vadd.f32 %v3718_v49, %v3656_v56  ;;  %v3563_v54 = vpop.f32.mrf.mxu3  ;;  %v3664_v56 = vmul.f32 %v10357_v46, %v10356_v48  ;;  %v10367_v46 = vld [vmem:[#allocation120_spill] sm:$0xff] }
 0x718   : > { %v10368_v48 = vld [vmem:[#allocation24_spill] sm:$0xff] }
 0x719   : > { %v3720_v59 = vadd.f32 %v3719_v9, %v3657_v8  ;;  %v10358_v8 = vld [vmem:[#allocation14_spill] sm:$0xff] }
 0x71a   : > { %v3665_v9 = vmul.f32 %v10359_v60, %v10358_v8  ;;  %v10369_v60 = vld [vmem:[#allocation121_spill] sm:$0xff]  ;;  %v10370_v8 = vld [vmem:[#allocation19_spill] sm:$0xff] }
 0x71b   : > { %v3721_v39 = vadd.f32 %v3720_v59, %v3658_v27  ;;  %v10360_v59 = vld [vmem:[#allocation20_spill] sm:$0xff] }
 0x71d   : > { %v3722_v43 = vadd.f32 %v3721_v39, %v3659_v63  ;;  %v3666_v63 = vmul.f32 %v10361_v51, %v10360_v59  ;;  %v3671_v51 = vmul.f32 %v8333_v58, %v10370_v8  ;;  %v10371_v59 = vld [vmem:[#allocation21_spill] sm:$0xff] }
 0x71f   : > { %v3723_v28 = vadd.f32 %v3722_v43, %v3660_v45  ;;  %v3566_v39 = vpop.f32.mrf.mxu3  ;;  %v10362_v43 = vld [vmem:[#allocation15_spill] sm:$0xff] }
 0x721   : > { %v3724_v25 = vadd.f32 %v3723_v28, %v3661_v42  ;;  %v3667_v42 = vmul.f32 %v10363_v38, %v10362_v43  ;;  %v10372_v38 = vld [vmem:[#allocation22_spill] sm:$0xff] }
 0x723   : > { %v3725_v0 = vadd.f32 %v3724_v25, %v3662_v18  ;;  %v3668_v18 = vmul.f32 %v10365_v36, %v10364_v14 }
 0x725   : > { %v3726_v49 = vadd.f32 %v3725_v0, %v3663_v41  ;;  %v3669_v41 = vmul.f32 %v10367_v46, %v10366_v1 }
 0x727   : > { %v3727_v27 = vadd.f32 %v3726_v49, %v3664_v56  ;;  %v3670_v56 = vmul.f32 %v10369_v60, %v10368_v48 }
 0x729   : > { %v3728_v45 = vadd.f32 %v3727_v27, %v3665_v9  ;;  %v3569_v9 = vpop.f32.mrf.mxu3 }
 0x72b   : > { %v3729_v28 = vadd.f32 %v3728_v45, %v3666_v63  ;;  %v3672_v63 = vmul.f32 %v8345_v55, %v10371_v59 }
 0x72d   : > { %v3730_v25 = vadd.f32 %v3729_v28, %v3667_v42  ;;  %v3673_v42 = vmul.f32 %v8362_v35, %v10372_v38 }
 0x72f   : > { %v3731_v0 = vadd.f32 %v3730_v25, %v3668_v18  ;;  %v10373_v18 = vld [vmem:[#allocation28_spill] sm:$0xff] }
 0x730   : > { %v3674_v25 = vmul.f32 %v8379_v26, %v10373_v18 }
 0x731   : > { %v3732_v49 = vadd.f32 %v3731_v0, %v3669_v41  ;;  %v10374_v41 = vld [vmem:[#allocation23_spill] sm:$0xff] }
 0x732   : > { %v3675_v0 = vmul.f32 %v8392_v21, %v10374_v41 }
 0x733   : > { %v3733_v27 = vadd.f32 %v3732_v49, %v3670_v56  ;;  %v10375_v56 = vld [vmem:[#allocation25_spill] sm:$0xff] }
 0x734   : > { %v3676_v49 = vmul.f32 %v8405_v33, %v10375_v56 }
 0x735   : > { %v3734_v45 = vadd.f32 %v3733_v27, %v3671_v51  ;;  %v10376_v27 = vld [vmem:[#allocation26_spill] sm:$0xff] }
 0x736   : > { %v3677_v35 = vmul.f32 %v8418_v40, %v10376_v27 }
 0x737   : > { %v3735_v36 = vadd.f32 %v3734_v45, %v3672_v63 }
 0x739   : > { %v3736_v46 = vadd.f32 %v3735_v36, %v3673_v42  ;;  %v10377_v42 = vld [vmem:[#allocation32_spill] sm:$0xff] }
 0x73a   : > { %v3678_v21 = vmul.f32 %v8434_v50, %v10377_v42 }
 0x73b   : > { %v3737_v60 = vadd.f32 %v3736_v46, %v3674_v25  ;;  %v10379_v25 = vld [vmem:[#allocation27_spill] sm:$0xff] }
 0x73c   : > { %v3679_v46 = vmul.f32 %v8448_v47, %v10379_v25 }
 0x73d   : > { %v3738_v51 = vadd.f32 %v3737_v60, %v3675_v0  ;;  %v10380_v60 = vld [vmem:[#allocation29_spill] sm:$0xff] }
 0x73e   : > { %v3069_v28 = vpop.xlane.xlu1 %3068 }
 0x73f   : > { %6107 = vrcp.f32 %v3069_v28  ;;  %v3739_v45 = vadd.f32 %v3738_v51, %v3676_v49 }
 0x741   : > { %v3740_v33 = vadd.f32 %v3739_v45, %v3677_v35 }
 0x743   : > { %v3572_v58 = vpop.f32.mrf.mxu3  ;;  %v3741_v0 = vadd.f32 %v3740_v33, %v3678_v21 }
 0x745   : > { %v6108_v55 = vpop.eup %6107 }
 0x746   : > { %v3072_v38 = vpop.xlane.xlu0 %3071  ;;  %v2709_v28 = vpop.xlane.xlu1 %2708  ;;  %v3227_v63 = vmul.f32 %v6108_v55, %v8338_v57  ;;  %v3680_v57 = vmul.f32 %v8460_v24, %v10380_v60  ;;  %v3742_v55 = vadd.f32 %v3741_v0, %v3679_v46  ;;  %v10385_v0 = vld [vmem:[#allocation33_spill] sm:$0xff] }
 0x747   : > { %6109 = vrcp.f32 %v3072_v38  ;;  %v2787_v26 = vsub.f32 %v8331_v29, %v2709_v28  ;;  %v10381_v28 = vld [vmem:[#allocation30_spill] sm:$0xff] }
 0x748   : > { %5718 = vmatmul.msk.f32.gmra.mxu3 %vm10378_vm6, %v3227_v63  ;;  %v3681_v49 = vmul.f32 %v3563_v54, %v10381_v28  ;;  %v3743_v63 = vadd.f32 %v3742_v55, %v3680_v57  ;;  %vm10409_vm6 = vmmov %vm10164_vm0 }
 0x749   : > { %v2907_v36 = vmul.f32 1.442695, %v2787_v26  ;;  %v10382_v26 = vld [vmem:[#allocation36_spill] sm:$0xff] }
 0x74a   : > { %v3682_v47 = vmul.f32 %v3566_v39, %v10382_v26  ;;  %v3744_v24 = vadd.f32 %v3743_v63, %v3681_v49  ;;  %v10386_v39 = vld [vmem:[#allocation34_spill] sm:$0xff]  ;;  %v10387_v63 = vld [vmem:[#allocation39_spill] sm:$0xff] }
 0x74b   : > { %6111 = vpow2.f32 %v2907_v36  ;;  %v3575_v40 = vpop.f32.mrf.mxu3  ;;  %v10384_v36 = vld [vmem:[#allocation31_spill] sm:$0xff] }
 0x74c   : > { %v3683_v33 = vmul.f32 %v3569_v9, %v10384_v36  ;;  %v3685_v55 = vmul.f32 %v3575_v40, %v10386_v39 }
 0x74d   : > { %v6110_v38 = vpop.eup %6109 }
 0x74e   : > { %v3075_v51 = vpop.xlane.xlu2 %3074  ;;  %v2712_v29 = vpop.xlane.xlu0 %2711  ;;  %v3228_v50 = vmul.f32 %v6110_v38, %v8349_v11  ;;  %v3745_v11 = vadd.f32 %v3744_v24, %v3682_v47 }
 0x74f   : > { %6113 = vrcp.f32 %v3075_v51  ;;  %v2788_v35 = vsub.f32 %v8342_v52, %v2712_v29  ;;  %v3684_v29 = vmul.f32 %v3572_v58, %v10385_v0 }
 0x750   : > { %5719 = vmatmul.msk.f32.gmra.mxu3 %vm10383_vm9, %v3228_v50  ;;  %v3746_v38 = vadd.f32 %v3745_v11, %v3683_v33  ;;  %vm10411_vm9 = vmmov %vm10164_vm0 }
 0x751   : > { %v8518_v45 = vpop.eup %6111  ;;  %v2909_v21 = vmul.f32 1.442695, %v2788_v35 }
 0x752   : > { %v3091_v54 = vsel %vm10164_vm0, %v8518_v45, 0.0  ;;  %v3747_v49 = vadd.f32 %v3746_v38, %v3684_v29 }
 0x753   : > { %6115 = vpow2.f32 %v2909_v21  ;;  %v3578_v46 = vpop.f32.mrf.mxu3  ;;  %3092 = vadd.xlane.f32.xlu2 %v3091_v54 }
 0x754   : > { %v3686_v52 = vmul.f32 %v3578_v46, %v10387_v63  ;;  %v3748_v58 = vadd.f32 %v3747_v49, %v3685_v55 }
 0x755   : > { %v6114_v57 = vpop.eup %6113 }
 0x756   : > { %v3078_v51 = vpop.xlane.xlu1 %3077  ;;  %v2715_v50 = vpop.xlane.xlu2 %2714  ;;  %v3229_v35 = vmul.f32 %v6114_v57, %v8360_v32  ;;  %v3749_v33 = vadd.f32 %v3748_v58, %v3686_v52  ;;  %v10390_v32 = vld [vmem:[#allocation35_spill] sm:$0xff] }
 0x757   : > { %6117 = vrcp.f32 %v3078_v51  ;;  %v2789_v9 = vsub.f32 %v8355_v22, %v2715_v50 }
 0x758   : > { %5720 = vmatmul.msk.f32.gmra.mxu3 %vm10388_vm12, %v3229_v35  ;;  %vm10414_vm12 = vmmov %vm10164_vm0 }
 0x759   : > { %v8529_v21 = vpop.eup %6115  ;;  %v2911_v47 = vmul.f32 1.442695, %v2789_v9  ;;  %v10393_v9 = vld [vmem:[#allocation37_spill] sm:$0xff] }
 0x75a   : > { %v3094_v24 = vsel %vm10389_vm15, %v8529_v21, 0.0  ;;  %vm10416_vm15 = vmmov %vm10164_vm0 }
 0x75b   : > { %6119 = vpow2.f32 %v2911_v47  ;;  %v3581_v40 = vpop.f32.mrf.mxu3  ;;  %3095 = vadd.xlane.f32.xlu1 %v3094_v24 }
 0x75c   : > { %v3687_v54 = vmul.f32 %v3581_v40, %v10390_v32 }
 0x75d   : > { %v6118_v11 = vpop.eup %6117 }
 0x75e   : > { %v3750_v57 = vadd.f32 %v3749_v33, %v3687_v54  ;;  %v3081_v29 = vpop.xlane.xlu0 %3080  ;;  %v2718_v38 = vpop.xlane.xlu1 %2717  ;;  %v3230_v46 = vmul.f32 %v6118_v11, %v8373_v7 }
 0x75f   : > { %6121 = vrcp.f32 %v3081_v29  ;;  %v2790_v51 = vsub.f32 %v8369_v4, %v2718_v38 }
 0x760   : > { %5721 = vmatmul.msk.f32.gmra.mxu3 %vm10391_vm4, %v3230_v46  ;;  %v10396_v46 = vld [vmem:[#allocation38_spill] sm:$0xff]  ;;  %vm10417_vm4 = vmmov %vm10164_vm0 }
 0x761   : > { %v8537_v55 = vpop.eup %6119  ;;  %v2913_v50 = vmul.f32 1.442695, %v2790_v51 }
 0x762   : > { %v3097_v35 = vsel %vm10392_vm8, %v8537_v55, 0.0  ;;  %vm10418_vm8 = vmmov %vm10164_vm0 }
 0x763   : > { %6123 = vpow2.f32 %v2913_v50  ;;  %v3584_v52 = vpop.f32.mrf.mxu3  ;;  %3098 = vadd.xlane.f32.xlu2 %v3097_v35 }
 0x764   : > { %v3688_v49 = vmul.f32 %v3584_v52, %v10393_v9  ;;  %v10397_v52 = vld [vmem:[#allocation127_spill] sm:$0xff] }
 0x765   : > { %v6122_v47 = vpop.eup %6121 }
 0x766   : > { %v3751_v58 = vadd.f32 %v3750_v57, %v3688_v49  ;;  %v3084_v24 = vpop.xlane.xlu2 %3083  ;;  %v2721_v7 = vpop.xlane.xlu0 %2720  ;;  %v3231_v40 = vmul.f32 %v6122_v47, %v8384_v61 }
 0x767   : > { %6125 = vrcp.f32 %v3084_v24  ;;  %v2791_v33 = vsub.f32 %v8386_v16, %v2721_v7 }
 0x768   : > { %5722 = vmatmul.msk.f32.gmra.mxu3 %vm10394_vm13, %v3231_v40  ;;  %vm10419_vm13 = vmmov %vm10164_vm0 }
 0x769   : > { %v8545_v54 = vpop.eup %6123  ;;  %v2915_v11 = vmul.f32 1.442695, %v2791_v33 }
 0x76a   : > { %v3100_v29 = vsel %vm10395_vm2, %v8545_v54, 0.0 }
 0x76b   : > { %6127 = vpow2.f32 %v2915_v11  ;;  %v3587_v38 = vpop.f32.mrf.mxu3  ;;  %3101 = vadd.xlane.f32.xlu0 %v3100_v29  ;;  %v10400_v11 = vld [vmem:[#allocation43_spill] sm:$0xff] }
 0x76c   : > { %v3689_v57 = vmul.f32 %v3587_v38, %v10396_v46  ;;  %v10426_v46 = vld [vmem:[#allocation52_spill] sm:$0xff] }
 0x76d   : > { %v6126_v51 = vpop.eup %6125 }
 0x76e   : > { %v3752_v50 = vadd.f32 %v3751_v58, %v3689_v57  ;;  %v3087_v35 = vpop.xlane.xlu1 %3086  ;;  %v2724_v61 = vpop.xlane.xlu2 %2723  ;;  %v3232_v49 = vmul.f32 %v6126_v51, %v10397_v52 }
 0x76f   : > { %6129 = vrcp.f32 %v3087_v35  ;;  %v2792_v47 = vsub.f32 %v8403_v62, %v2724_v61 }
 0x770   : > { %5723 = vmatmul.msk.f32.gmra.mxu3 %vm10398_vm5, %v3232_v49 }
 0x771   : > { %v8553_v24 = vpop.eup %6127  ;;  %v2917_v7 = vmul.f32 1.442695, %v2792_v47 }
 0x772   : > { %v3103_v40 = vsel %vm10399_vm14, %v8553_v24, 0.0  ;;  %vm10431_vm14 = vmmov %vm10164_vm0 }
 0x773   : > { %6131 = vpow2.f32 %v2917_v7  ;;  %v3590_v33 = vpop.f32.mrf.mxu3  ;;  %3104 = vadd.xlane.f32.xlu1 %v3103_v40 }
 0x774   : > { %v3690_v58 = vmul.f32 %v3590_v33, %v10400_v11 }
 0x775   : > { %v6130_v29 = vpop.eup %6129 }
 0x776   : > { %v3753_v38 = vadd.f32 %v3752_v50, %v3690_v58  ;;  %v3090_v57 = vpop.xlane.xlu0 %3089  ;;  %v2727_v51 = vpop.xlane.xlu1 %2726  ;;  %v3233_v35 = vmul.f32 %v6130_v29, %v8410_v44  ;;  %v10403_v50 = vld [vmem:[#allocation130_spill] sm:$0xff] }
 0x777   : > { %6133 = vrcp.f32 %v3090_v57  ;;  %v2793_v61 = vsub.f32 %v8416_v53, %v2727_v51 }
 0x778   : > { %5724 = vmatmul.msk.f32.gmra.mxu3 %vm10401_vm1, %v3233_v35  ;;  %vm10436_vm1 = vmmov %vm10164_vm0 }
 0x779   : > { %v8561_v52 = vpop.eup %6131  ;;  %v2919_v49 = vmul.f32 1.442695, %v2793_v61 }
 0x77a   : > { %v3106_v47 = vsel %vm10402_vm11, %v8561_v52, 0.0  ;;  %vm10438_vm11 = vmmov %vm10164_vm0 }
 0x77b   : > { %6135 = vpow2.f32 %v2919_v49  ;;  %3107 = vadd.xlane.f32.xlu2 %v3106_v47  ;;  %v3593_v61 = vpop.f32.mrf.mxu3  ;;  %v10407_v47 = vld [vmem:[#allocation40_spill] sm:$0xff] }
 0x77c   : > { %v3691_v53 = vmul.f32 %v3593_v61, %v10407_v47 }
 0x77d   : > { %v6134_v7 = vpop.eup %6133 }
 0x77e   : > { %v2730_v40 = vpop.xlane.xlu0 %2729  ;;  %v3234_v33 = vmul.f32 %v6134_v7, %v10403_v50  ;;  %v3754_v50 = vadd.f32 %v3753_v38, %v3691_v53  ;;  %v10412_v38 = vld [vmem:[#allocation46_spill] sm:$0xff] }
 0x77f   : > { %v2794_v58 = vsub.f32 %v8428_v34, %v2730_v40  ;;  %v10408_v40 = vld [vmem:[#allocation41_spill] sm:$0xff] }
 0x780   : > { %5725 = vmatmul.msk.f32.gmra.mxu3 %vm10404_vm10, %v3234_v33  ;;  %vm10441_vm10 = vmmov %vm10164_vm0 }
 0x781   : > { %v6136_v44 = vpop.eup %6135  ;;  %v2921_v29 = vmul.f32 1.442695, %v2794_v58 }
 0x782   : > { %v3109_v57 = vsel %vm10405_vm7, %v6136_v44, 0.0  ;;  %vm10444_vm7 = vmmov %vm10164_vm0 }
 0x783   : > { %6137 = vpow2.f32 %v2921_v29  ;;  %3110 = vadd.xlane.f32.xlu0 %v3109_v57  ;;  %v10410_v57 = vld [vmem:[#allocation42_spill] sm:$0xff] }
 0x789   : > { %v6138_v51 = vpop.eup %6137 }
 0x78a   : > { %v3112_v35 = vsel %vm10406_vm3, %v6138_v51, 0.0  ;;  %vm10447_vm3 = vmmov %vm10164_vm0 }
 0x78b   : > { %3113 = vadd.xlane.f32.xlu1 %v3112_v35 }
 0x7c6   : > { %v3093_v49 = vpop.xlane.xlu2 %3092 }
 0x7c7   : > { %6139 = vrcp.f32 %v3093_v49 }
 0x7cb   : > { %v3596_v7 = vpop.f32.mrf.mxu3 }
 0x7cc   : > { %v3692_v34 = vmul.f32 %v3596_v7, %v10408_v40  ;;  %v10425_v40 = vld [vmem:[#allocation53_spill] sm:$0xff] }
 0x7cd   : > { %v6140_v33 = vpop.eup %6139 }
 0x7ce   : > { %v3755_v62 = vadd.f32 %v3754_v50, %v3692_v34  ;;  %v3096_v58 = vpop.xlane.xlu1 %3095  ;;  %v3235_v16 = vmul.f32 %v6140_v33, %v8518_v45 }
 0x7cf   : > { %6141 = vrcp.f32 %v3096_v58  ;;  %v10413_v58 = vld [vmem:[#allocation44_spill] sm:$0xff] }
 0x7d0   : > { %5726 = vmatmul.msk.f32.gmra.mxu3 %vm10409_vm6, %v3235_v16  ;;  %vm10450_vm6 = vmmov %vm10164_vm0 }
 0x7d3   : > { %v3599_v29 = vpop.f32.mrf.mxu3 }
 0x7d4   : > { %v3693_v35 = vmul.f32 %v3599_v29, %v10410_v57 }
 0x7d5   : > { %v6142_v4 = vpop.eup %6141 }
 0x7d6   : > { %v3756_v22 = vadd.f32 %v3755_v62, %v3693_v35  ;;  %v3099_v49 = vpop.xlane.xlu2 %3098  ;;  %v3236_v61 = vmul.f32 %v6142_v4, %v8529_v21 }
 0x7d7   : > { %6143 = vrcp.f32 %v3099_v49 }
 0x7d8   : > { %5727 = vmatmul.msk.f32.gmra.mxu3 %vm10411_vm9, %v3236_v61  ;;  %v10415_v61 = vld [vmem:[#allocation45_spill] sm:$0xff]  ;;  %vm10453_vm9 = vmmov %vm10164_vm0 }
 0x7db   : > { %v3602_v53 = vpop.f32.mrf.mxu3 }
 0x7dc   : > { %v3694_v34 = vmul.f32 %v3602_v53, %v10412_v38 }
 0x7dd   : > { %v6144_v7 = vpop.eup %6143 }
 0x7de   : > { %v3757_v50 = vadd.f32 %v3756_v22, %v3694_v34  ;;  %v3102_v45 = vpop.xlane.xlu0 %3101  ;;  %v3237_v33 = vmul.f32 %v6144_v7, %v8537_v55 }
 0x7df   : > { %6145 = vrcp.f32 %v3102_v45 }
 0x7e0   : > { %5728 = vmatmul.msk.f32.gmra.mxu3 %vm10164_vm0, %v3237_v33 }
 0x7e3   : > { %v3605_v16 = vpop.f32.mrf.mxu3 }
 0x7e4   : > { %v3695_v62 = vmul.f32 %v3605_v16, %v10413_v58  ;;  %v10424_v58 = vld [vmem:[#allocation51_spill] sm:$0xff] }
 0x7e5   : > { %v6146_v29 = vpop.eup %6145 }
 0x7e6   : > { %v3758_v35 = vadd.f32 %v3757_v50, %v3695_v62  ;;  %v3105_v4 = vpop.xlane.xlu1 %3104  ;;  %v3238_v21 = vmul.f32 %v6146_v29, %v8545_v54 }
 0x7e7   : > { %6147 = vrcp.f32 %v3105_v4 }
 0x7e8   : > { %5729 = vmatmul.msk.f32.gmra.mxu3 %vm10414_vm12, %v3238_v21  ;;  %vm10456_vm12 = vmmov %vm10164_vm0 }
 0x7eb   : > { %v3608_v49 = vpop.f32.mrf.mxu3 }
 0x7ec   : > { %v3696_v22 = vmul.f32 %v3608_v49, %v10415_v61 }
 0x7ed   : > { %v6148_v53 = vpop.eup %6147 }
 0x7ee   : > { %v3759_v34 = vadd.f32 %v3758_v35, %v3696_v22  ;;  %v3108_v55 = vpop.xlane.xlu2 %3107  ;;  %v3239_v7 = vmul.f32 %v6148_v53, %v8553_v24 }
 0x7ef   : > { %6149 = vrcp.f32 %v3108_v55 }
 0x7f0   : > { %5730 = vmatmul.msk.f32.gmra.mxu3 %vm10416_vm15, %v3239_v7  ;;  %v10420_v7 = vld [vmem:[#allocation47_spill] sm:$0xff]  ;;  %vm10458_vm15 = vmmov %vm10164_vm0 }
 0x7f3   : > { %v3611_v24 = vpop.f32.mrf.mxu3 }
 0x7f5   : > { %v6150_v45 = vpop.eup %6149 }
 0x7f6   : > { %v3111_v33 = vpop.xlane.xlu0 %3110  ;;  %v3240_v50 = vmul.f32 %v6150_v45, %v8561_v52  ;;  %v3697_v45 = vmul.f32 %v3611_v24, %v10420_v7  ;;  %v10427_v7 = vld [vmem:[#allocation54_spill] sm:$0xff] }
 0x7f7   : > { %6151 = vrcp.f32 %v3111_v33  ;;  %v10421_v33 = vld [vmem:[#allocation49_spill] sm:$0xff] }
 0x7f8   : > { %5731 = vmatmul.msk.f32.gmra.mxu3 %vm10417_vm4, %v3240_v50  ;;  %vm10459_vm4 = vmmov %vm10164_vm0 }
 0x7fb   : > { %v3614_v4 = vpop.f32.mrf.mxu3 }
 0x7fc   : > { %v3698_v50 = vmul.f32 %v3614_v4, %v10421_v33 }
 0x7fd   : > { %v6152_v54 = vpop.eup %6151 }
 0x7fe   : > { %v3114_v16 = vpop.xlane.xlu1 %3113  ;;  %v3241_v62 = vmul.f32 %v6152_v54, %v6136_v44  ;;  %v3760_v44 = vadd.f32 %v3759_v34, %v3697_v45  ;;  %v10422_v54 = vld [vmem:[#allocation48_spill] sm:$0xff]  ;;  %v10428_v45 = vld [vmem:[#allocation55_spill] sm:$0xff] }
 0x7ff   : > { %6153 = vrcp.f32 %v3114_v16 }
 0x800   : > { %5732 = vmatmul.msk.f32.gmra.mxu3 %vm10418_vm8, %v3241_v62  ;;  %v3761_v61 = vadd.f32 %v3760_v44, %v3698_v50  ;;  %v10429_v50 = vld [vmem:[#allocation56_spill] sm:$0xff]  ;;  %vm10461_vm8 = vmmov %vm10164_vm0 }
 0x803   : > { %v3617_v21 = vpop.f32.mrf.mxu3 }
 0x804   : > { %v3699_v16 = vmul.f32 %v3617_v21, %v10422_v54 }
 0x805   : > { %v6154_v29 = vpop.eup %6153 }
 0x806   : > { %v3242_v35 = vmul.f32 %v6154_v29, %v6138_v51  ;;  %v10423_v51 = vld [vmem:[#allocation50_spill] sm:$0xff] }
 0x808   : > { %5733 = vmatmul.msk.f32.gmra.mxu3 %vm10419_vm13, %v3242_v35  ;;  %v3762_v35 = vadd.f32 %v3761_v61, %v3699_v16  ;;  %vm10462_vm13 = vmmov %vm10164_vm0 }
 0x853   : > { %v3620_v49 = vpop.f32.mrf.mxu3 }
 0x854   : > { %v3700_v29 = vmul.f32 %v3620_v49, %v10423_v51 }
 0x856   : > { %v3763_v57 = vadd.f32 %v3762_v35, %v3700_v29 }
 0x85b   : > { %v3623_v22 = vpop.f32.mrf.mxu3 }
 0x85c   : > { %v3701_v38 = vmul.f32 %v3623_v22, %v10424_v58  ;;  %v10430_v22 = vld [vmem:[#allocation57_spill] sm:$0xff] }
 0x85e   : > { %v3764_v11 = vadd.f32 %v3763_v57, %v3701_v38 }
 0x863   : > { %v3626_v53 = vpop.f32.mrf.mxu3 }
 0x864   : > { %v3702_v47 = vmul.f32 %v3626_v53, %v10425_v40 }
 0x866   : > { %v3765_v24 = vadd.f32 %v3764_v11, %v3702_v47 }
 0x86b   : > { %v3629_v52 = vpop.f32.mrf.mxu3 }
 0x86c   : > { %v3703_v9 = vmul.f32 %v3629_v52, %v10426_v46 }
 0x86e   : > { %v3766_v34 = vadd.f32 %v3765_v24, %v3703_v9 }
 0x873   : > { %v3632_v55 = vpop.f32.mrf.mxu3 }
 0x874   : > { %v3704_v4 = vmul.f32 %v3632_v55, %v10427_v7 }
 0x876   : > { %v3767_v54 = vadd.f32 %v3766_v34, %v3704_v4 }
 0x87b   : > { %v3635_v62 = vpop.f32.mrf.mxu3 }
 0x87c   : > { %v3705_v21 = vmul.f32 %v3635_v62, %v10428_v45 }
 0x87e   : > { %v3768_v49 = vadd.f32 %v3767_v54, %v3705_v21 }
 0x883   : > { %v3638_v32 = vpop.f32.mrf.mxu3 }
 0x884   : > { %v3706_v44 = vmul.f32 %v3638_v32, %v10429_v50 }
 0x886   : > { %v3769_v16 = vadd.f32 %v3768_v49, %v3706_v44 }
 0x88b   : > { %v3641_v61 = vpop.f32.mrf.mxu3 }
 0x88c   : > { %v3707_v29 = vmul.f32 %v3641_v61, %v10430_v22 }
 0x88e   : > { %v3770_v35 = vadd.f32 %v3769_v16, %v3707_v29  ;;  %v10432_v29 = vld [vmem:[#allocation6_spill] sm:$0xff] }
 0x890   : > { %v3771_v53 = vmul.f32 %v3770_v35, %v3770_v35 }
 0x892   : > { %3788 = vmatmul.f32.vlgmr.msrb.gmra.mxu1 %v3771_v53 }
 0x90f   : > { %v3789_v57 = vpop.f32.mrf.mxu1 }
 0x910   : > { %6155 = vrsqrt.f32 %v3789_v57  ;;  %vm3799_vm2 = vcmp.eq.f32.partialorder %v3789_v57, inf  ;;  %v3802_v24 = vand.u32 2147483648, %v3789_v57  ;;  %vm3801_vm5 = vcmp.eq.f32.partialorder %v3789_v57, 0.0 }
 0x911   : > { %v3804_v4 = vadd.f32 1.0, %v3789_v57 }
 0x916   : > { %v6156_v38 = vpop.eup %6155 }
 0x917   : > { %v3793_v11 = vmul.f32 %v6156_v38, %v3789_v57 }
 0x919   : > { %v3794_v47 = vmul.f32 %v6156_v38, %v3793_v11 }
 0x91b   : > { %v3795_v52 = vmul.f32 0.5, %v3794_v47 }
 0x91d   : > { %v3796_v9 = vsub.f32 1.5, %v3795_v52  ;;  %v10434_v52 = vld [vmem:[#allocation8_spill] sm:$0xff] }
 0x91f   : > { %v3797_v55 = vmul.f32 %v6156_v38, %v3796_v9  ;;  %v10433_v38 = vld [vmem:[#allocation7_spill] sm:$0xff] }
 0x921   : > { %v3798_v62 = vmul.f32 %v3797_v55, %v3789_v57 }
 0x923   : > { %v3800_v32 = vsel %vm3799_vm2, %v3789_v57, %v3798_v62  ;;  %vm10464_vm2 = vmmov %vm10164_vm0 }
 0x924   : > { %v3803_v54 = vsel %vm3801_vm5, %v3802_v24, %v3800_v32  ;;  %vm10465_vm5 = vmmov %vm10164_vm0 }
 0x925   : > { %v3805_v34 = vadd.f32 1e-08, %v3803_v54 }
 0x927   : > { %v3806_v21 = vmul.f32 %v3805_v34, %v3804_v4 }
 0x929   : > { %6157 = vrcp.f32 %v3806_v21 }
 0x92f   : > { %v6158_v44 = vpop.eup %6157 }
 0x930   : > { %v3808_v49 = vmul.f32 %v6158_v44, %v3789_v57 }
 0x932   : > { %5751 = vmatmul.msk.f32.vlgmr.msra.gmra.mxu0 %vm10431_vm14, %v3808_v49  ;;  %vm10467_vm14 = vmmov %vm10164_vm0 }
 0x9af   : > { %v3829_v61 = vpop.f32.mrf.mxu0 }
 0x9b0   : > { %v8602_v16 = vmul.f32 %v3829_v61, %v3770_v35 }
 0x9b2   : > { %v3833_v53 = vmul.f32 %v8602_v16, %v10432_v29  ;;  %v3834_v11 = vmul.f32 %v8602_v16, %v10433_v38  ;;  %v3835_v47 = vmul.f32 %v8602_v16, %v7017_v2  ;;  %v3836_v57 = vmul.f32 %v8602_v16, %v10434_v52 }
 0x9b3   : > { %v3837_v35 = vmul.f32 %v8602_v16, %v7019_v3  ;;  %v3838_v9 = vmul.f32 %v8602_v16, %v7023_v5  ;;  %v3839_v55 = vmul.f32 %v8602_v16, %v7039_v15  ;;  %v3840_v62 = vmul.f32 %v8602_v16, %v7025_v6 }
 0x9b4   : > { %3913 = vmatmul.f32.vlgmr.msrb.gmra.mxu0 %v3833_v53  ;;  %v3841_v24 = vmul.f32 %v8602_v16, %v7031_v10  ;;  %v3842_v32 = vmul.f32 %v8602_v16, %v7034_v12  ;;  %v3843_v54 = vmul.f32 %v8602_v16, %v7051_v23  ;;  %v3844_v4 = vmul.f32 %v8602_v16, %v7036_v13  ;;  %v10435_v53 = vld [vmem:[#allocation58_spill] sm:$0xff] }
 0x9b5   : > { %v3845_v34 = vmul.f32 %v8602_v16, %v7042_v17  ;;  %v3846_v21 = vmul.f32 %v8602_v16, %v7045_v19  ;;  %v3847_v44 = vmul.f32 %v8602_v16, %v7063_v31  ;;  %v3848_v49 = vmul.f32 %v8602_v16, %v7047_v20 }
 0x9bc   : > { %3916 = vmatmul.f32.gmra.mxu0 %v3834_v11 }
 0x9c4   : > { %3919 = vmatmul.f32.gmra.mxu0 %v3835_v47  ;;  %v3849_v47 = vmul.f32 %v8602_v16, %v10351_v37 }
 0x9cc   : > { %3922 = vmatmul.f32.gmra.mxu0 %v3836_v57 }
 0x9d4   : > { %3925 = vmatmul.f32.gmra.mxu0 %v3837_v35 }
 0x9dc   : > { %3928 = vmatmul.f32.gmra.mxu0 %v3838_v9  ;;  %v10437_v9 = vld [vmem:[#allocation59_spill] sm:$0xff] }
 0x9e4   : > { %3931 = vmatmul.f32.gmra.mxu0 %v3839_v55 }
 0x9ec   : > { %3934 = vmatmul.f32.gmra.mxu0 %v3840_v62  ;;  %v3850_v62 = vmul.f32 %v8602_v16, %v10352_v30 }
 0x9f4   : > { %3937 = vmatmul.f32.gmra.mxu0 %v3841_v24 }
 0x9fc   : > { %3940 = vmatmul.f32.gmra.mxu0 %v3842_v32 }
 0xa04   : > { %3943 = vmatmul.f32.gmra.mxu0 %v3843_v54  ;;  %v10439_v54 = vld [vmem:[#allocation60_spill] sm:$0xff] }
 0xa0c   : > { %3946 = vmatmul.f32.gmra.mxu0 %v3844_v4 }
 0xa14   : > { %3949 = vmatmul.f32.gmra.mxu0 %v3845_v34  ;;  %v10440_v34 = vld [vmem:[#allocation16_spill] sm:$0xff] }
 0xa1c   : > { %3952 = vmatmul.f32.gmra.mxu0 %v3846_v21  ;;  %v3851_v21 = vmul.f32 %v8602_v16, %v10440_v34 }
 0xa24   : > { %3955 = vmatmul.f32.gmra.mxu0 %v3847_v44 }
 0xa2c   : > { %3958 = vmatmul.f32.gmra.mxu0 %v3848_v49 }
 0xa31   : > { %v3914_v61 = vpop.f32.mrf.mxu0 }
 0xa32   : > { %v8637_v11 = vadd.f32 %v3914_v61, %v10435_v53  ;;  %v10442_v61 = vld [vmem:[#allocation61_spill] sm:$0xff] }
 0xa34   : > { %3961 = vmatmul.f32.gmra.mxu0 %v3849_v47  ;;  %v4170_v57 = vsel %vm10436_vm1, %v8637_v11, -inf  ;;  %v10443_v47 = vld [vmem:[#allocation12_spill] sm:$0xff]  ;;  %vm10468_vm1 = vmmov %vm10164_vm0 }
 0xa35   : > { %4171 = vmax.xlane.f32.xlu2 %v4170_v57  ;;  %v3852_v57 = vmul.f32 %v8602_v16, %v10443_v47 }
 0xa39   : > { %v3917_v35 = vpop.f32.mrf.mxu0 }
 0xa3a   : > { %v8644_v55 = vadd.f32 %v3917_v35, %v10437_v9 }
 0xa3c   : > { %3964 = vmatmul.f32.gmra.mxu0 %v3850_v62  ;;  %v4173_v24 = vsel %vm10438_vm11, %v8644_v55, -inf  ;;  %v10445_v62 = vld [vmem:[#allocation62_spill] sm:$0xff]  ;;  %vm10470_vm11 = vmmov %vm10164_vm0 }
 0xa3d   : > { %4174 = vmax.xlane.f32.xlu0 %v4173_v24 }
 0xa41   : > { %v3920_v32 = vpop.f32.mrf.mxu0 }
 0xa42   : > { %v8651_v4 = vadd.f32 %v3920_v32, %v10439_v54  ;;  %v10446_v32 = vld [vmem:[#allocation13_spill] sm:$0xff] }
 0xa43   : > { %v3853_v54 = vmul.f32 %v8602_v16, %v10446_v32 }
 0xa44   : > { %3967 = vmatmul.f32.gmra.mxu0 %v3851_v21  ;;  %v4176_v44 = vsel %vm10441_vm10, %v8651_v4, -inf  ;;  %vm10471_vm10 = vmmov %vm10164_vm0 }
 0xa45   : > { %4177 = vmax.xlane.f32.xlu1 %v4176_v44 }
 0xa49   : > { %v3923_v49 = vpop.f32.mrf.mxu0 }
 0xa4a   : > { %v8658_v53 = vadd.f32 %v3923_v49, %v10442_v61  ;;  %v10448_v49 = vld [vmem:[#allocation63_spill] sm:$0xff] }
 0xa4c   : > { %3970 = vmatmul.f32.gmra.mxu0 %v3852_v57  ;;  %v4179_v35 = vsel %vm10444_vm7, %v8658_v53, -inf  ;;  %v10449_v57 = vld [vmem:[#allocation14_spill] sm:$0xff]  ;;  %vm10473_vm7 = vmmov %vm10164_vm0 }
 0xa4d   : > { %4180 = vmax.xlane.f32.xlu2 %v4179_v35  ;;  %v3854_v47 = vmul.f32 %v8602_v16, %v10449_v57 }
 0xa51   : > { %v3926_v9 = vpop.f32.mrf.mxu0 }
 0xa52   : > { %v8665_v24 = vadd.f32 %v3926_v9, %v10445_v62  ;;  %v10451_v62 = vld [vmem:[#allocation64_spill] sm:$0xff] }
 0xa54   : > { %3973 = vmatmul.f32.gmra.mxu0 %v3853_v54  ;;  %v4182_v21 = vsel %vm10447_vm3, %v8665_v24, -inf  ;;  %v10452_v54 = vld [vmem:[#allocation20_spill] sm:$0xff]  ;;  %vm10474_vm3 = vmmov %vm10164_vm0 }
 0xa55   : > { %4183 = vmax.xlane.f32.xlu0 %v4182_v21  ;;  %v3855_v34 = vmul.f32 %v8602_v16, %v10452_v54 }
 0xa59   : > { %v3929_v44 = vpop.f32.mrf.mxu0 }
 0xa5a   : > { %v8672_v61 = vadd.f32 %v3929_v44, %v10448_v49  ;;  %v10454_v49 = vld [vmem:[#allocation65_spill] sm:$0xff] }
 0xa5c   : > { %3976 = vmatmul.f32.gmra.mxu0 %v3854_v47  ;;  %v4185_v35 = vsel %vm10450_vm6, %v8672_v61, -inf  ;;  %v3856_v47 = vmul.f32 %v8602_v16, %v10362_v43  ;;  %vm10476_vm6 = vmmov %vm10164_vm0 }
 0xa5d   : > { %4186 = vmax.xlane.f32.xlu1 %v4185_v35 }
 0xa61   : > { %v3932_v9 = vpop.f32.mrf.mxu0 }
 0xa62   : > { %v8679_v32 = vadd.f32 %v3932_v9, %v10451_v62  ;;  %v3857_v9 = vmul.f32 %v8602_v16, %v10364_v14  ;;  %v3858_v62 = vmul.f32 %v8602_v16, %v10366_v1 }
 0xa64   : > { %3979 = vmatmul.f32.gmra.mxu0 %v3855_v34  ;;  %v4188_v21 = vsel %vm10453_vm9, %v8679_v32, -inf  ;;  %vm10477_vm9 = vmmov %vm10164_vm0 }
 0xa65   : > { %4189 = vmax.xlane.f32.xlu2 %v4188_v21 }
 0xa69   : > { %v3935_v44 = vpop.f32.mrf.mxu0 }
 0xa6a   : > { %v8686_v57 = vadd.f32 %v3935_v44, %v10454_v49  ;;  %v3859_v44 = vmul.f32 %v8602_v16, %v10368_v48 }
 0xa6c   : > { %3982 = vmatmul.f32.gmra.mxu0 %v3856_v47  ;;  %v4191_v35 = vsel %vm10164_vm0, %v8686_v57, -inf  ;;  %v3860_v47 = vmul.f32 %v8602_v16, %v10370_v8 }
 0xa6d   : > { %4192 = vmax.xlane.f32.xlu1 %v4191_v35  ;;  %v3861_v35 = vmul.f32 %v8602_v16, %v10371_v59  ;;  %v3864_v59 = vmul.f32 %v8602_v16, %v10374_v41 }
 0xa71   : > { %v3938_v34 = vpop.f32.mrf.mxu0 }
 0xa74   : > { %3985 = vmatmul.f32.gmra.mxu0 %v3857_v9  ;;  %v10455_v9 = vld [vmem:[#allocation22_spill] sm:$0xff] }
 0xa75   : > { %v3862_v1 = vmul.f32 %v8602_v16, %v10455_v9 }
 0xa79   : > { %v3941_v21 = vpop.f32.mrf.mxu0 }
 0xa7c   : > { %3988 = vmatmul.f32.gmra.mxu0 %v3858_v62 }
 0xa81   : > { %v3944_v49 = vpop.f32.mrf.mxu0 }
 0xa84   : > { %3991 = vmatmul.f32.gmra.mxu0 %v3859_v44  ;;  %v3863_v44 = vmul.f32 %v8602_v16, %v10373_v18  ;;  %v3865_v18 = vmul.f32 %v8602_v16, %v10375_v56 }
 0xa89   : > { %v8702_v14 = vpop.f32.mrf.mxu0 }
 0xa8c   : > { %3994 = vmatmul.f32.gmra.mxu0 %v3860_v47 }
 0xa91   : > { %v8706_v62 = vpop.f32.mrf.mxu0 }
 0xa94   : > { %3997 = vmatmul.f32.gmra.mxu0 %v3861_v35 }
 0xa99   : > { %v8710_v48 = vpop.f32.mrf.mxu0 }
 0xa9c   : > { %4000 = vmatmul.f32.gmra.mxu0 %v3862_v1 }
 0xaa1   : > { %v8715_v9 = vpop.f32.mrf.mxu0 }
 0xaa4   : > { %4003 = vmatmul.f32.gmra.mxu0 %v3863_v44 }
 0xaa8   : > { %v4172_v8 = vpop.xlane.xlu2 %4171 }
 0xaa9   : > { %v4362_v47 = vsub.f32 %v8637_v11, %v4172_v8  ;;  %v10457_v11 = vld [vmem:[#allocation66_spill] sm:$0xff]  ;;  %v8732_v56 = vpop.f32.mrf.mxu0 }
 0xaab   : > { %v4426_v43 = vmul.f32 1.442695, %v4362_v47 }
 0xaac   : > { %4006 = vmatmul.f32.gmra.mxu0 %v3864_v59  ;;  %v8725_v59 = vadd.f32 %v3938_v34, %v10457_v11  ;;  %v10460_v34 = vld [vmem:[#allocation67_spill] sm:$0xff] }
 0xaad   : > { %6159 = vpow2.f32 %v4426_v43 }
 0xab0   : > { %v4175_v35 = vpop.xlane.xlu0 %4174 }
 0xab1   : > { %v4363_v1 = vsub.f32 %v8644_v55, %v4175_v35  ;;  %v3866_v55 = vmul.f32 %v8602_v16, %v10376_v27 }
 0xab3   : > { %v8720_v44 = vpop.eup %6159  ;;  %v4428_v54 = vmul.f32 1.442695, %v4363_v1 }
 0xab4   : > { %4009 = vmatmul.f32.gmra.mxu0 %v3865_v18  ;;  %v4554_v8 = vsel %vm10456_vm12, %v8720_v44, 0.0  ;;  %vm10484_vm12 = vmmov %vm10164_vm0 }
 0xab5   : > { %6161 = vpow2.f32 %v4428_v54  ;;  %4555 = vadd.xlane.f32.xlu0 %v4554_v8  ;;  %v4194_v54 = vsel %vm10459_vm4, %v8725_v59, -inf  ;;  %vm10488_vm4 = vmmov %vm10164_vm0 }
 0xab8   : > { %v4178_v43 = vpop.xlane.xlu1 %4177 }
 0xab9   : > { %v4364_v47 = vsub.f32 %v8651_v4, %v4178_v43  ;;  %v8739_v4 = vadd.f32 %v3941_v21, %v10460_v34  ;;  %v3867_v43 = vmul.f32 %v8602_v16, %v10377_v42  ;;  %v10463_v21 = vld [vmem:[#allocation68_spill] sm:$0xff] }
 0xabb   : > { %v8730_v35 = vpop.eup %6161  ;;  %v4430_v1 = vmul.f32 1.442695, %v4364_v47 }
 0xabc   : > { %4012 = vmatmul.f32.gmra.mxu0 %v3866_v55  ;;  %v4557_v18 = vsel %vm10458_vm15, %v8730_v35, 0.0  ;;  %vm10486_vm15 = vmmov %vm10164_vm0 }
 0xabd   : > { %6163 = vpow2.f32 %v4430_v1  ;;  %4558 = vadd.xlane.f32.xlu2 %v4557_v18  ;;  %4195 = vmax.xlane.f32.xlu0 %v4194_v54  ;;  %v4197_v1 = vsel %vm10462_vm13, %v8739_v4, -inf  ;;  %v8750_v18 = vpop.f32.mrf.mxu0  ;;  %vm10492_vm13 = vmmov %vm10164_vm0 }
 0xac0   : > { %v4181_v8 = vpop.xlane.xlu2 %4180 }
 0xac1   : > { %v4365_v11 = vsub.f32 %v8658_v53, %v4181_v8  ;;  %v8753_v53 = vadd.f32 %v3944_v49, %v10463_v21  ;;  %v3868_v8 = vmul.f32 %v8602_v16, %v10379_v25 }
 0xac3   : > { %v8744_v47 = vpop.eup %6163  ;;  %v4432_v55 = vmul.f32 1.442695, %v4365_v11 }
 0xac4   : > { %4015 = vmatmul.f32.gmra.mxu0 %v3867_v43  ;;  %v4560_v27 = vsel %vm10461_vm8, %v8744_v47, 0.0  ;;  %vm10490_vm8 = vmmov %vm10164_vm0 }
 0xac5   : > { %6165 = vpow2.f32 %v4432_v55  ;;  %4561 = vadd.xlane.f32.xlu1 %v4560_v27  ;;  %4198 = vmax.xlane.f32.xlu2 %v4197_v1  ;;  %v4200_v27 = vsel %vm10465_vm5, %v8753_v53, -inf  ;;  %v8764_v49 = vpop.f32.mrf.mxu0  ;;  %v10466_v55 = vld [vmem:[#allocation69_spill] sm:$0xff]  ;;  %vm10495_vm5 = vmmov %vm10164_vm0 }
 0xac8   : > { %v4184_v54 = vpop.xlane.xlu0 %4183 }
 0xac9   : > { %v4366_v34 = vsub.f32 %v8665_v24, %v4184_v54  ;;  %v8768_v24 = vadd.f32 %v8702_v14, %v10466_v55  ;;  %v3869_v54 = vmul.f32 %v8602_v16, %v10380_v60  ;;  %v10469_v14 = vld [vmem:[#allocation70_spill] sm:$0xff] }
 0xacb   : > { %v8758_v11 = vpop.eup %6165  ;;  %v4434_v43 = vmul.f32 1.442695, %v4366_v34 }
 0xacc   : > { %4018 = vmatmul.f32.gmra.mxu0 %v3868_v8  ;;  %v4563_v42 = vsel %vm10464_vm2, %v8758_v11, 0.0  ;;  %vm10493_vm2 = vmmov %vm10164_vm0 }
 0xacd   : > { %6167 = vpow2.f32 %v4434_v43  ;;  %4564 = vadd.xlane.f32.xlu0 %v4563_v42  ;;  %4201 = vmax.xlane.f32.xlu1 %v4200_v27  ;;  %v4203_v43 = vsel %vm10468_vm1, %v8768_v24, -inf  ;;  %v8781_v27 = vadd.f32 %v8706_v62, %v10469_v14  ;;  %v8783_v55 = vpop.f32.mrf.mxu0  ;;  %v10472_v62 = vld [vmem:[#allocation71_spill] sm:$0xff]  ;;  %vm10498_vm1 = vmmov %vm10164_vm0 }
 0xad0   : > { %v4187_v1 = vpop.xlane.xlu1 %4186 }
 0xad1   : > { %v4367_v21 = vsub.f32 %v8672_v61, %v4187_v1 }
 0xad3   : > { %v8773_v34 = vpop.eup %6167  ;;  %v4436_v8 = vmul.f32 1.442695, %v4367_v21  ;;  %v3870_v21 = vmul.f32 %v8602_v16, %v10381_v28 }
 0xad4   : > { %4021 = vmatmul.f32.gmra.mxu0 %v3869_v54  ;;  %v4566_v42 = vsel %vm10467_vm14, %v8773_v34, 0.0  ;;  %vm10497_vm14 = vmmov %vm10164_vm0 }
 0xad5   : > { %6169 = vpow2.f32 %v4436_v8  ;;  %4567 = vadd.xlane.f32.xlu2 %v4566_v42  ;;  %4204 = vmax.xlane.f32.xlu0 %v4203_v43  ;;  %v4206_v42 = vsel %vm10471_vm10, %v8781_v27, -inf  ;;  %v8796_v43 = vadd.f32 %v8710_v48, %v10472_v62  ;;  %v10475_v48 = vld [vmem:[#allocation72_spill] sm:$0xff]  ;;  %vm10502_vm10 = vmmov %vm10164_vm0 }
 0xad8   : > { %v4190_v61 = vpop.xlane.xlu2 %4189 }
 0xad9   : > { %v4368_v1 = vsub.f32 %v8679_v32, %v4190_v61  ;;  %v3871_v61 = vmul.f32 %v8602_v16, %v10382_v26 }
 0xadb   : > { %v8788_v54 = vpop.eup %6169  ;;  %v4438_v60 = vmul.f32 1.442695, %v4368_v1 }
 0xadc   : > { %4024 = vmatmul.f32.gmra.mxu0 %v3870_v21  ;;  %v4569_v8 = vsel %vm10470_vm11, %v8788_v54, 0.0  ;;  %v8803_v21 = vpop.f32.mrf.mxu0  ;;  %vm10500_vm11 = vmmov %vm10164_vm0 }
 0xadd   : > { %6171 = vpow2.f32 %v4438_v60  ;;  %4570 = vadd.xlane.f32.xlu1 %v4569_v8  ;;  %4207 = vmax.xlane.f32.xlu2 %v4206_v42  ;;  %v4209_v8 = vsel %vm10474_vm3, %v8796_v43, -inf  ;;  %v3872_v42 = vmul.f32 %v8602_v16, %v10384_v36  ;;  %vm10505_vm3 = vmmov %vm10164_vm0 }
 0xae0   : > { %v4193_v32 = vpop.xlane.xlu1 %4192 }
 0xae1   : > { %v4369_v14 = vsub.f32 %v8686_v57, %v4193_v32  ;;  %v8811_v57 = vadd.f32 %v8715_v9, %v10475_v48 }
 0xae3   : > { %v8801_v1 = vpop.eup %6171  ;;  %v4440_v28 = vmul.f32 1.442695, %v4369_v14  ;;  %v4212_v14 = vsel %vm10477_vm9, %v8811_v57, -inf  ;;  %vm10508_vm9 = vmmov %vm10164_vm0 }
 0xae4   : > { %4027 = vmatmul.f32.gmra.mxu0 %v3871_v61  ;;  %v4572_v60 = vsel %vm10473_vm7, %v8801_v1, 0.0  ;;  %v8821_v61 = vpop.f32.mrf.mxu0  ;;  %vm10503_vm7 = vmmov %vm10164_vm0 }
 0xae5   : > { %6173 = vpow2.f32 %v4440_v28  ;;  %4573 = vadd.xlane.f32.xlu0 %v4572_v60  ;;  %4210 = vmax.xlane.f32.xlu1 %v4209_v8  ;;  %v10478_v28 = vld [vmem:[#allocation73_spill] sm:$0xff]  ;;  %v3873_v60 = vmul.f32 %v8602_v16, %v10385_v0 }
 0xae6   : > { %v8825_v9 = vadd.f32 %v8732_v56, %v10478_v28  ;;  %v3875_v56 = vmul.f32 %v8602_v16, %v10387_v63  ;;  %v10480_v0 = vld [vmem:[#allocation37_spill] sm:$0xff]  ;;  %v10482_v63 = vld [vmem:[#allocation43_spill] sm:$0xff] }
 0xae8   : > { %v4215_v8 = vsel %vm10164_vm0, %v8825_v9, -inf }
 0xaeb   : > { %v8815_v62 = vpop.eup %6173 }
 0xaec   : > { %4030 = vmatmul.f32.gmra.mxu0 %v3872_v42  ;;  %v4575_v32 = vsel %vm10476_vm6, %v8815_v62, 0.0  ;;  %v8831_v48 = vpop.f32.mrf.mxu0  ;;  %v3874_v42 = vmul.f32 %v8602_v16, %v10386_v39  ;;  %v10481_v39 = vld [vmem:[#allocation38_spill] sm:$0xff]  ;;  %vm10507_vm6 = vmmov %vm10164_vm0 }
 0xaed   : > { %4576 = vadd.xlane.f32.xlu2 %v4575_v32  ;;  %4213 = vmax.xlane.f32.xlu0 %v4212_v14  ;;  %v10479_v14 = vld [vmem:[#allocation35_spill] sm:$0xff] }
 0xaee   : > { %v3876_v28 = vmul.f32 %v8602_v16, %v10479_v14 }
 0xaf4   : > { %4033 = vmatmul.f32.gmra.mxu0 %v3873_v60  ;;  %v8835_v32 = vpop.f32.mrf.mxu0 }
 0xaf5   : > { %4216 = vmax.xlane.f32.xlu2 %v4215_v8  ;;  %v3877_v8 = vmul.f32 %v8602_v16, %v10480_v0 }
 0xafc   : > { %4036 = vmatmul.f32.gmra.mxu0 %v3874_v42  ;;  %v8841_v60 = vpop.f32.mrf.mxu0  ;;  %v3878_v42 = vmul.f32 %v8602_v16, %v10481_v39 }
 0xb04   : > { %4039 = vmatmul.f32.gmra.mxu0 %v3875_v56  ;;  %v8845_v36 = vpop.f32.mrf.mxu0  ;;  %v3879_v56 = vmul.f32 %v8602_v16, %v10482_v63  ;;  %v10485_v63 = vld [vmem:[#allocation41_spill] sm:$0xff] }
 0xb0c   : > { %4042 = vmatmul.f32.gmra.mxu0 %v3876_v28  ;;  %v8849_v26 = vpop.f32.mrf.mxu0  ;;  %v10483_v28 = vld [vmem:[#allocation40_spill] sm:$0xff] }
 0xb0d   : > { %v3880_v0 = vmul.f32 %v8602_v16, %v10483_v28 }
 0xb14   : > { %4045 = vmatmul.f32.gmra.mxu0 %v3877_v8  ;;  %v8853_v25 = vpop.f32.mrf.mxu0 }
 0xb1c   : > { %4048 = vmatmul.f32.gmra.mxu0 %v3878_v42  ;;  %v8862_v37 = vpop.f32.mrf.mxu0 }
 0xb24   : > { %4051 = vmatmul.f32.gmra.mxu0 %v3879_v56  ;;  %v3881_v56 = vmul.f32 %v8602_v16, %v10485_v63 }
 0xb28   : > { %v4556_v14 = vpop.xlane.xlu0 %4555 }
 0xb29   : > { %6175 = vrcp.f32 %v4556_v14 }
 0xb2c   : > { %4054 = vmatmul.f32.gmra.mxu0 %v3880_v0 }
 0xb2f   : > { %v6176_v8 = vpop.eup %6175 }
 0xb30   : > { %v4810_v41 = vmul.f32 %v6176_v8, %v8720_v44  ;;  %v4559_v30 = vpop.xlane.xlu2 %4558  ;;  %v4196_v39 = vpop.xlane.xlu0 %4195 }
 0xb31   : > { %6177 = vrcp.f32 %v4559_v30  ;;  %v4370_v42 = vsub.f32 %v8725_v59, %v4196_v39  ;;  %v10487_v39 = vld [vmem:[#allocation42_spill] sm:$0xff] }
 0xb32   : > { %5769 = vmatmul.msk.f32.vlgmr.msra.gmra.mxu1 %vm10484_vm12, %v4810_v41  ;;  %v3882_v41 = vmul.f32 %v8602_v16, %v10487_v39  ;;  %vm10510_vm12 = vmmov %vm10164_vm0 }
 0xb33   : > { %v4442_v14 = vmul.f32 1.442695, %v4370_v42 }
 0xb34   : > { %4057 = vmatmul.f32.gmra.mxu0 %v3881_v56  ;;  %v8873_v56 = vpop.f32.mrf.mxu0 }
 0xb35   : > { %6179 = vpow2.f32 %v4442_v14 }
 0xb37   : > { %v6178_v28 = vpop.eup %6177 }
 0xb38   : > { %v4562_v0 = vpop.xlane.xlu1 %4561  ;;  %v4199_v20 = vpop.xlane.xlu2 %4198  ;;  %v4811_v44 = vmul.f32 %v6178_v28, %v8730_v35  ;;  %v10489_v28 = vld [vmem:[#allocation74_spill] sm:$0xff] }
 0xb39   : > { %6181 = vrcp.f32 %v4562_v0  ;;  %v4371_v30 = vsub.f32 %v8739_v4, %v4199_v20  ;;  %v8877_v20 = vadd.f32 %v8750_v18, %v10489_v28 }
 0xb3a   : > { %5770 = vmatmul.msk.f32.gmra.mxu1 %vm10486_vm15, %v4811_v44  ;;  %vm10511_vm15 = vmmov %vm10164_vm0 }
 0xb3b   : > { %v8869_v59 = vpop.eup %6179  ;;  %v4444_v8 = vmul.f32 1.442695, %v4371_v30  ;;  %v10491_v30 = vld [vmem:[#allocation46_spill] sm:$0xff] }
 0xb3c   : > { %4060 = vmatmul.f32.gmra.mxu0 %v3882_v41  ;;  %v4578_v42 = vsel %vm10488_vm4, %v8869_v59, 0.0  ;;  %v3883_v41 = vmul.f32 %v8602_v16, %v10491_v30  ;;  %vm10513_vm4 = vmmov %vm10164_vm0 }
 0xb3d   : > { %6183 = vpow2.f32 %v4444_v8  ;;  %4579 = vadd.xlane.f32.xlu1 %v4578_v42  ;;  %v4218_v42 = vsel %vm10493_vm2, %v8877_v20, -inf  ;;  %vm10518_vm2 = vmmov %vm10164_vm0 }
 0xb3f   : > { %v6182_v35 = vpop.eup %6181 }
 0xb40   : > { %v4565_v4 = vpop.xlane.xlu0 %4564  ;;  %v4202_v14 = vpop.xlane.xlu1 %4201  ;;  %v4812_v0 = vmul.f32 %v6182_v35, %v8744_v47  ;;  %v10494_v35 = vld [vmem:[#allocation75_spill] sm:$0xff] }
 0xb41   : > { %6185 = vrcp.f32 %v4565_v4  ;;  %v4372_v44 = vsub.f32 %v8753_v53, %v4202_v14  ;;  %v8890_v53 = vpop.f32.mrf.mxu0  ;;  %v8894_v28 = vadd.f32 %v8764_v49, %v10494_v35 }
 0xb42   : > { %5771 = vmatmul.msk.f32.gmra.mxu1 %vm10490_vm8, %v4812_v0  ;;  %vm10515_vm8 = vmmov %vm10164_vm0 }
 0xb43   : > { %v8884_v39 = vpop.eup %6183  ;;  %v4446_v8 = vmul.f32 1.442695, %v4372_v44  ;;  %v4221_v35 = vsel %vm10498_vm1, %v8894_v28, -inf  ;;  %vm10522_vm1 = vmmov %vm10164_vm0 }
 0xb44   : > { %4063 = vmatmul.f32.gmra.mxu0 %v3883_v41  ;;  %v4581_v18 = vsel %vm10492_vm13, %v8884_v39, 0.0  ;;  %v10496_v41 = vld [vmem:[#allocation44_spill] sm:$0xff]  ;;  %vm10516_vm13 = vmmov %vm10164_vm0 }
 0xb45   : > { %6187 = vpow2.f32 %v4446_v8  ;;  %4582 = vadd.xlane.f32.xlu0 %v4581_v18  ;;  %4219 = vmax.xlane.f32.xlu1 %v4218_v42  ;;  %v3884_v8 = vmul.f32 %v8602_v16, %v10496_v41  ;;  %v10501_v41 = vld [vmem:[#allocation45_spill] sm:$0xff] }
 0xb47   : > { %v6186_v47 = vpop.eup %6185 }
 0xb48   : > { %v4568_v4 = vpop.xlane.xlu2 %4567  ;;  %v4205_v14 = vpop.xlane.xlu0 %4204  ;;  %v4813_v0 = vmul.f32 %v6186_v47, %v8758_v11 }
 0xb49   : > { %6189 = vrcp.f32 %v4568_v4  ;;  %v4373_v44 = vsub.f32 %v8768_v24, %v4205_v14  ;;  %v10499_v24 = vld [vmem:[#allocation76_spill] sm:$0xff] }
 0xb4a   : > { %5772 = vmatmul.msk.f32.gmra.mxu1 %vm10495_vm5, %v4813_v0  ;;  %v8909_v47 = vadd.f32 %v8783_v55, %v10499_v24  ;;  %vm10519_vm5 = vmmov %vm10164_vm0 }
 0xb4b   : > { %v8901_v18 = vpop.eup %6187  ;;  %v4448_v42 = vmul.f32 1.442695, %v4373_v44 }
 0xb4c   : > { %4066 = vmatmul.f32.gmra.mxu0 %v3884_v8  ;;  %v4584_v49 = vsel %vm10497_vm14, %v8901_v18, 0.0  ;;  %v8913_v8 = vpop.f32.mrf.mxu0  ;;  %vm10521_vm14 = vmmov %vm10164_vm0 }
 0xb4d   : > { %6191 = vpow2.f32 %v4448_v42  ;;  %4585 = vadd.xlane.f32.xlu2 %v4584_v49  ;;  %4222 = vmax.xlane.f32.xlu0 %v4221_v35  ;;  %v3885_v42 = vmul.f32 %v8602_v16, %v10501_v41 }
 0xb4f   : > { %v6190_v11 = vpop.eup %6189 }
 0xb50   : > { %v4571_v4 = vpop.xlane.xlu1 %4570  ;;  %v4208_v14 = vpop.xlane.xlu2 %4207  ;;  %v4814_v0 = vmul.f32 %v6190_v11, %v8773_v34  ;;  %v4224_v34 = vsel %vm10503_vm7, %v8909_v47, -inf  ;;  %v10504_v11 = vld [vmem:[#allocation77_spill] sm:$0xff]  ;;  %vm10526_vm7 = vmmov %vm10164_vm0 }
 0xb51   : > { %6193 = vrcp.f32 %v4571_v4  ;;  %v4374_v44 = vsub.f32 %v8781_v27, %v4208_v14  ;;  %v8926_v24 = vadd.f32 %v8803_v21, %v10504_v11 }
 0xb52   : > { %5773 = vmatmul.msk.f32.gmra.mxu1 %vm10500_vm11, %v4814_v0  ;;  %vm10523_vm11 = vmmov %vm10164_vm0 }
 0xb53   : > { %v8918_v49 = vpop.eup %6191  ;;  %v4450_v35 = vmul.f32 1.442695, %v4374_v44 }
 0xb54   : > { %4069 = vmatmul.f32.gmra.mxu0 %v3885_v42  ;;  %v4587_v55 = vsel %vm10502_vm10, %v8918_v49, 0.0  ;;  %v10506_v42 = vld [vmem:[#allocation47_spill] sm:$0xff]  ;;  %vm10524_vm10 = vmmov %vm10164_vm0 }
 0xb55   : > { %6195 = vpow2.f32 %v4450_v35  ;;  %4588 = vadd.xlane.f32.xlu1 %v4587_v55  ;;  %4225 = vmax.xlane.f32.xlu2 %v4224_v34  ;;  %v3886_v41 = vmul.f32 %v8602_v16, %v10506_v42  ;;  %v8935_v34 = vpop.f32.mrf.mxu0 }
 0xb57   : > { %v6194_v27 = vpop.eup %6193 }
 0xb58   : > { %v4574_v4 = vpop.xlane.xlu0 %4573  ;;  %v4211_v14 = vpop.xlane.xlu1 %4210  ;;  %v4815_v0 = vmul.f32 %v6194_v27, %v8788_v54  ;;  %v4227_v54 = vsel %vm10508_vm9, %v8926_v24, -inf  ;;  %v10509_v27 = vld [vmem:[#allocation78_spill] sm:$0xff]  ;;  %vm10530_vm9 = vmmov %vm10164_vm0 }
 0xb59   : > { %6197 = vrcp.f32 %v4574_v4  ;;  %v4375_v44 = vsub.f32 %v8796_v43, %v4211_v14  ;;  %v8943_v11 = vadd.f32 %v8821_v61, %v10509_v27 }
 0xb5a   : > { %5774 = vmatmul.msk.f32.gmra.mxu1 %vm10505_vm3, %v4815_v0  ;;  %vm10527_vm3 = vmmov %vm10164_vm0 }
 0xb5b   : > { %v8933_v35 = vpop.eup %6195  ;;  %v4452_v55 = vmul.f32 1.442695, %v4375_v44  ;;  %v3887_v44 = vmul.f32 %v8602_v16, %v10421_v33 }
 0xb5c   : > { %4072 = vmatmul.f32.gmra.mxu0 %v3886_v41  ;;  %v4590_v21 = vsel %vm10507_vm6, %v8933_v35, 0.0  ;;  %vm10528_vm6 = vmmov %vm10164_vm0 }
 0xb5d   : > { %6199 = vpow2.f32 %v4452_v55  ;;  %4591 = vadd.xlane.f32.xlu0 %v4590_v21  ;;  %4228 = vmax.xlane.f32.xlu1 %v4227_v54  ;;  %v4230_v54 = vsel %vm10511_vm15, %v8943_v11, -inf  ;;  %vm10533_vm15 = vmmov %vm10164_vm0 }
 0xb5f   : > { %v6198_v43 = vpop.eup %6197 }
 0xb60   : > { %v4577_v4 = vpop.xlane.xlu2 %4576  ;;  %v4214_v14 = vpop.xlane.xlu0 %4213  ;;  %v4816_v0 = vmul.f32 %v6198_v43, %v8801_v1  ;;  %v10512_v43 = vld [vmem:[#allocation79_spill] sm:$0xff] }
 0xb61   : > { %6201 = vrcp.f32 %v4577_v4  ;;  %v4376_v41 = vsub.f32 %v8811_v57, %v4214_v14  ;;  %v8956_v1 = vpop.f32.mrf.mxu0  ;;  %v8960_v27 = vadd.f32 %v8831_v48, %v10512_v43  ;;  %v3889_v43 = vmul.f32 %v8602_v16, %v10423_v51 }
 0xb62   : > { %5775 = vmatmul.msk.f32.gmra.mxu1 %vm10164_vm0, %v4816_v0 }
 0xb63   : > { %v8950_v55 = vpop.eup %6199  ;;  %v4454_v21 = vmul.f32 1.442695, %v4376_v41  ;;  %v10514_v41 = vld [vmem:[#allocation48_spill] sm:$0xff]  ;;  %v4233_v48 = vsel %vm10516_vm13, %v8960_v27, -inf  ;;  %vm10537_vm13 = vmmov %vm10164_vm0 }
 0xb64   : > { %4075 = vmatmul.f32.gmra.mxu0 %v3887_v44  ;;  %v4593_v61 = vsel %vm10510_vm12, %v8950_v55, 0.0  ;;  %v3888_v44 = vmul.f32 %v8602_v16, %v10514_v41  ;;  %vm10531_vm12 = vmmov %vm10164_vm0 }
 0xb65   : > { %6203 = vpow2.f32 %v4454_v21  ;;  %4594 = vadd.xlane.f32.xlu2 %v4593_v61  ;;  %4231 = vmax.xlane.f32.xlu0 %v4230_v54 }
 0xb67   : > { %v6202_v57 = vpop.eup %6201 }
 0xb68   : > { %v4217_v4 = vpop.xlane.xlu2 %4216  ;;  %v4817_v14 = vmul.f32 %v6202_v57, %v8815_v62  ;;  %v10517_v62 = vld [vmem:[#allocation80_spill] sm:$0xff] }
 0xb69   : > { %v4377_v0 = vsub.f32 %v8825_v9, %v4217_v4  ;;  %v8975_v9 = vadd.f32 %v8835_v32, %v10517_v62  ;;  %v8977_v57 = vpop.f32.mrf.mxu0  ;;  %v3891_v62 = vmul.f32 %v8602_v16, %v10425_v40 }
 0xb6a   : > { %5776 = vmatmul.msk.f32.gmra.mxu1 %vm10513_vm4, %v4817_v14  ;;  %vm10534_vm4 = vmmov %vm10164_vm0 }
 0xb6b   : > { %v8967_v21 = vpop.eup %6203  ;;  %v4456_v61 = vmul.f32 1.442695, %v4377_v0  ;;  %v4236_v0 = vsel %vm10519_vm5, %v8975_v9, -inf  ;;  %vm10539_vm5 = vmmov %vm10164_vm0 }
 0xb6c   : > { %4078 = vmatmul.f32.gmra.mxu0 %v3888_v44  ;;  %v4596_v54 = vsel %vm10515_vm8, %v8967_v21, 0.0  ;;  %v10520_v44 = vld [vmem:[#allocation81_spill] sm:$0xff]  ;;  %vm10535_vm8 = vmmov %vm10164_vm0 }
 0xb6d   : > { %6205 = vpow2.f32 %v4456_v61  ;;  %4597 = vadd.xlane.f32.xlu1 %v4596_v54  ;;  %4234 = vmax.xlane.f32.xlu2 %v4233_v48  ;;  %v8989_v32 = vadd.f32 %v8841_v60, %v10520_v44  ;;  %v3890_v54 = vmul.f32 %v8602_v16, %v10424_v58  ;;  %v3892_v60 = vmul.f32 %v8602_v16, %v10426_v46 }
 0xb6f   : > { %v4239_v48 = vsel %vm10521_vm14, %v8989_v32, -inf  ;;  %vm10541_vm14 = vmmov %vm10164_vm0 }
 0xb71   : > { %v8991_v61 = vpop.f32.mrf.mxu0 }
 0xb73   : > { %v8981_v4 = vpop.eup %6205 }
 0xb74   : > { %4081 = vmatmul.f32.gmra.mxu0 %v3889_v43  ;;  %v4599_v14 = vsel %vm10518_vm2, %v8981_v4, 0.0  ;;  %vm10538_vm2 = vmmov %vm10164_vm0 }
 0xb75   : > { %4600 = vadd.xlane.f32.xlu0 %v4599_v14  ;;  %4237 = vmax.xlane.f32.xlu1 %v4236_v0  ;;  %v3893_v0 = vmul.f32 %v8602_v16, %v10427_v7 }
 0xb79   : > { %v8999_v43 = vpop.f32.mrf.mxu0 }
 0xb7c   : > { %4084 = vmatmul.f32.gmra.mxu0 %v3890_v54  ;;  %v3894_v54 = vmul.f32 %v8602_v16, %v10428_v45 }
 0xb7d   : > { %4240 = vmax.xlane.f32.xlu0 %v4239_v48 }
 0xb81   : > { %v9003_v14 = vpop.f32.mrf.mxu0 }
 0xb84   : > { %4087 = vmatmul.f32.gmra.mxu0 %v3891_v62  ;;  %v3895_v62 = vmul.f32 %v8602_v16, %v10429_v50 }
 0xb89   : > { %v9007_v44 = vpop.f32.mrf.mxu0 }
 0xb8c   : > { %4090 = vmatmul.f32.gmra.mxu0 %v3892_v60  ;;  %v3896_v60 = vmul.f32 %v8602_v16, %v10430_v22 }
 0xb91   : > { %v9011_v48 = vpop.f32.mrf.mxu0 }
 0xb94   : > { %4093 = vmatmul.f32.gmra.mxu0 %v3893_v0 }
 0xb99   : > { %v9017_v46 = vpop.f32.mrf.mxu0 }
 0xb9c   : > { %4096 = vmatmul.f32.gmra.mxu0 %v3894_v54 }
 0xba4   : > { %4099 = vmatmul.f32.gmra.mxu0 %v3895_v62 }
 0xbac   : > { %4102 = vmatmul.f32.gmra.mxu0 %v3896_v60 }
 0xbb0   : > { %v4580_v7 = vpop.xlane.xlu1 %4579 }
 0xbb1   : > { %6207 = vrcp.f32 %v4580_v7 }
 0xbb7   : > { %v6208_v0 = vpop.eup %6207 }
 0xbb8   : > { %v4583_v40 = vpop.xlane.xlu0 %4582  ;;  %v4220_v58 = vpop.xlane.xlu1 %4219  ;;  %v4818_v45 = vmul.f32 %v6208_v0, %v8869_v59 }
 0xbb9   : > { %6209 = vrcp.f32 %v4583_v40  ;;  %v4378_v54 = vsub.f32 %v8877_v20, %v4220_v58 }
 0xbba   : > { %5777 = vmatmul.msk.f32.gmra.mxu1 %vm10522_vm1, %v4818_v45  ;;  %v10525_v45 = vld [vmem:[#allocation82_spill] sm:$0xff]  ;;  %vm10542_vm1 = vmmov %vm10164_vm0 }
 0xbbb   : > { %v4458_v50 = vmul.f32 1.442695, %v4378_v54 }
 0xbbd   : > { %6211 = vpow2.f32 %v4458_v50  ;;  %v9031_v50 = vadd.f32 %v8845_v36, %v10525_v45 }
 0xbbf   : > { %v6210_v62 = vpop.eup %6209 }
 0xbc0   : > { %v4586_v51 = vpop.xlane.xlu2 %4585  ;;  %v4223_v16 = vpop.xlane.xlu0 %4222  ;;  %v4819_v22 = vmul.f32 %v6210_v62, %v8884_v39  ;;  %v4242_v62 = vsel %vm10528_vm6, %v9031_v50, -inf  ;;  %vm10549_vm6 = vmmov %vm10164_vm0 }
 0xbc1   : > { %6213 = vrcp.f32 %v4586_v51  ;;  %v4379_v7 = vsub.f32 %v8894_v28, %v4223_v16  ;;  %v10529_v16 = vld [vmem:[#allocation83_spill] sm:$0xff] }
 0xbc2   : > { %5778 = vmatmul.msk.f32.gmra.mxu1 %vm10523_vm11, %v4819_v22  ;;  %vm10543_vm11 = vmmov %vm10164_vm0 }
 0xbc3   : > { %v9025_v60 = vpop.eup %6211  ;;  %v4460_v59 = vmul.f32 1.442695, %v4379_v7 }
 0xbc4   : > { %v4602_v40 = vsel %vm10524_vm10, %v9025_v60, 0.0  ;;  %vm10545_vm10 = vmmov %vm10164_vm0 }
 0xbc5   : > { %6215 = vpow2.f32 %v4460_v59  ;;  %4603 = vadd.xlane.f32.xlu2 %v4602_v40 }
 0xbc7   : > { %v6214_v58 = vpop.eup %6213 }
 0xbc8   : > { %v4589_v20 = vpop.xlane.xlu1 %4588  ;;  %v4226_v39 = vpop.xlane.xlu2 %4225  ;;  %v4820_v51 = vmul.f32 %v6214_v58, %v8901_v18  ;;  %v9044_v18 = vadd.f32 %v8849_v26, %v10529_v16 }
 0xbc9   : > { %6217 = vrcp.f32 %v4589_v20  ;;  %v4380_v22 = vsub.f32 %v8909_v47, %v4226_v39 }
 0xbca   : > { %5779 = vmatmul.msk.f32.gmra.mxu1 %vm10526_vm7, %v4820_v51  ;;  %v4245_v39 = vsel %vm10531_vm12, %v9044_v18, -inf  ;;  %v10532_v51 = vld [vmem:[#allocation84_spill] sm:$0xff]  ;;  %vm10546_vm7 = vmmov %vm10164_vm0 }
 0xbcb   : > { %v9036_v28 = vpop.eup %6215  ;;  %v4462_v0 = vmul.f32 1.442695, %v4380_v22  ;;  %vm10552_vm12 = vmmov %vm10164_vm0 }
 0xbcc   : > { %v4605_v54 = vsel %vm10527_vm3, %v9036_v28, 0.0  ;;  %vm10547_vm3 = vmmov %vm10164_vm0 }
 0xbcd   : > { %6219 = vpow2.f32 %v4462_v0  ;;  %4606 = vadd.xlane.f32.xlu1 %v4605_v54  ;;  %4243 = vmax.xlane.f32.xlu2 %v4242_v62 }
 0xbcf   : > { %v6218_v36 = vpop.eup %6217 }
 0xbd0   : > { %v4592_v47 = vpop.xlane.xlu0 %4591  ;;  %v4229_v7 = vpop.xlane.xlu1 %4228  ;;  %v4821_v59 = vmul.f32 %v6218_v36, %v8918_v49  ;;  %v9057_v49 = vadd.f32 %v8853_v25, %v10532_v51 }
 0xbd1   : > { %6221 = vrcp.f32 %v4592_v47  ;;  %v4381_v40 = vsub.f32 %v8926_v24, %v4229_v7  ;;  %v10536_v7 = vld [vmem:[#allocation85_spill] sm:$0xff] }
 0xbd2   : > { %5780 = vmatmul.msk.f32.gmra.mxu1 %vm10530_vm9, %v4821_v59  ;;  %v4248_v47 = vsel %vm10535_vm8, %v9057_v49, -inf  ;;  %vm10550_vm9 = vmmov %vm10164_vm0 }
 0xbd3   : > { %v9049_v58 = vpop.eup %6219  ;;  %v4464_v45 = vmul.f32 1.442695, %v4381_v40  ;;  %vm10556_vm8 = vmmov %vm10164_vm0 }
 0xbd4   : > { %v4608_v20 = vsel %vm10164_vm0, %v9049_v58, 0.0 }
 0xbd5   : > { %6223 = vpow2.f32 %v4464_v45  ;;  %4609 = vadd.xlane.f32.xlu0 %v4608_v20  ;;  %4246 = vmax.xlane.f32.xlu1 %v4245_v39 }
 0xbd7   : > { %v6222_v26 = vpop.eup %6221 }
 0xbd8   : > { %v4595_v24 = vpop.xlane.xlu2 %4594  ;;  %v4232_v22 = vpop.xlane.xlu0 %4231  ;;  %v4822_v0 = vmul.f32 %v6222_v26, %v8933_v35  ;;  %v9070_v35 = vadd.f32 %v8862_v37, %v10536_v7  ;;  %v10544_v7 = vld [vmem:[#allocation87_spill] sm:$0xff] }
 0xbd9   : > { %6225 = vrcp.f32 %v4595_v24  ;;  %v4382_v54 = vsub.f32 %v8943_v11, %v4232_v22  ;;  %v10540_v24 = vld [vmem:[#allocation86_spill] sm:$0xff] }
 0xbda   : > { %5781 = vmatmul.msk.f32.gmra.mxu1 %vm10533_vm15, %v4822_v0  ;;  %v4251_v51 = vsel %vm10539_vm5, %v9070_v35, -inf  ;;  %vm10553_vm15 = vmmov %vm10164_vm0 }
 0xbdb   : > { %v9062_v62 = vpop.eup %6223  ;;  %v4466_v36 = vmul.f32 1.442695, %v4382_v54  ;;  %vm10560_vm5 = vmmov %vm10164_vm0 }
 0xbdc   : > { %v4611_v16 = vsel %vm10534_vm4, %v9062_v62, 0.0  ;;  %vm10554_vm4 = vmmov %vm10164_vm0 }
 0xbdd   : > { %6227 = vpow2.f32 %v4466_v36  ;;  %4612 = vadd.xlane.f32.xlu2 %v4611_v16  ;;  %4249 = vmax.xlane.f32.xlu0 %v4248_v47 }
 0xbdf   : > { %v6226_v25 = vpop.eup %6225 }
 0xbe0   : > { %v4598_v11 = vpop.xlane.xlu1 %4597  ;;  %v4235_v59 = vpop.xlane.xlu2 %4234  ;;  %v4823_v40 = vmul.f32 %v6226_v25, %v8950_v55  ;;  %v9083_v55 = vadd.f32 %v8873_v56, %v10540_v24  ;;  %v10551_v24 = vld [vmem:[#allocation89_spill] sm:$0xff] }
 0xbe1   : > { %6229 = vrcp.f32 %v4598_v11  ;;  %v4383_v45 = vsub.f32 %v8960_v27, %v4235_v59 }
 0xbe2   : > { %5782 = vmatmul.msk.f32.gmra.mxu1 %vm10537_vm13, %v4823_v40  ;;  %v4254_v25 = vsel %vm10543_vm11, %v9083_v55, -inf  ;;  %vm10557_vm13 = vmmov %vm10164_vm0 }
 0xbe3   : > { %v9075_v20 = vpop.eup %6227  ;;  %v4468_v39 = vmul.f32 1.442695, %v4383_v45  ;;  %vm10564_vm11 = vmmov %vm10164_vm0 }
 0xbe4   : > { %v4614_v26 = vsel %vm10538_vm2, %v9075_v20, 0.0  ;;  %vm10558_vm2 = vmmov %vm10164_vm0 }
 0xbe5   : > { %6231 = vpow2.f32 %v4468_v39  ;;  %4615 = vadd.xlane.f32.xlu1 %v4614_v26  ;;  %4252 = vmax.xlane.f32.xlu2 %v4251_v51 }
 0xbe7   : > { %v6230_v37 = vpop.eup %6229 }
 0xbe8   : > { %v4601_v27 = vpop.xlane.xlu0 %4600  ;;  %v4238_v22 = vpop.xlane.xlu1 %4237  ;;  %v4824_v0 = vmul.f32 %v6230_v37, %v8967_v21  ;;  %v9096_v21 = vadd.f32 %v8890_v53, %v10544_v7  ;;  %v10548_v53 = vld [vmem:[#allocation88_spill] sm:$0xff] }
 0xbe9   : > { %6233 = vrcp.f32 %v4601_v27  ;;  %v4384_v54 = vsub.f32 %v8975_v9, %v4238_v22  ;;  %v9109_v51 = vadd.f32 %v8913_v8, %v10548_v53  ;;  %v9119_v27 = vadd.f32 %v8935_v34, %v10551_v24 }
 0xbea   : > { %5783 = vmatmul.msk.f32.gmra.mxu1 %vm10541_vm14, %v4824_v0  ;;  %v4257_v26 = vsel %vm10547_vm3, %v9096_v21, -inf  ;;  %vm10561_vm14 = vmmov %vm10164_vm0 }
 0xbeb   : > { %v9088_v36 = vpop.eup %6231  ;;  %v4470_v16 = vmul.f32 1.442695, %v4384_v54  ;;  %v4260_v37 = vsel %vm10550_vm9, %v9109_v51, -inf  ;;  %v4263_v22 = vsel %vm10164_vm0, %v9119_v27, -inf  ;;  %vm10568_vm3 = vmmov %vm10164_vm0 }
 0xbec   : > { %v4617_v47 = vsel %vm10542_vm1, %v9088_v36, 0.0  ;;  %vm10562_vm1 = vmmov %vm10164_vm0 }
 0xbed   : > { %6235 = vpow2.f32 %v4470_v16  ;;  %4618 = vadd.xlane.f32.xlu0 %v4617_v47  ;;  %4255 = vmax.xlane.f32.xlu1 %v4254_v25  ;;  %vm10570_vm9 = vmmov %vm10164_vm0 }
 0xbef   : > { %v6234_v56 = vpop.eup %6233 }
 0xbf0   : > { %v4241_v9 = vpop.xlane.xlu0 %4240  ;;  %v4825_v11 = vmul.f32 %v6234_v56, %v8981_v4 }
 0xbf1   : > { %v4385_v59 = vsub.f32 %v8989_v32, %v4241_v9 }
 0xbf2   : > { %5784 = vmatmul.msk.f32.gmra.mxu1 %vm10545_vm10, %v4825_v11  ;;  %vm10565_vm10 = vmmov %vm10164_vm0 }
 0xbf3   : > { %v9101_v40 = vpop.eup %6235  ;;  %v4472_v45 = vmul.f32 1.442695, %v4385_v59 }
 0xbf4   : > { %v4620_v39 = vsel %vm10546_vm7, %v9101_v40, 0.0  ;;  %vm10566_vm7 = vmmov %vm10164_vm0 }
 0xbf5   : > { %6237 = vpow2.f32 %v4472_v45  ;;  %4621 = vadd.xlane.f32.xlu2 %v4620_v39  ;;  %4258 = vmax.xlane.f32.xlu0 %v4257_v26  ;;  %v10555_v26 = vld [vmem:[#allocation90_spill] sm:$0xff] }
 0xbf6   : > { %v9135_v53 = vadd.f32 %v8956_v1, %v10555_v26 }
 0xbfb   : > { %v9111_v4 = vpop.eup %6237 }
 0xbfc   : > { %v4623_v32 = vsel %vm10549_vm6, %v9111_v4, 0.0  ;;  %vm10569_vm6 = vmmov %vm10164_vm0 }
 0xbfd   : > { %4624 = vadd.xlane.f32.xlu1 %v4623_v32  ;;  %4261 = vmax.xlane.f32.xlu2 %v4260_v37 }
 0xc05   : > { %4264 = vmax.xlane.f32.xlu1 %v4263_v22 }
 0xc38   : > { %v4604_v8 = vpop.xlane.xlu2 %4603 }
 0xc39   : > { %6239 = vrcp.f32 %v4604_v8 }
 0xc3f   : > { %v6240_v0 = vpop.eup %6239 }
 0xc40   : > { %v4607_v54 = vpop.xlane.xlu1 %4606  ;;  %v4244_v16 = vpop.xlane.xlu2 %4243  ;;  %v4826_v47 = vmul.f32 %v6240_v0, %v9025_v60  ;;  %v4266_v0 = vsel %vm10558_vm2, %v9135_v53, -inf  ;;  %vm10579_vm2 = vmmov %vm10164_vm0 }
 0xc41   : > { %6241 = vrcp.f32 %v4607_v54  ;;  %v4386_v25 = vsub.f32 %v9031_v50, %v4244_v16  ;;  %v10559_v54 = vld [vmem:[#allocation91_spill] sm:$0xff] }
 0xc42   : > { %5785 = vmatmul.msk.f32.gmra.mxu1 %vm10552_vm12, %v4826_v47  ;;  %vm10572_vm12 = vmmov %vm10164_vm0 }
 0xc43   : > { %v4474_v56 = vmul.f32 1.442695, %v4386_v25 }
 0xc45   : > { %6243 = vpow2.f32 %v4474_v56 }
 0xc47   : > { %v6242_v34 = vpop.eup %6241 }
 0xc48   : > { %v4610_v7 = vpop.xlane.xlu0 %4609  ;;  %v4247_v9 = vpop.xlane.xlu1 %4246  ;;  %v4827_v11 = vmul.f32 %v6242_v34, %v9036_v28 }
 0xc49   : > { %6245 = vrcp.f32 %v4610_v7  ;;  %v4387_v59 = vsub.f32 %v9044_v18, %v4247_v9 }
 0xc4a   : > { %5786 = vmatmul.msk.f32.gmra.mxu1 %vm10553_vm15, %v4827_v11  ;;  %v10563_v11 = vld [vmem:[#allocation92_spill] sm:$0xff]  ;;  %vm10573_vm15 = vmmov %vm10164_vm0 }
 0xc4b   : > { %v9129_v45 = vpop.eup %6243  ;;  %v4476_v60 = vmul.f32 1.442695, %v4387_v59 }
 0xc4c   : > { %v4626_v50 = vsel %vm10554_vm4, %v9129_v45, 0.0  ;;  %vm10575_vm4 = vmmov %vm10164_vm0 }
 0xc4d   : > { %6247 = vpow2.f32 %v4476_v60  ;;  %4627 = vadd.xlane.f32.xlu0 %v4626_v50 }
 0xc4f   : > { %v6246_v39 = vpop.eup %6245 }
 0xc50   : > { %v4613_v32 = vpop.xlane.xlu2 %4612  ;;  %v4250_v28 = vpop.xlane.xlu0 %4249  ;;  %v4828_v37 = vmul.f32 %v6246_v39, %v9049_v58  ;;  %v9148_v58 = vadd.f32 %v8977_v57, %v10559_v54 }
 0xc51   : > { %6249 = vrcp.f32 %v4613_v32  ;;  %v4388_v18 = vsub.f32 %v9057_v49, %v4250_v28 }
 0xc52   : > { %5787 = vmatmul.msk.f32.gmra.mxu1 %vm10556_vm8, %v4828_v37  ;;  %v4269_v9 = vsel %vm10562_vm1, %v9148_v58, -inf  ;;  %v10567_v37 = vld [vmem:[#allocation93_spill] sm:$0xff]  ;;  %vm10576_vm8 = vmmov %vm10164_vm0 }
 0xc53   : > { %v9140_v24 = vpop.eup %6247  ;;  %v4478_v22 = vmul.f32 1.442695, %v4388_v18  ;;  %vm10583_vm1 = vmmov %vm10164_vm0 }
 0xc54   : > { %v4629_v8 = vsel %vm10557_vm13, %v9140_v24, 0.0  ;;  %vm10577_vm13 = vmmov %vm10164_vm0 }
 0xc55   : > { %6251 = vpow2.f32 %v4478_v22  ;;  %4630 = vadd.xlane.f32.xlu2 %v4629_v8  ;;  %4267 = vmax.xlane.f32.xlu0 %v4266_v0 }
 0xc57   : > { %v6250_v1 = vpop.eup %6249 }
 0xc58   : > { %v4616_v49 = vpop.xlane.xlu1 %4615  ;;  %v4253_v16 = vpop.xlane.xlu2 %4252  ;;  %v4829_v47 = vmul.f32 %v6250_v1, %v9062_v62  ;;  %v9161_v62 = vadd.f32 %v8991_v61, %v10563_v11 }
 0xc59   : > { %6253 = vrcp.f32 %v4616_v49  ;;  %v4389_v25 = vsub.f32 %v9070_v35, %v4253_v16  ;;  %v10571_v16 = vld [vmem:[#allocation94_spill] sm:$0xff] }
 0xc5a   : > { %5788 = vmatmul.msk.f32.gmra.mxu1 %vm10560_vm5, %v4829_v47  ;;  %v4272_v28 = vsel %vm10566_vm7, %v9161_v62, -inf  ;;  %vm10580_vm5 = vmmov %vm10164_vm0 }
 0xc5b   : > { %v9153_v56 = vpop.eup %6251  ;;  %v4480_v34 = vmul.f32 1.442695, %v4389_v25  ;;  %vm10587_vm7 = vmmov %vm10164_vm0 }
 0xc5c   : > { %v4632_v7 = vsel %vm10561_vm14, %v9153_v56, 0.0  ;;  %vm10582_vm14 = vmmov %vm10164_vm0 }
 0xc5d   : > { %6255 = vpow2.f32 %v4480_v34  ;;  %4633 = vadd.xlane.f32.xlu1 %v4632_v7  ;;  %4270 = vmax.xlane.f32.xlu2 %v4269_v9 }
 0xc5f   : > { %v6254_v57 = vpop.eup %6253 }
 0xc60   : > { %v4619_v35 = vpop.xlane.xlu0 %4618  ;;  %v4256_v59 = vpop.xlane.xlu1 %4255  ;;  %v4830_v60 = vmul.f32 %v6254_v57, %v9075_v20  ;;  %v9174_v20 = vadd.f32 %v8999_v43, %v10567_v37 }
 0xc61   : > { %6257 = vrcp.f32 %v4619_v35  ;;  %v4390_v50 = vsub.f32 %v9083_v55, %v4256_v59  ;;  %v10574_v35 = vld [vmem:[#allocation95_spill] sm:$0xff] }
 0xc62   : > { %5789 = vmatmul.msk.f32.gmra.mxu1 %vm10564_vm11, %v4830_v60  ;;  %v4275_v49 = vsel %vm10570_vm9, %v9174_v20, -inf  ;;  %vm10584_vm11 = vmmov %vm10164_vm0 }
 0xc63   : > { %v9166_v39 = vpop.eup %6255  ;;  %v4482_v26 = vmul.f32 1.442695, %v4390_v50  ;;  %vm10591_vm9 = vmmov %vm10164_vm0 }
 0xc64   : > { %v4635_v32 = vsel %vm10565_vm10, %v9166_v39, 0.0  ;;  %vm10585_vm10 = vmmov %vm10164_vm0 }
 0xc65   : > { %6259 = vpow2.f32 %v4482_v26  ;;  %4636 = vadd.xlane.f32.xlu0 %v4635_v32  ;;  %4273 = vmax.xlane.f32.xlu1 %v4272_v28 }
 0xc67   : > { %v6258_v61 = vpop.eup %6257 }
 0xc68   : > { %v4622_v55 = vpop.xlane.xlu2 %4621  ;;  %v4259_v18 = vpop.xlane.xlu0 %4258  ;;  %v4831_v22 = vmul.f32 %v6258_v61, %v9088_v36  ;;  %v9187_v36 = vadd.f32 %v9003_v14, %v10571_v16 }
 0xc69   : > { %6261 = vrcp.f32 %v4622_v55  ;;  %v4391_v8 = vsub.f32 %v9096_v21, %v4259_v18  ;;  %v10581_v55 = vld [vmem:[#allocation97_spill] sm:$0xff] }
 0xc6a   : > { %5790 = vmatmul.msk.f32.gmra.mxu1 %vm10568_vm3, %v4831_v22  ;;  %v4278_v11 = vsel %vm10573_vm15, %v9187_v36, -inf  ;;  %v9223_v18 = vadd.f32 %v9017_v46, %v10581_v55  ;;  %vm10588_vm3 = vmmov %vm10164_vm0 }
 0xc6b   : > { %v9179_v0 = vpop.eup %6259  ;;  %v4484_v1 = vmul.f32 1.442695, %v4391_v8  ;;  %vm10594_vm15 = vmmov %vm10164_vm0 }
 0xc6c   : > { %v4638_v54 = vsel %vm10569_vm6, %v9179_v0, 0.0  ;;  %v4287_v22 = vsel %vm10582_vm14, %v9223_v18, -inf  ;;  %vm10589_vm6 = vmmov %vm10164_vm0 }
 0xc6d   : > { %6263 = vpow2.f32 %v4484_v1  ;;  %4639 = vadd.xlane.f32.xlu2 %v4638_v54  ;;  %4276 = vmax.xlane.f32.xlu0 %v4275_v49  ;;  %v4034_v49 = vpop.f32.mrf.mxu0  ;;  %vm10602_vm14 = vmmov %vm10164_vm0 }
 0xc6f   : > { %v6262_v43 = vpop.eup %6261 }
 0xc70   : > { %v4625_v21 = vpop.xlane.xlu1 %4624  ;;  %v4262_v47 = vpop.xlane.xlu2 %4261  ;;  %v4832_v25 = vmul.f32 %v6262_v43, %v9101_v40  ;;  %v9200_v40 = vadd.f32 %v9007_v44, %v10574_v35  ;;  %v10578_v44 = vld [vmem:[#allocation96_spill] sm:$0xff] }
 0xc71   : > { %6265 = vrcp.f32 %v4625_v21  ;;  %v4392_v34 = vsub.f32 %v9109_v51, %v4262_v47  ;;  %v9213_v61 = vadd.f32 %v9011_v48, %v10578_v44  ;;  %v9227_v48 = vpop.f32.mrf.mxu1 }
 0xc72   : > { %5791 = vmatmul.msk.f32.gmra.mxu1 %vm10164_vm0, %v4832_v25  ;;  %v4281_v28 = vsel %vm10577_vm13, %v9200_v40, -inf  ;;  %vm10598_vm13 = vmmov %vm10164_vm0 }
 0xc73   : > { %v9192_v7 = vpop.eup %6263  ;;  %v4486_v9 = vmul.f32 1.442695, %v4392_v34  ;;  %v4284_v37 = vsel %vm10580_vm5, %v9213_v61, -inf  ;;  %vm10600_vm5 = vmmov %vm10164_vm0 }
 0xc74   : > { %v4641_v57 = vsel %vm10572_vm12, %v9192_v7, 0.0  ;;  %vm10592_vm12 = vmmov %vm10164_vm0 }
 0xc75   : > { %6267 = vpow2.f32 %v4486_v9  ;;  %4642 = vadd.xlane.f32.xlu1 %v4641_v57  ;;  %4279 = vmax.xlane.f32.xlu2 %v4278_v11 }
 0xc77   : > { %v6266_v14 = vpop.eup %6265 }
 0xc78   : > { %v4265_v51 = vpop.xlane.xlu1 %4264  ;;  %v4833_v59 = vmul.f32 %v6266_v14, %v9111_v4  ;;  %v4037_v14 = vpop.f32.mrf.mxu0 }
 0xc79   : > { %v4393_v60 = vsub.f32 %v9119_v27, %v4265_v51  ;;  %v9229_v1 = vpop.f32.mrf.mxu1 }
 0xc7a   : > { %5792 = vmatmul.msk.f32.gmra.mxu1 %vm10575_vm4, %v4833_v59  ;;  %vm10595_vm4 = vmmov %vm10164_vm0 }
 0xc7b   : > { %v9205_v50 = vpop.eup %6267  ;;  %v4488_v26 = vmul.f32 1.442695, %v4393_v60  ;;  %v10586_v60 = vld [vmem:[#allocation98_spill] sm:$0xff] }
 0xc7c   : > { %v4644_v32 = vsel %vm10576_vm8, %v9205_v50, 0.0  ;;  %vm10596_vm8 = vmmov %vm10164_vm0 }
 0xc7d   : > { %6269 = vpow2.f32 %v4488_v26  ;;  %4645 = vadd.xlane.f32.xlu0 %v4644_v32  ;;  %4282 = vmax.xlane.f32.xlu1 %v4281_v28  ;;  %v9244_v26 = vadd.f32 %v4034_v49, %v10586_v60 }
 0xc81   : > { %v9234_v34 = vpop.f32.mrf.mxu1 }
 0xc83   : > { %v9215_v4 = vpop.eup %6269 }
 0xc84   : > { %v4647_v27 = vsel %vm10579_vm2, %v9215_v4, 0.0  ;;  %vm10599_vm2 = vmmov %vm10164_vm0 }
 0xc85   : > { %4648 = vadd.xlane.f32.xlu2 %v4647_v27  ;;  %4285 = vmax.xlane.f32.xlu0 %v4284_v37  ;;  %v4040_v37 = vpop.f32.mrf.mxu0 }
 0xc89   : > { %v9247_v44 = vpop.f32.mrf.mxu1 }
 0xc8d   : > { %4288 = vmax.xlane.f32.xlu2 %v4287_v22 }
 0xcc0   : > { %v4628_v8 = vpop.xlane.xlu0 %4627 }
 0xcc1   : > { %6271 = vrcp.f32 %v4628_v8  ;;  %v4290_v8 = vsel %vm10589_vm6, %v9244_v26, -inf  ;;  %vm10610_vm6 = vmmov %vm10164_vm0 }
 0xcc7   : > { %v6272_v54 = vpop.eup %6271 }
 0xcc8   : > { %v4631_v43 = vpop.xlane.xlu2 %4630  ;;  %v4268_v16 = vpop.xlane.xlu0 %4267  ;;  %v4834_v21 = vmul.f32 %v6272_v54, %v9129_v45  ;;  %v10590_v54 = vld [vmem:[#allocation99_spill] sm:$0xff] }
 0xcc9   : > { %6273 = vrcp.f32 %v4631_v43  ;;  %v4394_v46 = vsub.f32 %v9135_v53, %v4268_v16  ;;  %v9258_v49 = vadd.f32 %v4037_v14, %v10590_v54  ;;  %v10593_v14 = vld [vmem:[#allocation100_spill] sm:$0xff] }
 0xcca   : > { %5793 = vmatmul.msk.f32.gmra.mxu1 %vm10583_vm1, %v4834_v21  ;;  %vm10603_vm1 = vmmov %vm10164_vm0 }
 0xccb   : > { %v4490_v47 = vmul.f32 1.442695, %v4394_v46 }
 0xccd   : > { %6275 = vpow2.f32 %v4490_v47  ;;  %v9265_v47 = vpop.f32.mrf.mxu1 }
 0xccf   : > { %v6274_v25 = vpop.eup %6273 }
 0xcd0   : > { %v4634_v9 = vpop.xlane.xlu1 %4633  ;;  %v4271_v57 = vpop.xlane.xlu2 %4270  ;;  %v4835_v11 = vmul.f32 %v6274_v25, %v9140_v24 }
 0xcd1   : > { %6277 = vrcp.f32 %v4634_v9  ;;  %v4395_v35 = vsub.f32 %v9148_v58, %v4271_v57  ;;  %v4293_v57 = vsel %vm10592_vm12, %v9258_v49, -inf  ;;  %vm10613_vm12 = vmmov %vm10164_vm0 }
 0xcd2   : > { %5794 = vmatmul.msk.f32.gmra.mxu1 %vm10584_vm11, %v4835_v11  ;;  %v4043_v11 = vpop.f32.mrf.mxu0  ;;  %vm10604_vm11 = vmmov %vm10164_vm0 }
 0xcd3   : > { %v9239_v45 = vpop.eup %6275  ;;  %v4492_v53 = vmul.f32 1.442695, %v4395_v35 }
 0xcd4   : > { %v4650_v51 = vsel %vm10585_vm10, %v9239_v45, 0.0  ;;  %vm10606_vm10 = vmmov %vm10164_vm0 }
 0xcd5   : > { %6279 = vpow2.f32 %v4492_v53  ;;  %4651 = vadd.xlane.f32.xlu1 %v4650_v51 }
 0xcd7   : > { %v6278_v59 = vpop.eup %6277 }
 0xcd8   : > { %v4637_v32 = vpop.xlane.xlu0 %4636  ;;  %v4274_v24 = vpop.xlane.xlu1 %4273  ;;  %v4836_v28 = vmul.f32 %v6278_v59, %v9153_v56 }
 0xcd9   : > { %6281 = vrcp.f32 %v4637_v32  ;;  %v4396_v58 = vsub.f32 %v9161_v62, %v4274_v24 }
 0xcda   : > { %5795 = vmatmul.msk.f32.gmra.mxu1 %vm10587_vm7, %v4836_v28  ;;  %vm10607_vm7 = vmmov %vm10164_vm0 }
 0xcdb   : > { %v9251_v27 = vpop.eup %6279  ;;  %v4494_v55 = vmul.f32 1.442695, %v4396_v58  ;;  %v9283_v58 = vpop.f32.mrf.mxu1 }
 0xcdc   : > { %v4653_v22 = vsel %vm10588_vm3, %v9251_v27, 0.0  ;;  %vm10608_vm3 = vmmov %vm10164_vm0 }
 0xcdd   : > { %6283 = vpow2.f32 %v4494_v55  ;;  %4654 = vadd.xlane.f32.xlu0 %v4653_v22  ;;  %4291 = vmax.xlane.f32.xlu1 %v4290_v8  ;;  %v10597_v55 = vld [vmem:[#allocation101_spill] sm:$0xff] }
 0xcdf   : > { %v6282_v56 = vpop.eup %6281 }
 0xce0   : > { %v4640_v62 = vpop.xlane.xlu2 %4639  ;;  %v4277_v43 = vpop.xlane.xlu0 %4276  ;;  %v4837_v16 = vmul.f32 %v6282_v56, %v9166_v39 }
 0xce1   : > { %6285 = vrcp.f32 %v4640_v62  ;;  %v4397_v21 = vsub.f32 %v9174_v20, %v4277_v43  ;;  %v9272_v20 = vadd.f32 %v4040_v37, %v10593_v14  ;;  %v4046_v37 = vpop.f32.mrf.mxu0 }
 0xce2   : > { %5796 = vmatmul.msk.f32.gmra.mxu1 %vm10591_vm9, %v4837_v16  ;;  %vm10611_vm9 = vmmov %vm10164_vm0 }
 0xce3   : > { %v9263_v46 = vpop.eup %6283  ;;  %v4496_v25 = vmul.f32 1.442695, %v4397_v21  ;;  %v4296_v28 = vsel %vm10596_vm8, %v9272_v20, -inf  ;;  %vm10617_vm8 = vmmov %vm10164_vm0 }
 0xce4   : > { %v4656_v9 = vsel %vm10164_vm0, %v9263_v46, 0.0 }
 0xce5   : > { %6287 = vpow2.f32 %v4496_v25  ;;  %4657 = vadd.xlane.f32.xlu2 %v4656_v9  ;;  %4294 = vmax.xlane.f32.xlu0 %v4293_v57  ;;  %v9297_v9 = vpop.f32.mrf.mxu1 }
 0xce7   : > { %v6286_v39 = vpop.eup %6285 }
 0xce8   : > { %v4643_v35 = vpop.xlane.xlu1 %4642  ;;  %v4280_v53 = vpop.xlane.xlu2 %4279  ;;  %v4838_v51 = vmul.f32 %v6286_v39, %v9179_v0 }
 0xce9   : > { %6289 = vrcp.f32 %v4643_v35  ;;  %v4398_v59 = vsub.f32 %v9187_v36, %v4280_v53  ;;  %v9286_v36 = vadd.f32 %v4043_v11, %v10597_v55  ;;  %v4049_v14 = vpop.f32.mrf.mxu0 }
 0xcea   : > { %5797 = vmatmul.msk.f32.gmra.mxu1 %vm10594_vm15, %v4838_v51  ;;  %vm10614_vm15 = vmmov %vm10164_vm0 }
 0xceb   : > { %v9277_v60 = vpop.eup %6287  ;;  %v4498_v32 = vmul.f32 1.442695, %v4398_v59  ;;  %v4299_v21 = vsel %vm10600_vm5, %v9286_v36, -inf  ;;  %vm10621_vm5 = vmmov %vm10164_vm0 }
 0xcec   : > { %v4659_v24 = vsel %vm10595_vm4, %v9277_v60, 0.0  ;;  %vm10615_vm4 = vmmov %vm10164_vm0 }
 0xced   : > { %6291 = vpow2.f32 %v4498_v32  ;;  %4660 = vadd.xlane.f32.xlu1 %v4659_v24  ;;  %4297 = vmax.xlane.f32.xlu2 %v4296_v28  ;;  %v9316_v55 = vpop.f32.mrf.mxu1 }
 0xcef   : > { %v6290_v0 = vpop.eup %6289 }
 0xcf0   : > { %v4646_v22 = vpop.xlane.xlu0 %4645  ;;  %v4283_v8 = vpop.xlane.xlu1 %4282  ;;  %v4839_v56 = vmul.f32 %v6290_v0, %v9192_v7  ;;  %v10601_v7 = vld [vmem:[#allocation102_spill] sm:$0xff] }
 0xcf1   : > { %6293 = vrcp.f32 %v4646_v22  ;;  %v4399_v54 = vsub.f32 %v9200_v40, %v4283_v8  ;;  %v9300_v57 = vadd.f32 %v4046_v37, %v10601_v7  ;;  %v4052_v8 = vpop.f32.mrf.mxu0 }
 0xcf2   : > { %5798 = vmatmul.msk.f32.gmra.mxu1 %vm10598_vm13, %v4839_v56  ;;  %vm10618_vm13 = vmmov %vm10164_vm0 }
 0xcf3   : > { %v9291_v62 = vpop.eup %6291  ;;  %v4500_v43 = vmul.f32 1.442695, %v4399_v54  ;;  %v4302_v32 = vsel %vm10604_vm11, %v9300_v57, -inf  ;;  %vm10625_vm11 = vmmov %vm10164_vm0 }
 0xcf4   : > { %v4662_v16 = vsel %vm10599_vm2, %v9291_v62, 0.0  ;;  %vm10619_vm2 = vmmov %vm10164_vm0 }
 0xcf5   : > { %6295 = vpow2.f32 %v4500_v43  ;;  %4663 = vadd.xlane.f32.xlu0 %v4662_v16  ;;  %4300 = vmax.xlane.f32.xlu1 %v4299_v21 }
 0xcf7   : > { %v6294_v25 = vpop.eup %6293 }
 0xcf8   : > { %v4649_v40 = vpop.xlane.xlu2 %4648  ;;  %v4286_v11 = vpop.xlane.xlu0 %4285  ;;  %v4840_v39 = vmul.f32 %v6294_v25, %v9205_v50  ;;  %v10605_v50 = vld [vmem:[#allocation103_spill] sm:$0xff] }
 0xcf9   : > { %6297 = vrcp.f32 %v4649_v40  ;;  %v4400_v35 = vsub.f32 %v9213_v61, %v4286_v11  ;;  %v9312_v28 = vadd.f32 %v4049_v14, %v10605_v50  ;;  %v4055_v7 = vpop.f32.mrf.mxu0  ;;  %v10612_v40 = vld [vmem:[#allocation105_spill] sm:$0xff]  ;;  %v9339_v14 = vpop.f32.mrf.mxu1 }
 0xcfa   : > { %5799 = vmatmul.msk.f32.gmra.mxu1 %vm10602_vm14, %v4840_v39  ;;  %v9335_v11 = vadd.f32 %v4055_v7, %v10612_v40  ;;  %vm10622_vm14 = vmmov %vm10164_vm0 }
 0xcfb   : > { %v9305_v53 = vpop.eup %6295  ;;  %v4502_v51 = vmul.f32 1.442695, %v4400_v35  ;;  %v4305_v43 = vsel %vm10608_vm3, %v9312_v28, -inf  ;;  %vm10629_vm3 = vmmov %vm10164_vm0 }
 0xcfc   : > { %v4665_v59 = vsel %vm10603_vm1, %v9305_v53, 0.0  ;;  %v4311_v39 = vsel %vm10164_vm0, %v9335_v11, -inf  ;;  %vm10623_vm1 = vmmov %vm10164_vm0 }
 0xcfd   : > { %6299 = vpow2.f32 %v4502_v51  ;;  %4666 = vadd.xlane.f32.xlu2 %v4665_v59  ;;  %4303 = vmax.xlane.f32.xlu0 %v4302_v32 }
 0xcff   : > { %v6298_v24 = vpop.eup %6297 }
 0xd00   : > { %v4289_v0 = vpop.xlane.xlu2 %4288  ;;  %v4841_v61 = vmul.f32 %v6298_v24, %v9215_v4  ;;  %v10609_v4 = vld [vmem:[#allocation104_spill] sm:$0xff] }
 0xd01   : > { %v4401_v37 = vsub.f32 %v9223_v18, %v4289_v0  ;;  %v9326_v16 = vadd.f32 %v4052_v8, %v10609_v4  ;;  %v9341_v35 = vpop.f32.mrf.mxu1  ;;  %v4058_v0 = vpop.f32.mrf.mxu0 }
 0xd02   : > { %5800 = vmatmul.msk.f32.gmra.mxu1 %vm10606_vm10, %v4841_v61  ;;  %vm10626_vm10 = vmmov %vm10164_vm0 }
 0xd03   : > { %v9319_v22 = vpop.eup %6299  ;;  %v4504_v56 = vmul.f32 1.442695, %v4401_v37  ;;  %v4308_v25 = vsel %vm10611_vm9, %v9326_v16, -inf  ;;  %vm10631_vm9 = vmmov %vm10164_vm0 }
 0xd04   : > { %v4668_v54 = vsel %vm10607_vm7, %v9319_v22, 0.0  ;;  %vm10627_vm7 = vmmov %vm10164_vm0 }
 0xd05   : > { %6301 = vpow2.f32 %v4504_v56  ;;  %4669 = vadd.xlane.f32.xlu1 %v4668_v54  ;;  %4306 = vmax.xlane.f32.xlu2 %v4305_v43 }
 0xd09   : > { %v9343_v51 = vpop.f32.mrf.mxu1  ;;  %v4061_v40 = vpop.f32.mrf.mxu0 }
 0xd0b   : > { %v9328_v18 = vpop.eup %6301 }
 0xd0c   : > { %v4671_v21 = vsel %vm10610_vm6, %v9328_v18, 0.0  ;;  %vm10630_vm6 = vmmov %vm10164_vm0 }
 0xd0d   : > { %4672 = vadd.xlane.f32.xlu0 %v4671_v21  ;;  %4309 = vmax.xlane.f32.xlu1 %v4308_v25 }
 0xd11   : > { %v9345_v59 = vpop.f32.mrf.mxu1 }
 0xd15   : > { %4312 = vmax.xlane.f32.xlu0 %v4311_v39 }
 0xd19   : > { %v9347_v32 = vpop.f32.mrf.mxu1 }
 0xd21   : > { %v9350_v56 = vpop.f32.mrf.mxu1 }
 0xd48   : > { %v4652_v24 = vpop.xlane.xlu1 %4651 }
 0xd49   : > { %6303 = vrcp.f32 %v4652_v24  ;;  %v9359_v24 = vpop.f32.mrf.mxu1 }
 0xd4f   : > { %v6304_v50 = vpop.eup %6303 }
 0xd50   : > { %v4655_v61 = vpop.xlane.xlu0 %4654  ;;  %v4292_v37 = vpop.xlane.xlu1 %4291  ;;  %v4842_v8 = vmul.f32 %v6304_v50, %v9239_v45 }
 0xd51   : > { %6305 = vrcp.f32 %v4655_v61  ;;  %v4402_v54 = vsub.f32 %v9244_v26, %v4292_v37  ;;  %v10616_v37 = vld [vmem:[#allocation106_spill] sm:$0xff] }
 0xd52   : > { %5801 = vmatmul.msk.f32.gmra.mxu1 %vm10613_vm12, %v4842_v8  ;;  %v9364_v8 = vadd.f32 %v4058_v0, %v10616_v37  ;;  %vm10633_vm12 = vmmov %vm10164_vm0 }
 0xd53   : > { %v4506_v43 = vmul.f32 1.442695, %v4402_v54 }
 0xd54   : > { %v4314_v0 = vsel %vm10619_vm2, %v9364_v8, -inf  ;;  %vm10641_vm2 = vmmov %vm10164_vm0 }
 0xd55   : > { %6307 = vpow2.f32 %v4506_v43 }
 0xd57   : > { %v6306_v4 = vpop.eup %6305 }
 0xd58   : > { %v4658_v21 = vpop.xlane.xlu2 %4657  ;;  %v4295_v25 = vpop.xlane.xlu0 %4294  ;;  %v4843_v7 = vmul.f32 %v6306_v4, %v9251_v27 }
 0xd59   : > { %6309 = vrcp.f32 %v4658_v21  ;;  %v4403_v39 = vsub.f32 %v9258_v49, %v4295_v25  ;;  %v4064_v21 = vpop.f32.mrf.mxu0 }
 0xd5a   : > { %5802 = vmatmul.msk.f32.gmra.mxu1 %vm10614_vm15, %v4843_v7  ;;  %vm10634_vm15 = vmmov %vm10164_vm0 }
 0xd5b   : > { %v9357_v45 = vpop.eup %6307  ;;  %v4508_v26 = vmul.f32 1.442695, %v4403_v39  ;;  %v9375_v39 = vpop.f32.mrf.mxu1 }
 0xd5c   : > { %v4674_v50 = vsel %vm10615_vm4, %v9357_v45, 0.0  ;;  %vm10636_vm4 = vmmov %vm10164_vm0 }
 0xd5d   : > { %6311 = vpow2.f32 %v4508_v26  ;;  %4675 = vadd.xlane.f32.xlu2 %v4674_v50  ;;  %v10620_v26 = vld [vmem:[#allocation107_spill] sm:$0xff] }
 0xd5f   : > { %v6310_v61 = vpop.eup %6309 }
 0xd60   : > { %v4661_v27 = vpop.xlane.xlu1 %4660  ;;  %v4298_v54 = vpop.xlane.xlu2 %4297  ;;  %v4844_v49 = vmul.f32 %v6310_v61, %v9263_v46 }
 0xd61   : > { %6313 = vrcp.f32 %v4661_v27  ;;  %v4404_v43 = vsub.f32 %v9272_v20, %v4298_v54  ;;  %v9378_v20 = vadd.f32 %v4061_v40, %v10620_v26  ;;  %v4067_v40 = vpop.f32.mrf.mxu0 }
 0xd62   : > { %5803 = vmatmul.msk.f32.gmra.mxu1 %vm10617_vm8, %v4844_v49  ;;  %vm10638_vm8 = vmmov %vm10164_vm0 }
 0xd63   : > { %v9369_v4 = vpop.eup %6311  ;;  %v4510_v25 = vmul.f32 1.442695, %v4404_v43 }
 0xd64   : > { %v4677_v7 = vsel %vm10618_vm13, %v9369_v4, 0.0  ;;  %vm10639_vm13 = vmmov %vm10164_vm0 }
 0xd65   : > { %6315 = vpow2.f32 %v4510_v25  ;;  %4678 = vadd.xlane.f32.xlu1 %v4677_v7  ;;  %4315 = vmax.xlane.f32.xlu2 %v4314_v0  ;;  %v4317_v25 = vsel %vm10623_vm1, %v9378_v20, -inf  ;;  %v9389_v7 = vpop.f32.mrf.mxu1  ;;  %v10624_v0 = vld [vmem:[#allocation108_spill] sm:$0xff]  ;;  %vm10652_vm1 = vmmov %vm10164_vm0 }
 0xd67   : > { %v6314_v46 = vpop.eup %6313 }
 0xd68   : > { %v4664_v50 = vpop.xlane.xlu0 %4663  ;;  %v4301_v61 = vpop.xlane.xlu1 %4300  ;;  %v4845_v37 = vmul.f32 %v6314_v46, %v9277_v60 }
 0xd69   : > { %6317 = vrcp.f32 %v4664_v50  ;;  %v4405_v27 = vsub.f32 %v9286_v36, %v4301_v61  ;;  %v9392_v36 = vadd.f32 %v4064_v21, %v10624_v0 }
 0xd6a   : > { %5804 = vmatmul.msk.f32.gmra.mxu1 %vm10621_vm5, %v4845_v37  ;;  %vm10642_vm5 = vmmov %vm10164_vm0 }
 0xd6b   : > { %v9383_v54 = vpop.eup %6315  ;;  %v4512_v49 = vmul.f32 1.442695, %v4405_v27 }
 0xd6c   : > { %v4680_v43 = vsel %vm10622_vm14, %v9383_v54, 0.0  ;;  %vm10645_vm14 = vmmov %vm10164_vm0 }
 0xd6d   : > { %6319 = vpow2.f32 %v4512_v49  ;;  %4681 = vadd.xlane.f32.xlu0 %v4680_v43  ;;  %4318 = vmax.xlane.f32.xlu1 %v4317_v25  ;;  %v4320_v43 = vsel %vm10627_vm7, %v9392_v36, -inf  ;;  %v4070_v25 = vpop.f32.mrf.mxu0  ;;  %vm10656_vm7 = vmmov %vm10164_vm0 }
 0xd6f   : > { %v6318_v60 = vpop.eup %6317 }
 0xd70   : > { %v4667_v46 = vpop.xlane.xlu2 %4666  ;;  %v4304_v26 = vpop.xlane.xlu0 %4303  ;;  %v4846_v50 = vmul.f32 %v6318_v60, %v9291_v62  ;;  %v10628_v60 = vld [vmem:[#allocation109_spill] sm:$0xff] }
 0xd71   : > { %6321 = vrcp.f32 %v4667_v46  ;;  %v4406_v61 = vsub.f32 %v9300_v57, %v4304_v26  ;;  %v9403_v62 = vpop.f32.mrf.mxu1  ;;  %v9406_v57 = vadd.f32 %v4067_v40, %v10628_v60  ;;  %v10632_v60 = vld [vmem:[#allocation110_spill] sm:$0xff] }
 0xd72   : > { %5805 = vmatmul.msk.f32.gmra.mxu1 %vm10625_vm11, %v4846_v50  ;;  %vm10653_vm11 = vmmov %vm10164_vm0 }
 0xd73   : > { %v9397_v37 = vpop.eup %6319  ;;  %v4514_v27 = vmul.f32 1.442695, %v4406_v61 }
 0xd74   : > { %v4683_v49 = vsel %vm10626_vm10, %v9397_v37, 0.0  ;;  %vm10654_vm10 = vmmov %vm10164_vm0 }
 0xd75   : > { %6323 = vpow2.f32 %v4514_v27  ;;  %4684 = vadd.xlane.f32.xlu2 %v4683_v49  ;;  %4321 = vmax.xlane.f32.xlu0 %v4320_v43  ;;  %v4323_v43 = vsel %vm10631_vm9, %v9406_v57, -inf  ;;  %vm10660_vm9 = vmmov %vm10164_vm0 }
 0xd77   : > { %v6322_v21 = vpop.eup %6321 }
 0xd78   : > { %v4670_v0 = vpop.xlane.xlu1 %4669  ;;  %v4307_v46 = vpop.xlane.xlu2 %4306  ;;  %v4847_v26 = vmul.f32 %v6322_v21, %v9305_v53  ;;  %v9418_v53 = vadd.f32 %v4070_v25, %v10632_v60 }
 0xd79   : > { %6325 = vrcp.f32 %v4670_v0  ;;  %v4407_v50 = vsub.f32 %v9312_v28, %v4307_v46  ;;  %v4073_v46 = vpop.f32.mrf.mxu0 }
 0xd7a   : > { %5806 = vmatmul.msk.f32.gmra.mxu1 %vm10629_vm3, %v4847_v26  ;;  %v9421_v26 = vpop.f32.mrf.mxu1  ;;  %v4326_v25 = vsel %vm10634_vm15, %v9418_v53, -inf  ;;  %vm10657_vm3 = vmmov %vm10164_vm0 }
 0xd7b   : > { %v9411_v61 = vpop.eup %6323  ;;  %v4516_v27 = vmul.f32 1.442695, %v4407_v50  ;;  %vm10663_vm15 = vmmov %vm10164_vm0 }
 0xd7c   : > { %v4686_v49 = vsel %vm10630_vm6, %v9411_v61, 0.0  ;;  %vm10658_vm6 = vmmov %vm10164_vm0 }
 0xd7d   : > { %6327 = vpow2.f32 %v4516_v27  ;;  %4687 = vadd.xlane.f32.xlu1 %v4686_v49  ;;  %4324 = vmax.xlane.f32.xlu2 %v4323_v43  ;;  %v10635_v43 = vld [vmem:[#allocation111_spill] sm:$0xff] }
 0xd7f   : > { %v6326_v40 = vpop.eup %6325 }
 0xd80   : > { %v4673_v21 = vpop.xlane.xlu0 %4672  ;;  %v4310_v28 = vpop.xlane.xlu1 %4309  ;;  %v4848_v0 = vmul.f32 %v6326_v40, %v9319_v22  ;;  %v9432_v40 = vadd.f32 %v4073_v46, %v10635_v43 }
 0xd81   : > { %6329 = vrcp.f32 %v4673_v21  ;;  %v4408_v50 = vsub.f32 %v9326_v16, %v4310_v28 }
 0xd82   : > { %5807 = vmatmul.msk.f32.gmra.mxu1 %vm10164_vm0, %v4848_v0  ;;  %v4076_v0 = vpop.f32.mrf.mxu0  ;;  %v4329_v46 = vsel %vm10639_vm13, %v9432_v40, -inf  ;;  %vm10668_vm13 = vmmov %vm10164_vm0 }
 0xd83   : > { %v9425_v41 = vpop.eup %6327  ;;  %v4518_v27 = vmul.f32 1.442695, %v4408_v50  ;;  %v9439_v50 = vpop.f32.mrf.mxu1 }
 0xd84   : > { %v4689_v49 = vsel %vm10633_vm12, %v9425_v41, 0.0  ;;  %10637 = vst [vmem:[#allocation113_spill] sm:$0xff] %v9439_v50  ;;  %vm10661_vm12 = vmmov %vm10164_vm0 }
 0xd85   : > { %6331 = vpow2.f32 %v4518_v27  ;;  %4690 = vadd.xlane.f32.xlu0 %v4689_v49  ;;  %4327 = vmax.xlane.f32.xlu1 %v4326_v25 }
 0xd87   : > { %v6330_v22 = vpop.eup %6329 }
 0xd88   : > { %v4313_v60 = vpop.xlane.xlu0 %4312  ;;  %v4849_v16 = vmul.f32 %v6330_v22, %v9328_v18  ;;  %v10640_v18 = vld [vmem:[#allocation112_spill] sm:$0xff] }
 0xd89   : > { %v4409_v21 = vsub.f32 %v9335_v11, %v4313_v60  ;;  %v9446_v49 = vadd.f32 %v4076_v0, %v10640_v18 }
 0xd8a   : > { %5808 = vmatmul.msk.f32.gmra.mxu1 %vm10636_vm4, %v4849_v16  ;;  %v4079_v43 = vpop.f32.mrf.mxu0  ;;  %v10644_v16 = vld [vmem:[#allocation114_spill] sm:$0xff]  ;;  %vm10665_vm4 = vmmov %vm10164_vm0 }
 0xd8b   : > { %v9437_v28 = vpop.eup %6331  ;;  %v4520_v33 = vmul.f32 1.442695, %v4409_v21  ;;  %v4332_v22 = vsel %vm10642_vm5, %v9446_v49, -inf  ;;  %v9454_v60 = vpop.f32.mrf.mxu1  ;;  %vm10671_vm5 = vmmov %vm10164_vm0 }
 0xd8c   : > { %v4692_v27 = vsel %vm10638_vm8, %v9437_v28, 0.0  ;;  %10643 = vst [vmem:[#allocation115_spill] sm:$0xff] %v9454_v60  ;;  %vm10666_vm8 = vmmov %vm10164_vm0 }
 0xd8d   : > { %6333 = vpow2.f32 %v4520_v33  ;;  %4693 = vadd.xlane.f32.xlu2 %v4692_v27  ;;  %4330 = vmax.xlane.f32.xlu0 %v4329_v46  ;;  %v9457_v33 = vadd.f32 %v4079_v43, %v10644_v16 }
 0xd8f   : > { %v4335_v21 = vsel %vm10645_vm14, %v9457_v33, -inf  ;;  %vm10673_vm14 = vmmov %vm10164_vm0 }
 0xd92   : > { %v4082_v43 = vpop.f32.mrf.mxu0 }
 0xd93   : > { %v9448_v11 = vpop.eup %6333  ;;  %v9461_v0 = vpop.f32.mrf.mxu1 }
 0xd94   : > { %v4695_v25 = vsel %vm10641_vm2, %v9448_v11, 0.0  ;;  %10646 = vst [vmem:[#allocation116_spill] sm:$0xff] %v9461_v0  ;;  %vm10670_vm2 = vmmov %vm10164_vm0 }
 0xd95   : > { %4696 = vadd.xlane.f32.xlu1 %v4695_v25  ;;  %4333 = vmax.xlane.f32.xlu2 %v4332_v22 }
 0xd9a   : > { %v4085_v0 = vpop.f32.mrf.mxu0 }
 0xd9b   : > { %v9463_v27 = vpop.f32.mrf.mxu1 }
 0xd9c   : > { %10647 = vst [vmem:[#allocation117_spill] sm:$0xff] %v9463_v27 }
 0xd9d   : > { %4336 = vmax.xlane.f32.xlu1 %v4335_v21 }
 0xda3   : > { %v9465_v46 = vpop.f32.mrf.mxu1 }
 0xda4   : > { %10648 = vst [vmem:[#allocation118_spill] sm:$0xff] %v9465_v46 }
 0xdab   : > { %v9467_v18 = vpop.f32.mrf.mxu1 }
 0xdac   : > { %10649 = vst [vmem:[#allocation119_spill] sm:$0xff] %v9467_v18 }
 0xdb3   : > { %v9469_v42 = vpop.f32.mrf.mxu1 }
 0xdb4   : > { %10650 = vst [vmem:[#allocation120_spill] sm:$0xff] %v9469_v42 }
 0xdbb   : > { %v9471_v30 = vpop.f32.mrf.mxu1 }
 0xdbc   : > { %10651 = vst [vmem:[#allocation121_spill] sm:$0xff] %v9471_v30 }
 0xdc3   : > { %v9474_v60 = vpop.f32.mrf.mxu1 }
 0xdd0   : > { %v4676_v25 = vpop.xlane.xlu2 %4675 }
 0xdd1   : > { %6335 = vrcp.f32 %v4676_v25 }
 0xdd7   : > { %v6336_v22 = vpop.eup %6335 }
 0xdd8   : > { %v4679_v16 = vpop.xlane.xlu1 %4678  ;;  %v4316_v63 = vpop.xlane.xlu2 %4315  ;;  %v4850_v21 = vmul.f32 %v6336_v22, %v9357_v45 }
 0xdd9   : > { %6337 = vrcp.f32 %v4679_v16  ;;  %v4410_v27 = vsub.f32 %v9364_v8, %v4316_v63  ;;  %v9483_v22 = vpop.f32.mrf.mxu1 }
 0xdda   : > { %5809 = vmatmul.msk.f32.gmra.mxu1 %vm10652_vm1, %v4850_v21  ;;  %vm10674_vm1 = vmmov %vm10164_vm0 }
 0xddb   : > { %v4522_v18 = vmul.f32 1.442695, %v4410_v27 }
 0xddd   : > { %6339 = vpow2.f32 %v4522_v18  ;;  %v10655_v18 = vld [vmem:[#allocation122_spill] sm:$0xff] }
 0xdde   : > { %v9488_v16 = vadd.f32 %v4082_v43, %v10655_v18 }
 0xddf   : > { %v6338_v42 = vpop.eup %6337 }
 0xde0   : > { %v4682_v46 = vpop.xlane.xlu0 %4681  ;;  %v4319_v30 = vpop.xlane.xlu1 %4318  ;;  %v4851_v25 = vmul.f32 %v6338_v42, %v9369_v4  ;;  %v4338_v43 = vsel %vm10658_vm6, %v9488_v16, -inf  ;;  %vm10681_vm6 = vmmov %vm10164_vm0 }
 0xde1   : > { %6341 = vrcp.f32 %v4682_v46  ;;  %v4411_v50 = vsub.f32 %v9378_v20, %v4319_v30 }
 0xde2   : > { %5810 = vmatmul.msk.f32.gmra.mxu1 %vm10653_vm11, %v4851_v25  ;;  %vm10675_vm11 = vmmov %vm10164_vm0 }
 0xde3   : > { %v9481_v45 = vpop.eup %6339  ;;  %v4524_v63 = vmul.f32 1.442695, %v4411_v50  ;;  %v4088_v50 = vpop.f32.mrf.mxu0 }
 0xde4   : > { %v4698_v8 = vsel %vm10654_vm10, %v9481_v45, 0.0  ;;  %vm10677_vm10 = vmmov %vm10164_vm0 }
 0xde5   : > { %6343 = vpow2.f32 %v4524_v63  ;;  %4699 = vadd.xlane.f32.xlu0 %v4698_v8  ;;  %v9499_v63 = vpop.f32.mrf.mxu1  ;;  %v10659_v8 = vld [vmem:[#allocation123_spill] sm:$0xff] }
 0xde7   : > { %v6342_v27 = vpop.eup %6341 }
 0xde8   : > { %v4685_v42 = vpop.xlane.xlu2 %4684  ;;  %v4322_v4 = vpop.xlane.xlu0 %4321  ;;  %v4852_v30 = vmul.f32 %v6342_v27, %v9383_v54 }
 0xde9   : > { %6345 = vrcp.f32 %v4685_v42  ;;  %v4412_v20 = vsub.f32 %v9392_v36, %v4322_v4  ;;  %v9502_v36 = vadd.f32 %v4085_v0, %v10659_v8 }
 0xdea   : > { %5811 = vmatmul.msk.f32.gmra.mxu1 %vm10656_vm7, %v4852_v30  ;;  %vm10678_vm7 = vmmov %vm10164_vm0 }
 0xdeb   : > { %v9493_v46 = vpop.eup %6343  ;;  %v4526_v21 = vmul.f32 1.442695, %v4412_v20  ;;  %v4091_v0 = vpop.f32.mrf.mxu0 }
 0xdec   : > { %v4701_v25 = vsel %vm10657_vm3, %v9493_v46, 0.0  ;;  %vm10679_vm3 = vmmov %vm10164_vm0 }
 0xded   : > { %6347 = vpow2.f32 %v4526_v21  ;;  %4702 = vadd.xlane.f32.xlu2 %v4701_v25  ;;  %4339 = vmax.xlane.f32.xlu0 %v4338_v43  ;;  %v4341_v25 = vsel %vm10661_vm12, %v9502_v36, -inf  ;;  %vm10719_vm12 = vmmov %vm10164_vm0 }
 0xdef   : > { %v6346_v54 = vpop.eup %6345 }
 0xdf0   : > { %v4688_v27 = vpop.xlane.xlu1 %4687  ;;  %v4325_v18 = vpop.xlane.xlu2 %4324  ;;  %v4853_v42 = vmul.f32 %v6346_v54, %v9397_v37  ;;  %v10662_v54 = vld [vmem:[#allocation124_spill] sm:$0xff] }
 0xdf1   : > { %6349 = vrcp.f32 %v4688_v27  ;;  %v4413_v4 = vsub.f32 %v9406_v57, %v4325_v18  ;;  %v9513_v37 = vpop.f32.mrf.mxu1  ;;  %v9516_v57 = vadd.f32 %v4088_v50, %v10662_v54 }
 0xdf2   : > { %5812 = vmatmul.msk.f32.gmra.mxu1 %vm10660_vm9, %v4853_v42  ;;  %vm10682_vm9 = vmmov %vm10164_vm0 }
 0xdf3   : > { %v9507_v30 = vpop.eup %6347  ;;  %v4528_v20 = vmul.f32 1.442695, %v4413_v4  ;;  %v4094_v54 = vpop.f32.mrf.mxu0 }
 0xdf4   : > { %v4704_v21 = vsel %vm10164_vm0, %v9507_v30, 0.0 }
 0xdf5   : > { %6351 = vpow2.f32 %v4528_v20  ;;  %4705 = vadd.xlane.f32.xlu1 %v4704_v21  ;;  %4342 = vmax.xlane.f32.xlu2 %v4341_v25  ;;  %v4344_v25 = vsel %vm10666_vm8, %v9516_v57, -inf  ;;  %vm10724_vm8 = vmmov %vm10164_vm0 }
 0xdf7   : > { %v6350_v43 = vpop.eup %6349 }
 0xdf8   : > { %v4691_v8 = vpop.xlane.xlu0 %4690  ;;  %v4328_v27 = vpop.xlane.xlu1 %4327  ;;  %v4854_v18 = vmul.f32 %v6350_v43, %v9411_v61  ;;  %v10667_v61 = vld [vmem:[#allocation125_spill] sm:$0xff] }
 0xdf9   : > { %6353 = vrcp.f32 %v4691_v8  ;;  %v4414_v42 = vsub.f32 %v9418_v53, %v4328_v27  ;;  %v9528_v43 = vadd.f32 %v4091_v0, %v10667_v61 }
 0xdfa   : > { %5813 = vmatmul.msk.f32.gmra.mxu1 %vm10663_vm15, %v4854_v18  ;;  %v9531_v18 = vpop.f32.mrf.mxu1  ;;  %vm10721_vm15 = vmmov %vm10164_vm0 }
 0xdfb   : > { %v9521_v4 = vpop.eup %6351  ;;  %v4530_v20 = vmul.f32 1.442695, %v4414_v42  ;;  %v4347_v0 = vsel %vm10671_vm5, %v9528_v43, -inf  ;;  %vm10729_vm5 = vmmov %vm10164_vm0 }
 0xdfc   : > { %10664 = vst [vmem:[#allocation127_spill] sm:$0xff] %v9521_v4  ;;  %v4707_v21 = vsel %vm10665_vm4, %v9521_v4, 0.0  ;;  %vm10722_vm4 = vmmov %vm10164_vm0 }
 0xdfd   : > { %6355 = vpow2.f32 %v4530_v20  ;;  %4708 = vadd.xlane.f32.xlu0 %v4707_v21  ;;  %4345 = vmax.xlane.f32.xlu1 %v4344_v25  ;;  %v10672_v25 = vld [vmem:[#allocation126_spill] sm:$0xff] }
 0xdff   : > { %v6354_v50 = vpop.eup %6353 }
 0xe00   : > { %v4694_v53 = vpop.xlane.xlu2 %4693  ;;  %v4331_v8 = vpop.xlane.xlu0 %4330  ;;  %v4855_v27 = vmul.f32 %v6354_v50, %v9425_v41  ;;  %v9542_v50 = vadd.f32 %v4094_v54, %v10672_v25  ;;  %v10676_v25 = vld [vmem:[#allocation128_spill] sm:$0xff] }
 0xe01   : > { %6357 = vrcp.f32 %v4694_v53  ;;  %v4415_v42 = vsub.f32 %v9432_v40, %v4331_v8  ;;  %v4097_v8 = vpop.f32.mrf.mxu0 }
 0xe02   : > { %5814 = vmatmul.msk.f32.gmra.mxu1 %vm10668_vm13, %v4855_v27  ;;  %v9545_v27 = vpop.f32.mrf.mxu1  ;;  %v4350_v54 = vsel %vm10675_vm11, %v9542_v50, -inf  ;;  %vm10725_vm13 = vmmov %vm10164_vm0 }
 0xe03   : > { %v9535_v4 = vpop.eup %6355  ;;  %v4532_v20 = vmul.f32 1.442695, %v4415_v42  ;;  %vm10735_vm11 = vmmov %vm10164_vm0 }
 0xe04   : > { %10669 = vst [vmem:[#allocation130_spill] sm:$0xff] %v9535_v4  ;;  %v4710_v21 = vsel %vm10670_vm2, %v9535_v4, 0.0  ;;  %vm10728_vm2 = vmmov %vm10164_vm0 }
 0xe05   : > { %6359 = vpow2.f32 %v4532_v20  ;;  %4711 = vadd.xlane.f32.xlu2 %v4710_v21  ;;  %4348 = vmax.xlane.f32.xlu0 %v4347_v0 }
 0xe07   : > { %v6358_v41 = vpop.eup %6357 }
 0xe08   : > { %v4697_v61 = vpop.xlane.xlu1 %4696  ;;  %v4334_v40 = vpop.xlane.xlu2 %4333  ;;  %v4856_v53 = vmul.f32 %v6358_v41, %v9437_v28  ;;  %v5276_v28 = vmul.f32 %v9229_v1, %v10433_v38  ;;  %v5277_v41 = vmul.f32 %v9234_v34, %v7017_v2  ;;  %v5279_v34 = vmul.f32 %v9265_v47, %v7019_v3 }
 0xe09   : > { %6361 = vrcp.f32 %v4697_v61  ;;  %v4416_v42 = vsub.f32 %v9446_v49, %v4334_v40  ;;  %v5275_v49 = vmul.f32 %v9227_v48, %v10432_v29  ;;  %v9562_v61 = vadd.f32 %v4097_v8, %v10676_v25  ;;  %v4100_v29 = vpop.f32.mrf.mxu0 }
 0xe0a   : > { %5815 = vmatmul.msk.f32.gmra.mxu1 %vm10673_vm14, %v4856_v53  ;;  %v9571_v48 = vpop.f32.mrf.mxu1  ;;  %v5282_v47 = vmul.f32 %v9316_v55, %v7025_v6  ;;  %v5283_v25 = vmul.f32 %v9339_v14, %v7031_v10  ;;  %v5284_v6 = vmul.f32 %v9341_v35, %v7034_v12  ;;  %v10683_v55 = vld [vmem:[#allocation131_spill] sm:$0xff]  ;;  %v5285_v10 = vmul.f32 %v9343_v51, %v7051_v23  ;;  %vm10732_vm14 = vmmov %vm10164_vm0 }
 0xe0b   : > { %v9549_v4 = vpop.eup %6359  ;;  %v4534_v20 = vmul.f32 1.442695, %v4416_v42  ;;  %v5288_v35 = vmul.f32 %v9350_v56, %v7045_v19  ;;  %v5289_v23 = vmul.f32 %v9359_v24, %v7063_v31  ;;  %v10689_v31 = vld [vmem:[#allocation113_spill] sm:$0xff] }
 0xe0c   : > { %v4713_v21 = vsel %vm10674_vm1, %v9549_v4, 0.0  ;;  %vm10733_vm1 = vmmov %vm10164_vm0 }
 0xe0d   : > { %6363 = vpow2.f32 %v4534_v20  ;;  %4714 = vadd.xlane.f32.xlu1 %v4713_v21  ;;  %4351 = vmax.xlane.f32.xlu2 %v4350_v54  ;;  %v5339_v20 = vadd.f32 %v5276_v28, %v5275_v49  ;;  %v5278_v21 = vmul.f32 %v9247_v44, %v10434_v52  ;;  %v5280_v44 = vmul.f32 %v9283_v58, %v7023_v5  ;;  %v10680_v28 = vld [vmem:[#allocation129_spill] sm:$0xff] }
 0xe0e   : > { %v5281_v54 = vmul.f32 %v9297_v9, %v7039_v15 }
 0xe0f   : > { %v6362_v0 = vpop.eup %6361  ;;  %v5340_v1 = vadd.f32 %v5339_v20, %v5277_v41  ;;  %v5286_v20 = vmul.f32 %v9345_v59, %v7036_v13 }
 0xe10   : > { %v4337_v40 = vpop.xlane.xlu1 %4336  ;;  %v4857_v53 = vmul.f32 %v6362_v0, %v9448_v11  ;;  %v9584_v0 = vadd.f32 %v4100_v29, %v10680_v28  ;;  %v5287_v29 = vmul.f32 %v9347_v32, %v7042_v17 }
 0xe11   : > { %v4417_v42 = vsub.f32 %v9457_v33, %v4337_v40  ;;  %v4353_v33 = vsel %vm10679_vm3, %v9562_v61, -inf  ;;  %v5341_v52 = vadd.f32 %v5340_v1, %v5278_v21  ;;  %v4103_v15 = vpop.f32.mrf.mxu0  ;;  %vm10738_vm3 = vmmov %vm10164_vm0 }
 0xe12   : > { %5816 = vmatmul.msk.f32.gmra.mxu1 %vm10677_vm10, %v4857_v53  ;;  %v4356_v58 = vsel %vm10682_vm9, %v9584_v0, -inf  ;;  %v5185_v9 = vpop.f32.mrf.mxu1  ;;  %v9599_v53 = vadd.f32 %v4103_v15, %v10683_v55  ;;  %vm10736_vm10 = vmmov %vm10164_vm0 }
 0xe13   : > { %v9569_v38 = vpop.eup %6363  ;;  %v4536_v2 = vmul.f32 1.442695, %v4417_v42  ;;  %v5342_v8 = vadd.f32 %v5341_v52, %v5279_v34  ;;  %v10686_v52 = vld [vmem:[#allocation11_spill] sm:$0xff]  ;;  %vm10740_vm9 = vmmov %vm10164_vm0 }
 0xe14   : > { %v4716_v11 = vsel %vm10678_vm7, %v9569_v38, 0.0  ;;  %vm10737_vm7 = vmmov %vm10164_vm0 }
 0xe15   : > { %6365 = vpow2.f32 %v4536_v2  ;;  %4717 = vadd.xlane.f32.xlu0 %v4716_v11  ;;  %4354 = vmax.xlane.f32.xlu1 %v4353_v33  ;;  %v5343_v3 = vadd.f32 %v5342_v8, %v5280_v44  ;;  %v4359_v2 = vsel %vm10164_vm0, %v9599_v53, -inf  ;;  %v10684_v11 = vld [vmem:[#allocation9_spill] sm:$0xff]  ;;  %v10685_v33 = vld [vmem:[#allocation10_spill] sm:$0xff]  ;;  %v5292_v44 = vmul.f32 %v9403_v62, %v10686_v52 }
 0xe16   : > { %v5290_v13 = vmul.f32 %v9375_v39, %v10684_v11  ;;  %v5291_v17 = vmul.f32 %v9389_v7, %v10685_v33  ;;  %v10691_v39 = vld [vmem:[#allocation115_spill] sm:$0xff]  ;;  %v10693_v7 = vld [vmem:[#allocation116_spill] sm:$0xff]  ;;  %v10695_v62 = vld [vmem:[#allocation117_spill] sm:$0xff] }
 0xe17   : > { %v5344_v41 = vadd.f32 %v5343_v3, %v5281_v54  ;;  %v10687_v54 = vld [vmem:[#allocation16_spill] sm:$0xff] }
 0xe18   : > { %v5293_v19 = vmul.f32 %v9421_v26, %v10687_v54  ;;  %v10688_v3 = vld [vmem:[#allocation12_spill] sm:$0xff]  ;;  %v10697_v26 = vld [vmem:[#allocation118_spill] sm:$0xff] }
 0xe19   : > { %v5345_v40 = vadd.f32 %v5344_v41, %v5282_v47  ;;  %v5294_v24 = vmul.f32 %v10689_v31, %v10688_v3  ;;  %v10690_v41 = vld [vmem:[#allocation13_spill] sm:$0xff]  ;;  %v10706_v3 = vld [vmem:[#allocation22_spill] sm:$0xff] }
 0xe1a   : > { %v5188_v1 = vpop.f32.mrf.mxu1  ;;  %v5304_v31 = vmul.f32 %v9499_v63, %v10706_v3 }
 0xe1b   : > { %v9588_v49 = vpop.eup %6365  ;;  %v5346_v42 = vadd.f32 %v5345_v40, %v5283_v25  ;;  %v5295_v25 = vmul.f32 %v10691_v39, %v10690_v41 }
 0xe1c   : > { %v4719_v5 = vsel %vm10681_vm6, %v9588_v49, 0.0  ;;  %vm10739_vm6 = vmmov %vm10164_vm0 }
 0xe1d   : > { %4720 = vadd.xlane.f32.xlu2 %v4719_v5  ;;  %4357 = vmax.xlane.f32.xlu0 %v4356_v58  ;;  %v5347_v14 = vadd.f32 %v5346_v42, %v5284_v6  ;;  %v10692_v58 = vld [vmem:[#allocation14_spill] sm:$0xff]  ;;  %v10694_v6 = vld [vmem:[#allocation20_spill] sm:$0xff] }
 0xe1e   : > { %v5296_v15 = vmul.f32 %v10693_v7, %v10692_v58  ;;  %v5297_v55 = vmul.f32 %v10695_v62, %v10694_v6  ;;  %v10709_v7 = vld [vmem:[#allocation25_spill] sm:$0xff] }
 0xe1f   : > { %v5348_v21 = vadd.f32 %v5347_v14, %v5285_v10  ;;  %v10696_v10 = vld [vmem:[#allocation15_spill] sm:$0xff] }
 0xe20   : > { %v5298_v14 = vmul.f32 %v10697_v26, %v10696_v10  ;;  %v10712_v10 = vld [vmem:[#allocation27_spill] sm:$0xff] }
 0xe21   : > { %v5349_v12 = vadd.f32 %v5348_v21, %v5286_v20  ;;  %v5310_v26 = vmul.f32 %v5188_v1, %v10712_v10 }
 0xe22   : > { %v5191_v56 = vpop.f32.mrf.mxu1 }
 0xe23   : > { %v5350_v34 = vadd.f32 %v5349_v12, %v5287_v29  ;;  %v10698_v29 = vld [vmem:[#allocation17_spill] sm:$0xff] }
 0xe25   : > { %4360 = vmax.xlane.f32.xlu2 %v4359_v2  ;;  %v5351_v51 = vadd.f32 %v5350_v34, %v5288_v35  ;;  %v10699_v2 = vld [vmem:[#allocation119_spill] sm:$0xff]  ;;  %v10700_v34 = vld [vmem:[#allocation18_spill] sm:$0xff] }
 0xe26   : > { %v5299_v12 = vmul.f32 %v10699_v2, %v10698_v29 }
 0xe27   : > { %v5352_v59 = vadd.f32 %v5351_v51, %v5289_v23  ;;  %v10701_v23 = vld [vmem:[#allocation120_spill] sm:$0xff] }
 0xe28   : > { %v5300_v51 = vmul.f32 %v10701_v23, %v10700_v34 }
 0xe29   : > { %v5353_v32 = vadd.f32 %v5352_v59, %v5290_v13  ;;  %v10702_v13 = vld [vmem:[#allocation24_spill] sm:$0xff]  ;;  %v10703_v59 = vld [vmem:[#allocation121_spill] sm:$0xff] }
 0xe2a   : > { %v5194_v20 = vpop.f32.mrf.mxu1  ;;  %v5301_v33 = vmul.f32 %v10703_v59, %v10702_v13 }
 0xe2b   : > { %v5354_v8 = vadd.f32 %v5353_v32, %v5291_v17  ;;  %v10704_v32 = vld [vmem:[#allocation19_spill] sm:$0xff] }
 0xe2c   : > { %v5302_v52 = vmul.f32 %v9474_v60, %v10704_v32  ;;  %v5307_v60 = vmul.f32 %v9545_v27, %v10709_v7  ;;  %v10715_v27 = vld [vmem:[#allocation36_spill] sm:$0xff] }
 0xe2d   : > { %v5355_v28 = vadd.f32 %v5354_v8, %v5292_v44  ;;  %v10705_v8 = vld [vmem:[#allocation21_spill] sm:$0xff] }
 0xe2e   : > { %v5303_v54 = vmul.f32 %v9483_v22, %v10705_v8 }
 0xe2f   : > { %v5356_v47 = vadd.f32 %v5355_v28, %v5293_v19 }
 0xe31   : > { %v5357_v5 = vadd.f32 %v5356_v47, %v5294_v24  ;;  %v10707_v47 = vld [vmem:[#allocation28_spill] sm:$0xff] }
 0xe32   : > { %v5197_v19 = vpop.f32.mrf.mxu1  ;;  %v5305_v41 = vmul.f32 %v9513_v37, %v10707_v47 }
 0xe33   : > { %v5358_v40 = vadd.f32 %v5357_v5, %v5295_v25  ;;  %v10708_v25 = vld [vmem:[#allocation23_spill] sm:$0xff]  ;;  %v5313_v34 = vmul.f32 %v5197_v19, %v10715_v27 }
 0xe34   : > { %v5306_v5 = vmul.f32 %v9531_v18, %v10708_v25  ;;  %v10714_v18 = vld [vmem:[#allocation30_spill] sm:$0xff] }
 0xe35   : > { %v5359_v42 = vadd.f32 %v5358_v40, %v5296_v15  ;;  %v10710_v40 = vld [vmem:[#allocation26_spill] sm:$0xff]  ;;  %v5312_v2 = vmul.f32 %v5194_v20, %v10714_v18  ;;  %v10727_v18 = vld [vmem:[#allocation127_spill] sm:$0xff] }
 0xe36   : > { %v5308_v22 = vmul.f32 %v9571_v48, %v10710_v40  ;;  %v10723_v40 = vld [vmem:[#allocation35_spill] sm:$0xff] }
 0xe37   : > { %v5360_v21 = vadd.f32 %v5359_v42, %v5297_v55  ;;  %v10711_v55 = vld [vmem:[#allocation32_spill] sm:$0xff] }
 0xe38   : > { %v5309_v63 = vmul.f32 %v5185_v9, %v10711_v55  ;;  %v10717_v9 = vld [vmem:[#allocation33_spill] sm:$0xff] }
 0xe39   : > { %v5361_v35 = vadd.f32 %v5360_v21, %v5298_v14  ;;  %v10713_v14 = vld [vmem:[#allocation29_spill] sm:$0xff] }
 0xe3a   : > { %v5200_v6 = vpop.f32.mrf.mxu1  ;;  %v5311_v21 = vmul.f32 %v5191_v56, %v10713_v14  ;;  %v10718_v56 = vld [vmem:[#allocation34_spill] sm:$0xff]  ;;  %v10726_v14 = vld [vmem:[#allocation37_spill] sm:$0xff] }
 0xe3b   : > { %v5362_v11 = vadd.f32 %v5361_v35, %v5299_v12 }
 0xe3d   : > { %v5363_v17 = vadd.f32 %v5362_v11, %v5300_v51  ;;  %v10716_v51 = vld [vmem:[#allocation31_spill] sm:$0xff] }
 0xe3e   : > { %v5314_v11 = vmul.f32 %v5200_v6, %v10716_v51  ;;  %v10730_v51 = vld [vmem:[#allocation38_spill] sm:$0xff] }
 0xe3f   : > { %v5364_v44 = vadd.f32 %v5363_v17, %v5301_v33 }
 0xe41   : > { %v5365_v28 = vadd.f32 %v5364_v44, %v5302_v52 }
 0xe43   : > { %v5366_v24 = vadd.f32 %v5365_v28, %v5303_v54 }
 0xe45   : > { %v5367_v39 = vadd.f32 %v5366_v24, %v5304_v31  ;;  %v10720_v24 = vld [vmem:[#allocation39_spill] sm:$0xff] }
 0xe47   : > { %v5368_v58 = vadd.f32 %v5367_v39, %v5305_v41 }
 0xe49   : > { %v5369_v15 = vadd.f32 %v5368_v58, %v5306_v5 }
 0xe4b   : > { %v5370_v62 = vadd.f32 %v5369_v15, %v5307_v60 }
 0xe4d   : > { %v5371_v42 = vadd.f32 %v5370_v62, %v5308_v22 }
 0xe4f   : > { %v5372_v37 = vadd.f32 %v5371_v42, %v5309_v63 }
 0xe51   : > { %v5373_v29 = vadd.f32 %v5372_v37, %v5310_v26 }
 0xe53   : > { %v5374_v35 = vadd.f32 %v5373_v29, %v5311_v21 }
 0xe55   : > { %v5375_v48 = vadd.f32 %v5374_v35, %v5312_v2 }
 0xe57   : > { %v5203_v12 = vpop.f32.mrf.mxu1  ;;  %v5376_v13 = vadd.f32 %v5375_v48, %v5313_v34 }
 0xe58   : > { %v4700_v23 = vpop.xlane.xlu0 %4699  ;;  %v5315_v59 = vmul.f32 %v5203_v12, %v10717_v9 }
 0xe59   : > { %6367 = vrcp.f32 %v4700_v23  ;;  %v5377_v33 = vadd.f32 %v5376_v13, %v5314_v11 }
 0xe5b   : > { %v5378_v32 = vadd.f32 %v5377_v33, %v5315_v59  ;;  %v10731_v59 = vld [vmem:[#allocation130_spill] sm:$0xff] }
 0xe5f   : > { %v6368_v1 = vpop.eup %6367  ;;  %v5206_v17 = vpop.f32.mrf.mxu1 }
 0xe60   : > { %v5316_v52 = vmul.f32 %v5206_v17, %v10718_v56  ;;  %v4703_v44 = vpop.xlane.xlu2 %4702  ;;  %v4340_v20 = vpop.xlane.xlu0 %4339  ;;  %v4858_v8 = vmul.f32 %v6368_v1, %v9481_v45 }
 0xe61   : > { %6369 = vrcp.f32 %v4703_v44  ;;  %v4418_v54 = vsub.f32 %v9488_v16, %v4340_v20  ;;  %v10734_v20 = vld [vmem:[#allocation43_spill] sm:$0xff] }
 0xe62   : > { %v5379_v19 = vadd.f32 %v5378_v32, %v5316_v52  ;;  %5817 = vmatmul.msk.f32.gmra.mxu1 %vm10719_vm12, %v4858_v8  ;;  %vm10744_vm12 = vmmov %vm10164_vm0 }
 0xe63   : > { %v4538_v28 = vmul.f32 1.442695, %v4418_v54 }
 0xe65   : > { %6371 = vpow2.f32 %v4538_v28 }
 0xe67   : > { %v6370_v3 = vpop.eup %6369  ;;  %v5209_v31 = vpop.f32.mrf.mxu1 }
 0xe68   : > { %v5317_v47 = vmul.f32 %v5209_v31, %v10720_v24  ;;  %v4706_v41 = vpop.xlane.xlu1 %4705  ;;  %v4343_v39 = vpop.xlane.xlu2 %4342  ;;  %v4859_v25 = vmul.f32 %v6370_v3, %v9493_v46 }
 0xe69   : > { %6373 = vrcp.f32 %v4706_v41  ;;  %v4419_v5 = vsub.f32 %v9502_v36, %v4343_v39 }
 0xe6a   : > { %v5380_v45 = vadd.f32 %v5379_v19, %v5317_v47  ;;  %5818 = vmatmul.msk.f32.gmra.mxu1 %vm10721_vm15, %v4859_v25  ;;  %vm10746_vm15 = vmmov %vm10164_vm0 }
 0xe6b   : > { %v9666_v16 = vpop.eup %6371  ;;  %v4540_v58 = vmul.f32 1.442695, %v4419_v5 }
 0xe6c   : > { %v4722_v7 = vsel %vm10722_vm4, %v9666_v16, 0.0  ;;  %vm10748_vm4 = vmmov %vm10164_vm0 }
 0xe6d   : > { %6375 = vpow2.f32 %v4540_v58  ;;  %4723 = vadd.xlane.f32.xlu1 %v4722_v7 }
 0xe6f   : > { %v6374_v60 = vpop.eup %6373  ;;  %v5212_v15 = vpop.f32.mrf.mxu1 }
 0xe70   : > { %v5318_v22 = vmul.f32 %v5212_v15, %v10723_v40  ;;  %v4709_v6 = vpop.xlane.xlu0 %4708  ;;  %v4346_v46 = vpop.xlane.xlu1 %4345  ;;  %v4860_v62 = vmul.f32 %v6374_v60, %v9507_v30 }
 0xe71   : > { %6377 = vrcp.f32 %v4709_v6  ;;  %v4420_v36 = vsub.f32 %v9516_v57, %v4346_v46 }
 0xe72   : > { %v5381_v55 = vadd.f32 %v5380_v45, %v5318_v22  ;;  %5819 = vmatmul.msk.f32.gmra.mxu1 %vm10724_vm8, %v4860_v62  ;;  %vm10750_vm8 = vmmov %vm10164_vm0 }
 0xe73   : > { %v9674_v63 = vpop.eup %6375  ;;  %v4542_v42 = vmul.f32 1.442695, %v4420_v36  ;;  %v10741_v36 = vld [vmem:[#allocation40_spill] sm:$0xff] }
 0xe74   : > { %v4725_v10 = vsel %vm10725_vm13, %v9674_v63, 0.0  ;;  %vm10751_vm13 = vmmov %vm10164_vm0 }
 0xe75   : > { %6379 = vpow2.f32 %v4542_v42  ;;  %4726 = vadd.xlane.f32.xlu0 %v4725_v10 }
 0xe77   : > { %v6378_v26 = vpop.eup %6377  ;;  %v5215_v37 = vpop.f32.mrf.mxu1 }
 0xe78   : > { %v5319_v21 = vmul.f32 %v5215_v37, %v10726_v14  ;;  %v4712_v29 = vpop.xlane.xlu2 %4711  ;;  %v4349_v30 = vpop.xlane.xlu0 %4348  ;;  %v4861_v2 = vmul.f32 %v6378_v26, %v10727_v18 }
 0xe79   : > { %6381 = vrcp.f32 %v4712_v29  ;;  %v4421_v57 = vsub.f32 %v9528_v43, %v4349_v30  ;;  %v10743_v29 = vld [vmem:[#allocation42_spill] sm:$0xff] }
 0xe7a   : > { %v5382_v12 = vadd.f32 %v5381_v55, %v5319_v21  ;;  %5820 = vmatmul.msk.f32.gmra.mxu1 %vm10728_vm2, %v4861_v2  ;;  %vm10752_vm2 = vmmov %vm10164_vm0 }
 0xe7b   : > { %v9682_v35 = vpop.eup %6379  ;;  %v4544_v27 = vmul.f32 1.442695, %v4421_v57 }
 0xe7c   : > { %v4728_v34 = vsel %vm10729_vm5, %v9682_v35, 0.0  ;;  %vm10753_vm5 = vmmov %vm10164_vm0 }
 0xe7d   : > { %6383 = vpow2.f32 %v4544_v27  ;;  %4729 = vadd.xlane.f32.xlu1 %v4728_v34  ;;  %v10745_v34 = vld [vmem:[#allocation46_spill] sm:$0xff] }
 0xe7f   : > { %v6382_v23 = vpop.eup %6381  ;;  %v5218_v48 = vpop.f32.mrf.mxu1 }
 0xe80   : > { %v5320_v11 = vmul.f32 %v5218_v48, %v10730_v51  ;;  %v4715_v13 = vpop.xlane.xlu1 %4714  ;;  %v4352_v9 = vpop.xlane.xlu2 %4351  ;;  %v4862_v33 = vmul.f32 %v6382_v23, %v10731_v59  ;;  %v10747_v59 = vld [vmem:[#allocation44_spill] sm:$0xff] }
 0xe81   : > { %6385 = vrcp.f32 %v4715_v13  ;;  %v4422_v43 = vsub.f32 %v9542_v50, %v4352_v9 }
 0xe82   : > { %v5383_v1 = vadd.f32 %v5382_v12, %v5320_v11  ;;  %5821 = vmatmul.msk.f32.gmra.mxu1 %vm10732_vm14, %v4862_v33  ;;  %vm10754_vm14 = vmmov %vm10164_vm0 }
 0xe83   : > { %v9690_v17 = vpop.eup %6383  ;;  %v4546_v32 = vmul.f32 1.442695, %v4422_v43 }
 0xe84   : > { %v4731_v56 = vsel %vm10733_vm1, %v9690_v17, 0.0 }
 0xe85   : > { %6387 = vpow2.f32 %v4546_v32  ;;  %4732 = vadd.xlane.f32.xlu2 %v4731_v56 }
 0xe87   : > { %v6386_v52 = vpop.eup %6385  ;;  %v5221_v44 = vpop.f32.mrf.mxu1 }
 0xe88   : > { %v5321_v8 = vmul.f32 %v5221_v44, %v10734_v20  ;;  %v4718_v54 = vpop.xlane.xlu0 %4717  ;;  %v4355_v19 = vpop.xlane.xlu1 %4354  ;;  %v4863_v28 = vmul.f32 %v6386_v52, %v9549_v4  ;;  %v10749_v52 = vld [vmem:[#allocation45_spill] sm:$0xff] }
 0xe89   : > { %6389 = vrcp.f32 %v4718_v54  ;;  %v4423_v50 = vsub.f32 %v9562_v61, %v4355_v19 }
 0xe8a   : > { %v5384_v3 = vadd.f32 %v5383_v1, %v5321_v8  ;;  %5822 = vmatmul.msk.f32.gmra.mxu1 %vm10735_vm11, %v4863_v28 }
 0xe8b   : > { %v9698_v31 = vpop.eup %6387  ;;  %v4548_v24 = vmul.f32 1.442695, %v4423_v50 }
 0xe8c   : > { %v4734_v47 = vsel %vm10736_vm10, %v9698_v31, 0.0  ;;  %vm10766_vm10 = vmmov %vm10164_vm0 }
 0xe8d   : > { %6391 = vpow2.f32 %v4548_v24  ;;  %4735 = vadd.xlane.f32.xlu0 %v4734_v47 }
 0xe8f   : > { %v6390_v41 = vpop.eup %6389  ;;  %v5224_v62 = vpop.f32.mrf.mxu1 }
 0xe90   : > { %v4721_v39 = vpop.xlane.xlu2 %4720  ;;  %v4358_v25 = vpop.xlane.xlu0 %4357  ;;  %v4864_v5 = vmul.f32 %v6390_v41, %v9569_v38  ;;  %v5322_v55 = vmul.f32 %v5224_v62, %v10741_v36 }
 0xe91   : > { %6393 = vrcp.f32 %v4721_v39  ;;  %v4424_v4 = vsub.f32 %v9584_v0, %v4358_v25 }
 0xe92   : > { %5823 = vmatmul.msk.f32.gmra.mxu1 %vm10737_vm7, %v4864_v5  ;;  %v5385_v10 = vadd.f32 %v5384_v3, %v5322_v55 }
 0xe93   : > { %v9705_v61 = vpop.eup %6391  ;;  %v4550_v45 = vmul.f32 1.442695, %v4424_v4 }
 0xe94   : > { %v4737_v58 = vsel %vm10738_vm3, %v9705_v61, 0.0 }
 0xe95   : > { %6395 = vpow2.f32 %v4550_v45  ;;  %4738 = vadd.xlane.f32.xlu1 %v4737_v58 }
 0xe97   : > { %v6394_v7 = vpop.eup %6393 }
 0xe98   : > { %v4361_v60 = vpop.xlane.xlu2 %4360  ;;  %v4865_v15 = vmul.f32 %v6394_v7, %v9588_v49  ;;  %v10742_v49 = vld [vmem:[#allocation41_spill] sm:$0xff] }
 0xe99   : > { %v4425_v40 = vsub.f32 %v9599_v53, %v4361_v60  ;;  %v10755_v60 = vld [vmem:[#allocation47_spill] sm:$0xff] }
 0xe9a   : > { %5824 = vmatmul.msk.f32.gmra.mxu1 %vm10739_vm6, %v4865_v15 }
 0xe9b   : > { %v6396_v38 = vpop.eup %6395  ;;  %v4552_v0 = vmul.f32 1.442695, %v4425_v40  ;;  %v10756_v40 = vld [vmem:[#allocation49_spill] sm:$0xff] }
 0xe9c   : > { %v4740_v22 = vsel %vm10740_vm9, %v6396_v38, 0.0 }
 0xe9d   : > { %6397 = vpow2.f32 %v4552_v0  ;;  %4741 = vadd.xlane.f32.xlu2 %v4740_v22  ;;  %v10757_v22 = vld [vmem:[#allocation48_spill] sm:$0xff] }
 0xea3   : > { %v6398_v6 = vpop.eup %6397 }
 0xea4   : > { %v4743_v46 = vsel %vm10164_vm0, %v6398_v6, 0.0 }
 0xea5   : > { %4744 = vadd.xlane.f32.xlu0 %v4743_v46 }
 0xedf   : > { %v5227_v42 = vpop.f32.mrf.mxu1 }
 0xee0   : > { %v5323_v26 = vmul.f32 %v5227_v42, %v10742_v49  ;;  %v4724_v53 = vpop.xlane.xlu1 %4723 }
 0xee1   : > { %6399 = vrcp.f32 %v4724_v53  ;;  %v10760_v53 = vld [vmem:[#allocation53_spill] sm:$0xff] }
 0xee2   : > { %v5386_v37 = vadd.f32 %v5385_v10, %v5323_v26  ;;  %v10759_v10 = vld [vmem:[#allocation51_spill] sm:$0xff] }
 0xee7   : > { %v6400_v14 = vpop.eup %6399  ;;  %v5230_v21 = vpop.f32.mrf.mxu1 }
 0xee8   : > { %v5324_v30 = vmul.f32 %v5230_v21, %v10743_v29  ;;  %v4727_v18 = vpop.xlane.xlu0 %4726  ;;  %v4866_v2 = vmul.f32 %v6400_v14, %v9666_v16  ;;  %v10761_v21 = vld [vmem:[#allocation52_spill] sm:$0xff] }
 0xee9   : > { %6401 = vrcp.f32 %v4727_v18 }
 0xeea   : > { %v5387_v57 = vadd.f32 %v5386_v37, %v5324_v30  ;;  %5825 = vmatmul.msk.f32.gmra.mxu1 %vm10744_vm12, %v4866_v2  ;;  %v10762_v2 = vld [vmem:[#allocation54_spill] sm:$0xff] }
 0xeef   : > { %v6402_v12 = vpop.eup %6401  ;;  %v5233_v27 = vpop.f32.mrf.mxu1 }
 0xef0   : > { %v5325_v23 = vmul.f32 %v5233_v27, %v10745_v34  ;;  %v4730_v48 = vpop.xlane.xlu1 %4729  ;;  %v4867_v51 = vmul.f32 %v6402_v12, %v9674_v63  ;;  %v10763_v27 = vld [vmem:[#allocation55_spill] sm:$0xff] }
 0xef1   : > { %6403 = vrcp.f32 %v4730_v48  ;;  %v10764_v48 = vld [vmem:[#allocation56_spill] sm:$0xff] }
 0xef2   : > { %v5388_v11 = vadd.f32 %v5387_v57, %v5325_v23  ;;  %5826 = vmatmul.msk.f32.gmra.mxu1 %vm10746_vm15, %v4867_v51 }
 0xef7   : > { %v6404_v13 = vpop.eup %6403  ;;  %v5236_v9 = vpop.f32.mrf.mxu1 }
 0xef8   : > { %v5326_v33 = vmul.f32 %v5236_v9, %v10747_v59  ;;  %v4733_v16 = vpop.xlane.xlu2 %4732  ;;  %v4868_v43 = vmul.f32 %v6404_v13, %v9682_v35  ;;  %v10765_v59 = vld [vmem:[#allocation57_spill] sm:$0xff] }
 0xef9   : > { %6405 = vrcp.f32 %v4733_v16 }
 0xefa   : > { %v5389_v1 = vadd.f32 %v5388_v11, %v5326_v33  ;;  %5827 = vmatmul.msk.f32.gmra.mxu1 %vm10748_vm4, %v4868_v43 }
 0xeff   : > { %v6406_v32 = vpop.eup %6405  ;;  %v5239_v56 = vpop.f32.mrf.mxu1 }
 0xf00   : > { %v5327_v44 = vmul.f32 %v5239_v56, %v10749_v52  ;;  %v4736_v63 = vpop.xlane.xlu0 %4735  ;;  %v4869_v20 = vmul.f32 %v6406_v32, %v9690_v17 }
 0xf01   : > { %6407 = vrcp.f32 %v4736_v63 }
 0xf02   : > { %v5390_v8 = vadd.f32 %v5389_v1, %v5327_v44  ;;  %5828 = vmatmul.msk.f32.gmra.mxu1 %vm10750_vm8, %v4869_v20 }
 0xf07   : > { %v6408_v54 = vpop.eup %6407 }
 0xf08   : > { %v4739_v19 = vpop.xlane.xlu1 %4738  ;;  %v4870_v28 = vmul.f32 %v6408_v54, %v9698_v31  ;;  %v5242_v31 = vpop.f32.mrf.mxu1 }
 0xf09   : > { %6409 = vrcp.f32 %v4739_v19  ;;  %v5328_v15 = vmul.f32 %v5242_v31, %v10755_v60 }
 0xf0a   : > { %5829 = vmatmul.msk.f32.gmra.mxu1 %vm10751_vm13, %v4870_v28 }
 0xf0b   : > { %v5391_v0 = vadd.f32 %v5390_v8, %v5328_v15 }
 0xf0f   : > { %v6410_v35 = vpop.eup %6409 }
 0xf10   : > { %v4871_v50 = vmul.f32 %v6410_v35, %v9705_v61  ;;  %v4742_v3 = vpop.xlane.xlu2 %4741  ;;  %v5245_v25 = vpop.f32.mrf.mxu1 }
 0xf11   : > { %6411 = vrcp.f32 %v4742_v3 }
 0xf12   : > { %5830 = vmatmul.msk.f32.gmra.mxu1 %vm10752_vm2, %v4871_v50 }
 0xf17   : > { %v6412_v24 = vpop.eup %6411 }
 0xf18   : > { %v4872_v17 = vmul.f32 %v6412_v24, %v6396_v38  ;;  %v4745_v47 = vpop.xlane.xlu0 %4744  ;;  %v5248_v5 = vpop.f32.mrf.mxu1  ;;  %v5329_v38 = vmul.f32 %v5245_v25, %v10756_v40 }
 0xf19   : > { %6413 = vrcp.f32 %v4745_v47  ;;  %v5330_v46 = vmul.f32 %v5248_v5, %v10757_v22 }
 0xf1a   : > { %5831 = vmatmul.msk.f32.gmra.mxu1 %vm10753_vm5, %v4872_v17  ;;  %v5392_v36 = vadd.f32 %v5391_v0, %v5329_v38 }
 0xf1c   : > { %v5393_v42 = vadd.f32 %v5392_v36, %v5330_v46 }
 0xf1f   : > { %v6414_v41 = vpop.eup %6413 }
 0xf20   : > { %v4873_v39 = vmul.f32 %v6414_v41, %v6398_v6  ;;  %v10758_v6 = vld [vmem:[#allocation50_spill] sm:$0xff] }
 0xf22   : > { %5832 = vmatmul.msk.f32.gmra.mxu1 %vm10754_vm14, %v4873_v39 }
 0xf67   : > { %v5251_v4 = vpop.f32.mrf.mxu1 }
 0xf68   : > { %v5331_v55 = vmul.f32 %v5251_v4, %v10758_v6 }
 0xf6a   : > { %v5394_v26 = vadd.f32 %v5393_v42, %v5331_v55 }
 0xf6f   : > { %v5254_v45 = vpop.f32.mrf.mxu1 }
 0xf70   : > { %v5332_v49 = vmul.f32 %v5254_v45, %v10759_v10 }
 0xf72   : > { %v5395_v14 = vadd.f32 %v5394_v26, %v5332_v49 }
 0xf77   : > { %v5257_v61 = vpop.f32.mrf.mxu1 }
 0xf78   : > { %v5333_v37 = vmul.f32 %v5257_v61, %v10760_v53 }
 0xf7a   : > { %v5396_v18 = vadd.f32 %v5395_v14, %v5333_v37 }
 0xf7f   : > { %v5260_v58 = vpop.f32.mrf.mxu1 }
 0xf80   : > { %v5334_v29 = vmul.f32 %v5260_v58, %v10761_v21 }
 0xf82   : > { %v5397_v12 = vadd.f32 %v5396_v18, %v5334_v29 }
 0xf87   : > { %v5263_v7 = vpop.f32.mrf.mxu1 }
 0xf88   : > { %v5335_v57 = vmul.f32 %v5263_v7, %v10762_v2 }
 0xf8a   : > { %v5398_v23 = vadd.f32 %v5397_v12, %v5335_v57 }
 0xf8f   : > { %v5266_v62 = vpop.f32.mrf.mxu1 }
 0xf90   : > { %v5336_v34 = vmul.f32 %v5266_v62, %v10763_v27 }
 0xf92   : > { %v5399_v11 = vadd.f32 %v5398_v23, %v5336_v34 }
 0xf97   : > { %v5269_v30 = vpop.f32.mrf.mxu1 }
 0xf98   : > { %v5337_v51 = vmul.f32 %v5269_v30, %v10764_v48 }
 0xf9a   : > { %v5400_v9 = vadd.f32 %v5399_v11, %v5337_v51 }
 0xf9f   : > { %v5272_v13 = vpop.f32.mrf.mxu1 }
 0xfa0   : > { %v5338_v33 = vmul.f32 %v5272_v13, %v10765_v59 }
 0xfa2   : > { %v5401_v16 = vadd.f32 %v5400_v9, %v5338_v33 }
 0xfa4   : > { %v5402_v43 = vmul.f32 %v5401_v16, %v5401_v16 }
 0xfa6   : > { %5419 = vmatmul.f32.vlgmr.msrb.gmra.mxu3 %v5402_v43 }
0x1029   : > { %v5420_v1 = vpop.f32.mrf.mxu3 }
0x102a   : > { %6415 = vrsqrt.f32 %v5420_v1  ;;  %vm5430_vm1 = vcmp.eq.f32.partialorder %v5420_v1, inf  ;;  %v5433_v54 = vand.u32 2147483648, %v5420_v1  ;;  %vm5432_vm11 = vcmp.eq.f32.partialorder %v5420_v1, 0.0 }
0x102b   : > { %v5435_v35 = vadd.f32 1.0, %v5420_v1 }
0x1030   : > { %v6416_v32 = vpop.eup %6415 }
0x1031   : > { %v5424_v56 = vmul.f32 %v6416_v32, %v5420_v1 }
0x1033   : > { %v5425_v52 = vmul.f32 %v6416_v32, %v5424_v56 }
0x1035   : > { %v5426_v44 = vmul.f32 0.5, %v5425_v52 }
0x1037   : > { %v5427_v63 = vsub.f32 1.5, %v5426_v44 }
0x1039   : > { %v5428_v20 = vmul.f32 %v6416_v32, %v5427_v63 }
0x103b   : > { %v5429_v8 = vmul.f32 %v5428_v20, %v5420_v1 }
0x103d   : > { %v5431_v19 = vsel %vm5430_vm1, %v5420_v1, %v5429_v8 }
0x103e   : > { %v5434_v28 = vsel %vm5432_vm11, %v5433_v54, %v5431_v19 }
0x103f   : > { %v5436_v50 = vadd.f32 1e-08, %v5434_v28 }
0x1041   : > { %v5437_v3 = vmul.f32 %v5436_v50, %v5435_v35 }
0x1043   : > { %6417 = vrcp.f32 %v5437_v3 }
0x1049   : > { %v6418_v24 = vpop.eup %6417 }
0x104a   : > { %v5439_v17 = vmul.f32 %v6418_v24, %v5420_v1 }
0x104c   : > { %5850 = vmatmul.msk.f32.vlgmr.msra.gmra.mxu3 %vm10766_vm10, %v5439_v17 }
0x10cf   : > { %v5460_v47 = vpop.f32.mrf.mxu3 }
0x10d0   : > { %v5463_v41 = vmul.f32 %v5460_v47, %v5401_v16 }
0x10d2   : > { %5464 = vst [vmem:[%s428_s24] sm:$0xff] %v5463_v41 }
0x10d3   : > { %6446 = shalt.err (!%p6443_p5)
}
0x10d4   : > { %5855 = dma.vmem_to_hbm [thread:$0]  (%p6537_p6), %s5479_s25, 128, %s5481_s26, %s5466_s28  }
0x10d5 PF: > { %s5492_s30 = sand.u32 1, %s6469_s9   ;;  %p5858_p7 = pnand %p5548_p9, %p6541_p8 }
0x10d6   : > { %s5493_s8 = scalar_lea.sflag [#allocation4], %s5492_s30 }
0x10d7   : > { %p5859_p10 = pneg %p5858_p7 }
0x10d9   : > { %6464 = dma.done.wait (%p5859_p10), %s5493_s8, 128  }
0x10da   : > { %6466 = vsyncadd (%p5859_p10), %s5493_s8, 4294967168  ;;  %p12_p11 = scmp.ge.s32.totalorder %s6522_s15, 4   ;;  %s10767_s9 = smov %s6473_s10 }
0x10db   : > { %s10768_s10 = smov %s6477_s11  ;;  %s10769_s11 = smov %s6535_s18 }
0x10dc   : > { %s10770_s12 = smov %s6522_s15  ;;  %14 = sbr.rel (!%p12_p11) target bundleno = 3 (0x3), region = 106 }
0x10e1   :  { %5499 = vsyncpa [#allocation4], 1 }
0x10e2   :  { %5501 = vsyncpa [#allocation4 + $0x1], 1 }

</bundles_post_ra>
